<compile_context>
chip_gen: v5e
topology: v5e:2x2
jax: 0.10.0
libtpu: 0.0.40
codegen_flags: <defaults>
</compile_context>

<pallas_src>
import math

import jax
import jax.numpy as jnp
from jax.experimental import pallas as pl
from jax.experimental.pallas import tpu as pltpu

# ----------------------------- model constants ------------------------------
HIDDEN = 128            # hidden_dim (constructor arg of the torch module)
VOCAB = 100             # vocab_size (torch default)
NHEAD = 4
HEAD_DIM = HIDDEN // NHEAD
FF = 512                # dim_feedforward
MEM_LEN = 10            # features repeated 10x to build decoder memory
LN_EPS = 1e-5
HEAD_OUT = 128          # fused head output padded to a full 128-lane vreg

_CP = pltpu.CompilerParams(vmem_limit_bytes=16 * 1024 * 1024)


# --------------------------- fused CNN stage kernel --------------------------
def conv_pool_kernel(p_ref, w_ref, b_ref, o_ref):
    # p_ref: (4*R, 9*Cin) patch rows grouped by pooling quadrant, each group
    #        ordered (b, i, j).  w_ref: (9*Cin, Cout) bf16.  b_ref: (1, Cout).
    # Conv (matmul) + bias + ReLU, then 2x2 maxpool = max over the 4 groups.
    y = jnp.dot(p_ref[...].astype(jnp.bfloat16), w_ref[...],
                preferred_element_type=jnp.float32) + b_ref[...]
    y = jnp.maximum(y, 0.0)
    r = o_ref.shape[0]
    o_ref[...] = jnp.maximum(jnp.maximum(y[0:r], y[r:2 * r]),
                             jnp.maximum(y[2 * r:3 * r], y[3 * r:4 * r]))


def _conv4_gap(p4_ref, w4_ref, b4_ref, batch):
    # Final conv + ReLU + AdaptiveAvgPool2d(1).  p4_ref: (B*4, 9*64) natural
    # (b, h, w) row order.  Returns per-batch features (B, HIDDEN) in f32.
    y = jnp.dot(p4_ref[...].astype(jnp.bfloat16), w4_ref[...],
                preferred_element_type=jnp.float32) + b4_ref[...]
    y = jnp.maximum(y, 0.0)                                   # (B*4, HIDDEN)
    feats = [jnp.mean(y[4 * b:4 * b + 4, :], axis=0, keepdims=True)
             for b in range(batch)]
    return jnp.concatenate(feats, axis=0)                     # (B, HIDDEN)


# -------------------- fused conv4 + decoder layer + heads --------------------
def decoder_heads_kernel(p4_ref, w4_ref, b4_ref,
                         emb_ref,
                         wqkv_ref, bqkv_ref, wos_ref, bos_ref,
                         wqc_ref, bqc_ref, wkvc_ref, bkvc_ref, woc_ref, boc_ref,
                         lng_ref, lnb_ref,
                         w1_ref, b1_ref, w2_ref, b2_ref,
                         wh_ref, bh_ref,
                         o_ref):
    H = HIDDEN
    B = p4_ref.shape[0] // 4
    T = emb_ref.shape[0] // B
    scale = 1.0 / math.sqrt(HEAD_DIM)

    feats = _conv4_gap(p4_ref, w4_ref, b4_ref, B)             # (B, H) f32

    def mm(a, w_ref):
        # bf16 MXU matmul, f32 accumulation.
        return jnp.dot(a.astype(jnp.bfloat16), w_ref[...],
                       preferred_element_type=jnp.float32)

    def layer_norm(v, idx):
        g = lng_ref[idx:idx + 1, :]
        bt = lnb_ref[idx:idx + 1, :]
        mu = jnp.mean(v, axis=-1, keepdims=True)
        var = jnp.mean(jnp.square(v - mu), axis=-1, keepdims=True)
        return (v - mu) * jax.lax.rsqrt(var + LN_EPS) * g + bt

    def attend(q, k, v):
        # q: (Tq, H), k/v: (S, H).  Per-head scores / softmax / PV, then one
        # lane-concat so the output projection is a single (Tq,128)x(128,128).
        outs = []
        for h in range(NHEAD):
            lo = h * HEAD_DIM
            qh = q[:, lo:lo + HEAD_DIM]
            kh = k[:, lo:lo + HEAD_DIM]
            vh = v[:, lo:lo + HEAD_DIM]
            s = jax.lax.dot_general(qh, kh, (((1,), (1,)), ((), ())),
                                    preferred_element_type=jnp.float32) * scale
            s = s - jnp.max(s, axis=-1, keepdims=True)
            e = jnp.exp(s)
            p = e * pl.reciprocal(jnp.sum(e, axis=-1, keepdims=True), approx=True)
            outs.append(jnp.dot(p, vh, preferred_element_type=jnp.float32))
        return jnp.concatenate(outs, axis=-1)                 # (Tq, H)

    x = emb_ref[...]                                          # (B*T, H) f32

    # --- self-attention block (post-norm; reference passes no tgt_mask) ---
    qkv = mm(x, wqkv_ref) + bqkv_ref[...]                     # (B*T, 3H)
    sa = []
    for b in range(B):
        r0, r1 = b * T, (b + 1) * T
        sa.append(attend(qkv[r0:r1, 0:H], qkv[r0:r1, H:2 * H],
                         qkv[r0:r1, 2 * H:3 * H]))
    sa = jnp.concatenate(sa, axis=0)                          # (B*T, H)
    x = layer_norm(x + mm(sa, wos_ref) + bos_ref[...], 0)

    # --- cross-attention over the repeated-feature memory ---
    # memory rows are identical copies of feats[b], so K/V are the broadcast
    # of a single projected row (bitwise-equal to projecting the tiled memory).
    qc = mm(x, wqc_ref) + bqc_ref[...]                        # (B*T, H)
    kvf = mm(feats, wkvc_ref) + bkvc_ref[...]                 # (B, 2H)
    ca = []
    for b in range(B):
        r0, r1 = b * T, (b + 1) * T
        kc = jnp.broadcast_to(kvf[b:b + 1, 0:H], (MEM_LEN, H))
        vc = jnp.broadcast_to(kvf[b:b + 1, H:2 * H], (MEM_LEN, H))
        ca.append(attend(qc[r0:r1, :], kc, vc))
    ca = jnp.concatenate(ca, axis=0)
    x = layer_norm(x + mm(ca, woc_ref) + boc_ref[...], 1)

    # --- feed-forward block (relu activation) ---
    hdn = jnp.maximum(mm(x, w1_ref) + b1_ref[...], 0.0)
    x = layer_norm(x + mm(hdn, w2_ref) + b2_ref[...], 2)

    # --- fused heads, padded to 128 output lanes for unmasked stores ---
    o_ref[...] = mm(x, wh_ref) + bh_ref[...]


def conv4_gap_heads_kernel(p4_ref, w4_ref, b4_ref, wh_ref, bh_ref, o_ref):
    # target_symbols is None path: heads applied to the (identical) memory rows
    # == heads applied to the per-batch features.
    B = p4_ref.shape[0] // 4
    feats = _conv4_gap(p4_ref, w4_ref, b4_ref, B)             # (B, H)
    o_ref[...] = (jnp.dot(feats.astype(jnp.bfloat16), wh_ref[...],
                          preferred_element_type=jnp.float32) + bh_ref[...])


# ------------------------------ wrapper helpers ------------------------------
def _pooled_patches(x):
    """(B,H,W,C) NHWC -> (4*B*(H//2)*(W//2), 9*C) im2col rows, grouped by the
    2x2 pooling quadrant (each group ordered (b, i, j))."""
    B, H, W, C = x.shape
    xp = jnp.pad(x, ((0, 0), (1, 1), (1, 1), (0, 0)))
    cols = [xp[:, kh:kh + H, kw:kw + W, :] for kh in range(3) for kw in range(3)]
    pat = jnp.concatenate(cols, axis=-1)                      # (B, H, W, 9C)
    r4 = B * (H // 2) * (W // 2)
    quads = [pat[:, 0::2, 0::2, :], pat[:, 0::2, 1::2, :],
             pat[:, 1::2, 0::2, :], pat[:, 1::2, 1::2, :]]
    return jnp.concatenate([q.reshape(r4, 9 * C) for q in quads], axis=0)


def _patches(x):
    """Natural-order im2col: (B,H,W,C) -> (B*H*W, 9*C)."""
    B, H, W, C = x.shape
    xp = jnp.pad(x, ((0, 0), (1, 1), (1, 1), (0, 0)))
    cols = [xp[:, kh:kh + H, kw:kw + W, :] for kh in range(3) for kw in range(3)]
    return jnp.concatenate(cols, axis=-1).reshape(B * H * W, 9 * C)


def conv_pool(x, w, b):
    """Fused 3x3 conv (padding=1) + ReLU + 2x2 maxpool, whole batch, no grid."""
    B, H, W, _ = x.shape
    Cout = w.shape[1]
    r4 = B * (H // 2) * (W // 2)
    out = pl.pallas_call(
        conv_pool_kernel,
        out_shape=jax.ShapeDtypeStruct((r4, Cout), jnp.float32),
        compiler_params=_CP,
    )(_pooled_patches(x), w, b)
    return out.reshape(B, H // 2, W // 2, Cout)


def run_decoder_heads(p, patches4, emb_flat):
    rows = emb_flat.shape[0]
    return pl.pallas_call(
        decoder_heads_kernel,
        out_shape=jax.ShapeDtypeStruct((rows, HEAD_OUT), jnp.float32),
        compiler_params=_CP,
    )(patches4, p['w_conv4'], p['b_conv4'], emb_flat,
      p['wqkv_self'], p['bqkv_self'], p['wo_self'], p['bo_self'],
      p['wq_cross'], p['bq_cross'], p['wkv_cross'], p['bkv_cross'],
      p['wo_cross'], p['bo_cross'],
      p['ln_gamma'], p['ln_beta'],
      p['w_ff1'], p['b_ff1'], p['w_ff2'], p['b_ff2'],
      p['w_head'], p['b_head'])


# ------------------------------ forward (wrapper) ----------------------------
def forward(params, images, target_symbols=None):
    """images: (B, 3, H, W) NCHW float32; target_symbols: (B, T) int32 or None."""
    B = images.shape[0]
    x = jnp.transpose(images, (0, 2, 3, 1)).astype(jnp.float32)     # NHWC

    # CNN stack: 3 x (conv3x3 + relu + maxpool2), then conv4+relu+GAP is fused
    # into the decoder/heads kernel below.
    x = conv_pool(x, params['w_conv1'], params['b_conv1'])          # (B, 8, 8, 16)
    x = conv_pool(x, params['w_conv2'], params['b_conv2'])          # (B, 4, 4, 32)
    x = conv_pool(x, params['w_conv3'], params['b_conv3'])          # (B, 2, 2, 64)
    patches4 = _patches(x)                                          # (B*4, 576)

    if target_symbols is None:
        head = pl.pallas_call(
            conv4_gap_heads_kernel,
            out_shape=jax.ShapeDtypeStruct((B, HEAD_OUT), jnp.float32),
            compiler_params=_CP,
        )(patches4, params['w_conv4'], params['b_conv4'],
          params['w_head'], params['b_head'])
        # decoder_output == memory, whose MEM_LEN rows are identical copies of
        # the features, so the head output is broadcast over that axis (exact).
        head = jnp.broadcast_to(head[:, None, :], (B, MEM_LEN, HEAD_OUT))
    else:
        T = target_symbols.shape[1]
        emb = jnp.take(params['embedding'], target_symbols, axis=0)  # (B, T, H)
        head = run_decoder_heads(params, patches4,
                                 emb.reshape(B * T, HIDDEN)).reshape(B, T, HEAD_OUT)

    return {'symbol_logits': head[..., :VOCAB],
            'position_preds': head[..., VOCAB:VOCAB + 4]}


# ------------------------------ parameter init -------------------------------
def init_params(key):
    keys = jax.random.split(key, 24)

    def wmat(k, shape, scale=0.05):
        return (scale * jax.random.normal(k, shape, dtype=jnp.float32)
                ).astype(jnp.bfloat16)

    def bvec(k, shape, scale=0.05):
        return (scale * jax.random.normal(k, shape, dtype=jnp.float32))

    p = {}
    # conv weights as im2col matrices, rows ordered (kh, kw, cin); bf16.
    p['w_conv1'] = wmat(keys[0], (9 * 3, 16));       p['b_conv1'] = bvec(keys[1], (1, 16))
    p['w_conv2'] = wmat(keys[2], (9 * 16, 32));      p['b_conv2'] = bvec(keys[3], (1, 32))
    p['w_conv3'] = wmat(keys[4], (9 * 32, 64));      p['b_conv3'] = bvec(keys[5], (1, 64))
    p['w_conv4'] = wmat(keys[6], (9 * 64, HIDDEN));  p['b_conv4'] = bvec(keys[7], (1, HIDDEN))

    p['embedding'] = 0.02 * jax.random.normal(keys[8], (VOCAB, HIDDEN), dtype=jnp.float32)

    # decoder layer: self-attn (fused qkv), cross-attn (q from tgt, kv from memory)
    p['wqkv_self'] = wmat(keys[9], (HIDDEN, 3 * HIDDEN));  p['bqkv_self'] = bvec(keys[10], (1, 3 * HIDDEN))
    p['wo_self'] = wmat(keys[11], (HIDDEN, HIDDEN));       p['bo_self'] = bvec(keys[12], (1, HIDDEN))
    p['wq_cross'] = wmat(keys[13], (HIDDEN, HIDDEN));      p['bq_cross'] = bvec(keys[14], (1, HIDDEN))
    p['wkv_cross'] = wmat(keys[15], (HIDDEN, 2 * HIDDEN)); p['bkv_cross'] = bvec(keys[16], (1, 2 * HIDDEN))
    p['wo_cross'] = wmat(keys[17], (HIDDEN, HIDDEN));      p['bo_cross'] = bvec(keys[18], (1, HIDDEN))

    p['ln_gamma'] = jnp.ones((3, HIDDEN), jnp.float32)     # norm1/norm2/norm3 weight
    p['ln_beta'] = jnp.zeros((3, HIDDEN), jnp.float32)     # norm1/norm2/norm3 bias

    p['w_ff1'] = wmat(keys[19], (HIDDEN, FF));  p['b_ff1'] = bvec(keys[20], (1, FF))
    p['w_ff2'] = wmat(keys[21], (FF, HIDDEN));  p['b_ff2'] = bvec(keys[22], (1, HIDDEN))

    # fused heads, padded to 128 lanes: [:VOCAB]=symbol_classifier, [VOCAB:VOCAB+4]=position_regressor
    wh = 0.05 * jax.random.normal(keys[23], (HIDDEN, VOCAB + 4), dtype=jnp.float32)
    p['w_head'] = jnp.pad(wh, ((0, 0), (0, HEAD_OUT - (VOCAB + 4)))).astype(jnp.bfloat16)
    p['b_head'] = jnp.zeros((1, HEAD_OUT), jnp.float32)
    return p


# ------------------------------------ main -----------------------------------
if __name__ == "__main__":
    root = jax.random.PRNGKey(0)
    k_param, k_img, k_sym = jax.random.split(root, 3)

    params = init_params(k_param)
    images = jax.random.normal(k_img, (2, 3, 16, 16), dtype=jnp.float32)   # NCHW like PyTorch
    target_symbols = jax.random.randint(k_sym, (2, 8), 0, VOCAB, dtype=jnp.int32)

    out = jax.jit(forward)(params, images, target_symbols)
    jax.block_until_ready(out)

    assert out['symbol_logits'].shape == (2, 8, VOCAB)
    assert out['position_preds'].shape == (2, 8, 4)
    assert bool(jnp.all(jnp.isfinite(out['symbol_logits'])))
    assert bool(jnp.all(jnp.isfinite(out['position_preds'])))
    print("KERNEL_OK")
</pallas_src>

<mosaic_0001>
module attributes {stable_mosaic.version = 11 : i64} {
  func.func @conv_pool_kernel(%arg0: memref<512x27xf32, #tpu.memory_space<vmem>>, %arg1: memref<27x16xbf16, #tpu.memory_space<vmem>>, %arg2: memref<1x16xf32, #tpu.memory_space<vmem>>, %arg3: memref<128x16xf32, #tpu.memory_space<vmem>>) attributes {dimension_semantics = [], scalar_prefetch = 0 : i64, scratch_operands = 0 : i64, tpu.core_type = #tpu.core_type<tc>} {
    %c0 = arith.constant 0 : index
    %c0_0 = arith.constant 0 : index
    %0 = vector.load %arg0[%c0, %c0_0] : memref<512x27xf32, #tpu.memory_space<vmem>>, vector<512x27xf32>
    %1 = arith.truncf %0 : vector<512x27xf32> to vector<512x27xbf16>
    %c0_1 = arith.constant 0 : index
    %c0_2 = arith.constant 0 : index
    %2 = vector.load %arg1[%c0_1, %c0_2] : memref<27x16xbf16, #tpu.memory_space<vmem>>, vector<27x16xbf16>
    %cst = arith.constant dense<0.000000e+00> : vector<512x16xf32>
    %3 = tpu.matmul %1, %2, %cst {dimension_numbers = #tpu.dot_dimension_numbers<[1], [0], [0], [1], [0, 0, 1, 1], [], []>} : vector<512x27xbf16>, vector<27x16xbf16>, vector<512x16xf32> -> vector<512x16xf32>
    %c0_3 = arith.constant 0 : index
    %c0_4 = arith.constant 0 : index
    %4 = vector.load %arg2[%c0_3, %c0_4] : memref<1x16xf32, #tpu.memory_space<vmem>>, vector<1x16xf32>
    %5 = vector.broadcast %4 : vector<1x16xf32> to vector<512x16xf32>
    %6 = arith.addf %3, %5 : vector<512x16xf32>
    %cst_5 = arith.constant 0.000000e+00 : f32
    %7 = vector.broadcast %cst_5 : f32 to vector<512x16xf32>
    %8 = arith.maximumf %6, %7 : vector<512x16xf32>
    %9 = vector.extract_strided_slice %8 {offsets = [0, 0], sizes = [128, 16], strides = [1, 1]} : vector<512x16xf32> to vector<128x16xf32>
    %10 = vector.extract_strided_slice %8 {offsets = [128, 0], sizes = [128, 16], strides = [1, 1]} : vector<512x16xf32> to vector<128x16xf32>
    %11 = arith.maximumf %9, %10 : vector<128x16xf32>
    %12 = vector.extract_strided_slice %8 {offsets = [256, 0], sizes = [128, 16], strides = [1, 1]} : vector<512x16xf32> to vector<128x16xf32>
    %13 = vector.extract_strided_slice %8 {offsets = [384, 0], sizes = [128, 16], strides = [1, 1]} : vector<512x16xf32> to vector<128x16xf32>
    %14 = arith.maximumf %12, %13 : vector<128x16xf32>
    %15 = arith.maximumf %11, %14 : vector<128x16xf32>
    %c0_6 = arith.constant 0 : index
    %c0_7 = arith.constant 0 : index
    %16 = vector.load %arg3[%c0_6, %c0_7] : memref<128x16xf32, #tpu.memory_space<vmem>>, vector<128x16xf32>
    tpu.vector_store %arg3[%c0_6, %c0_7], %15 {strides = array<i32>} : memref<128x16xf32, #tpu.memory_space<vmem>>, vector<128x16xf32>,
    return
  }
}

module attributes {stable_mosaic.version = 11 : i64} {
  func.func @conv_pool_kernel(%arg0: memref<128x144xf32, #tpu.memory_space<vmem>>, %arg1: memref<144x32xbf16, #tpu.memory_space<vmem>>, %arg2: memref<1x32xf32, #tpu.memory_space<vmem>>, %arg3: memref<32x32xf32, #tpu.memory_space<vmem>>) attributes {dimension_semantics = [], scalar_prefetch = 0 : i64, scratch_operands = 0 : i64, tpu.core_type = #tpu.core_type<tc>} {
    %c0 = arith.constant 0 : index
    %c0_0 = arith.constant 0 : index
    %0 = vector.load %arg0[%c0, %c0_0] : memref<128x144xf32, #tpu.memory_space<vmem>>, vector<128x144xf32>
    %1 = arith.truncf %0 : vector<128x144xf32> to vector<128x144xbf16>
    %c0_1 = arith.constant 0 : index
    %c0_2 = arith.constant 0 : index
    %2 = vector.load %arg1[%c0_1, %c0_2] : memref<144x32xbf16, #tpu.memory_space<vmem>>, vector<144x32xbf16>
    %cst = arith.constant dense<0.000000e+00> : vector<128x32xf32>
    %3 = tpu.matmul %1, %2, %cst {dimension_numbers = #tpu.dot_dimension_numbers<[1], [0], [0], [1], [0, 0, 1, 1], [], []>} : vector<128x144xbf16>, vector<144x32xbf16>, vector<128x32xf32> -> vector<128x32xf32>
    %c0_3 = arith.constant 0 : index
    %c0_4 = arith.constant 0 : index
    %4 = vector.load %arg2[%c0_3, %c0_4] : memref<1x32xf32, #tpu.memory_space<vmem>>, vector<1x32xf32>
    %5 = vector.broadcast %4 : vector<1x32xf32> to vector<128x32xf32>
    %6 = arith.addf %3, %5 : vector<128x32xf32>
    %cst_5 = arith.constant 0.000000e+00 : f32
    %7 = vector.broadcast %cst_5 : f32 to vector<128x32xf32>
    %8 = arith.maximumf %6, %7 : vector<128x32xf32>
    %9 = vector.extract_strided_slice %8 {offsets = [0, 0], sizes = [32, 32], strides = [1, 1]} : vector<128x32xf32> to vector<32x32xf32>
    %10 = vector.extract_strided_slice %8 {offsets = [32, 0], sizes = [32, 32], strides = [1, 1]} : vector<128x32xf32> to vector<32x32xf32>
    %11 = arith.maximumf %9, %10 : vector<32x32xf32>
    %12 = vector.extract_strided_slice %8 {offsets = [64, 0], sizes = [32, 32], strides = [1, 1]} : vector<128x32xf32> to vector<32x32xf32>
    %13 = vector.extract_strided_slice %8 {offsets = [96, 0], sizes = [32, 32], strides = [1, 1]} : vector<128x32xf32> to vector<32x32xf32>
    %14 = arith.maximumf %12, %13 : vector<32x32xf32>
    %15 = arith.maximumf %11, %14 : vector<32x32xf32>
    %c0_6 = arith.constant 0 : index
    %c0_7 = arith.constant 0 : index
    %16 = vector.load %arg3[%c0_6, %c0_7] : memref<32x32xf32, #tpu.memory_space<vmem>>, vector<32x32xf32>
    tpu.vector_store %arg3[%c0_6, %c0_7], %15 {strides = array<i32>} : memref<32x32xf32, #tpu.memory_space<vmem>>, vector<32x32xf32>,
    return
  }
}

module attributes {stable_mosaic.version = 11 : i64} {
  func.func @conv_pool_kernel(%arg0: memref<32x288xf32, #tpu.memory_space<vmem>>, %arg1: memref<288x64xbf16, #tpu.memory_space<vmem>>, %arg2: memref<1x64xf32, #tpu.memory_space<vmem>>, %arg3: memref<8x64xf32, #tpu.memory_space<vmem>>) attributes {dimension_semantics = [], scalar_prefetch = 0 : i64, scratch_operands = 0 : i64, tpu.core_type = #tpu.core_type<tc>} {
    %c0 = arith.constant 0 : index
    %c0_0 = arith.constant 0 : index
    %0 = vector.load %arg0[%c0, %c0_0] : memref<32x288xf32, #tpu.memory_space<vmem>>, vector<32x288xf32>
    %1 = arith.truncf %0 : vector<32x288xf32> to vector<32x288xbf16>
    %c0_1 = arith.constant 0 : index
    %c0_2 = arith.constant 0 : index
    %2 = vector.load %arg1[%c0_1, %c0_2] : memref<288x64xbf16, #tpu.memory_space<vmem>>, vector<288x64xbf16>
    %cst = arith.constant dense<0.000000e+00> : vector<32x64xf32>
    %3 = tpu.matmul %1, %2, %cst {dimension_numbers = #tpu.dot_dimension_numbers<[1], [0], [0], [1], [0, 0, 1, 1], [], []>} : vector<32x288xbf16>, vector<288x64xbf16>, vector<32x64xf32> -> vector<32x64xf32>
    %c0_3 = arith.constant 0 : index
    %c0_4 = arith.constant 0 : index
    %4 = vector.load %arg2[%c0_3, %c0_4] : memref<1x64xf32, #tpu.memory_space<vmem>>, vector<1x64xf32>
    %5 = vector.broadcast %4 : vector<1x64xf32> to vector<32x64xf32>
    %6 = arith.addf %3, %5 : vector<32x64xf32>
    %cst_5 = arith.constant 0.000000e+00 : f32
    %7 = vector.broadcast %cst_5 : f32 to vector<32x64xf32>
    %8 = arith.maximumf %6, %7 : vector<32x64xf32>
    %9 = vector.extract_strided_slice %8 {offsets = [0, 0], sizes = [8, 64], strides = [1, 1]} : vector<32x64xf32> to vector<8x64xf32>
    %10 = vector.extract_strided_slice %8 {offsets = [8, 0], sizes = [8, 64], strides = [1, 1]} : vector<32x64xf32> to vector<8x64xf32>
    %11 = arith.maximumf %9, %10 : vector<8x64xf32>
    %12 = vector.extract_strided_slice %8 {offsets = [16, 0], sizes = [8, 64], strides = [1, 1]} : vector<32x64xf32> to vector<8x64xf32>
    %13 = vector.extract_strided_slice %8 {offsets = [24, 0], sizes = [8, 64], strides = [1, 1]} : vector<32x64xf32> to vector<8x64xf32>
    %14 = arith.maximumf %12, %13 : vector<8x64xf32>
    %15 = arith.maximumf %11, %14 : vector<8x64xf32>
    %c0_6 = arith.constant 0 : index
    %c0_7 = arith.constant 0 : index
    %16 = vector.load %arg3[%c0_6, %c0_7] : memref<8x64xf32, #tpu.memory_space<vmem>>, vector<8x64xf32>
    tpu.vector_store %arg3[%c0_6, %c0_7], %15 {strides = array<i32>} : memref<8x64xf32, #tpu.memory_space<vmem>>, vector<8x64xf32>,
    return
  }
}

module attributes {stable_mosaic.version = 11 : i64} {
  func.func @decoder_heads_kernel(%arg0: memref<8x576xf32, #tpu.memory_space<vmem>>, %arg1: memref<576x128xbf16, #tpu.memory_space<vmem>>, %arg2: memref<1x128xf32, #tpu.memory_space<vmem>>, %arg3: memref<16x128xf32, #tpu.memory_space<vmem>>, %arg4: memref<128x384xbf16, #tpu.memory_space<vmem>>, %arg5: memref<1x384xf32, #tpu.memory_space<vmem>>, %arg6: memref<128x128xbf16, #tpu.memory_space<vmem>>, %arg7: memref<1x128xf32, #tpu.memory_space<vmem>>, %arg8: memref<128x128xbf16, #tpu.memory_space<vmem>>, %arg9: memref<1x128xf32, #tpu.memory_space<vmem>>, %arg10: memref<128x256xbf16, #tpu.memory_space<vmem>>, %arg11: memref<1x256xf32, #tpu.memory_space<vmem>>, %arg12: memref<128x128xbf16, #tpu.memory_space<vmem>>, %arg13: memref<1x128xf32, #tpu.memory_space<vmem>>, %arg14: memref<3x128xf32, #tpu.memory_space<vmem>>, %arg15: memref<3x128xf32, #tpu.memory_space<vmem>>, %arg16: memref<128x512xbf16, #tpu.memory_space<vmem>>, %arg17: memref<1x512xf32, #tpu.memory_space<vmem>>, %arg18: memref<512x128xbf16, #tpu.memory_space<vmem>>, %arg19: memref<1x128xf32, #tpu.memory_space<vmem>>, %arg20: memref<128x128xbf16, #tpu.memory_space<vmem>>, %arg21: memref<1x128xf32, #tpu.memory_space<vmem>>, %arg22: memref<16x128xf32, #tpu.memory_space<vmem>>) attributes {dimension_semantics = [], scalar_prefetch = 0 : i64, scratch_operands = 0 : i64, tpu.core_type = #tpu.core_type<tc>} {
    %c0 = arith.constant 0 : index
    %c0_0 = arith.constant 0 : index
    %0 = vector.load %arg0[%c0, %c0_0] : memref<8x576xf32, #tpu.memory_space<vmem>>, vector<8x576xf32>
    %1 = arith.truncf %0 : vector<8x576xf32> to vector<8x576xbf16>
    %c0_1 = arith.constant 0 : index
    %c0_2 = arith.constant 0 : index
    %2 = vector.load %arg1[%c0_1, %c0_2] : memref<576x128xbf16, #tpu.memory_space<vmem>>, vector<576x128xbf16>
    %cst = arith.constant dense<0.000000e+00> : vector<8x128xf32>
    %3 = tpu.matmul %1, %2, %cst {dimension_numbers = #tpu.dot_dimension_numbers<[1], [0], [0], [1], [0, 0, 1, 1], [], []>} : vector<8x576xbf16>, vector<576x128xbf16>, vector<8x128xf32> -> vector<8x128xf32>
    %c0_3 = arith.constant 0 : index
    %c0_4 = arith.constant 0 : index
    %4 = vector.load %arg2[%c0_3, %c0_4] : memref<1x128xf32, #tpu.memory_space<vmem>>, vector<1x128xf32>
    %5 = vector.broadcast %4 : vector<1x128xf32> to vector<8x128xf32>
    %6 = arith.addf %3, %5 : vector<8x128xf32>
    %cst_5 = arith.constant 0.000000e+00 : f32
    %7 = vector.broadcast %cst_5 : f32 to vector<8x128xf32>
    %8 = arith.maximumf %6, %7 : vector<8x128xf32>
    %9 = vector.extract_strided_slice %8 {offsets = [0, 0], sizes = [4, 128], strides = [1, 1]} : vector<8x128xf32> to vector<4x128xf32>
    %cst_6 = arith.constant dense<0.000000e+00> : vector<128xf32>
    %10 = vector.multi_reduction <add>, %9, %cst_6 [0] : vector<4x128xf32> to vector<128xf32>
    %11 = vector.shape_cast %10 : vector<128xf32> to vector<1x128xf32>
    %cst_7 = arith.constant 4.000000e+00 : f32
    %12 = vector.broadcast %cst_7 : f32 to vector<1x128xf32>
    %13 = arith.divf %11, %12 : vector<1x128xf32>
    %14 = vector.extract_strided_slice %8 {offsets = [4, 0], sizes = [4, 128], strides = [1, 1]} : vector<8x128xf32> to vector<4x128xf32>
    %cst_8 = arith.constant dense<0.000000e+00> : vector<128xf32>
    %15 = vector.multi_reduction <add>, %14, %cst_8 [0] : vector<4x128xf32> to vector<128xf32>
    %16 = vector.shape_cast %15 : vector<128xf32> to vector<1x128xf32>
    %cst_9 = arith.constant 4.000000e+00 : f32
    %17 = vector.broadcast %cst_9 : f32 to vector<1x128xf32>
    %18 = arith.divf %16, %17 : vector<1x128xf32>
    %19 = tpu.concatenate %13, %18 in 0 : vector<1x128xf32>, vector<1x128xf32> -> vector<2x128xf32>
    %c0_10 = arith.constant 0 : index
    %c0_11 = arith.constant 0 : index
    %20 = vector.load %arg3[%c0_10, %c0_11] : memref<16x128xf32, #tpu.memory_space<vmem>>, vector<16x128xf32>
    %21 = arith.truncf %20 : vector<16x128xf32> to vector<16x128xbf16>
    %c0_12 = arith.constant 0 : index
    %c0_13 = arith.constant 0 : index
    %22 = vector.load %arg4[%c0_12, %c0_13] : memref<128x384xbf16, #tpu.memory_space<vmem>>, vector<128x384xbf16>
    %cst_14 = arith.constant dense<0.000000e+00> : vector<16x384xf32>
    %23 = tpu.matmul %21, %22, %cst_14 {dimension_numbers = #tpu.dot_dimension_numbers<[1], [0], [0], [1], [0, 0, 1, 1], [], []>} : vector<16x128xbf16>, vector<128x384xbf16>, vector<16x384xf32> -> vector<16x384xf32>
    %c0_15 = arith.constant 0 : index
    %c0_16 = arith.constant 0 : index
    %24 = vector.load %arg5[%c0_15, %c0_16] : memref<1x384xf32, #tpu.memory_space<vmem>>, vector<1x384xf32>
    %25 = vector.broadcast %24 : vector<1x384xf32> to vector<16x384xf32>
    %26 = arith.addf %23, %25 : vector<16x384xf32>
    %27 = vector.extract_strided_slice %26 {offsets = [0, 0], sizes = [8, 128], strides = [1, 1]} : vector<16x384xf32> to vector<8x128xf32>
    %28 = vector.extract_strided_slice %26 {offsets = [0, 128], sizes = [8, 128], strides = [1, 1]} : vector<16x384xf32> to vector<8x128xf32>
    %29 = vector.extract_strided_slice %26 {offsets = [0, 256], sizes = [8, 128], strides = [1, 1]} : vector<16x384xf32> to vector<8x128xf32>
    %30 = vector.extract_strided_slice %27 {offsets = [0, 0], sizes = [8, 32], strides = [1, 1]} : vector<8x128xf32> to vector<8x32xf32>
    %31 = vector.extract_strided_slice %28 {offsets = [0, 0], sizes = [8, 32], strides = [1, 1]} : vector<8x128xf32> to vector<8x32xf32>
    %32 = vector.extract_strided_slice %29 {offsets = [0, 0], sizes = [8, 32], strides = [1, 1]} : vector<8x128xf32> to vector<8x32xf32>
    %cst_17 = arith.constant dense<0.000000e+00> : vector<8x8xf32>
    %33 = tpu.matmul %30, %31, %cst_17 {dimension_numbers = #tpu.dot_dimension_numbers<[1], [1], [0], [0], [0, 0, 1, 0], [], []>} : vector<8x32xf32>, vector<8x32xf32>, vector<8x8xf32> -> vector<8x8xf32>
    %cst_18 = arith.constant 0.176776692 : f32
    %34 = vector.broadcast %cst_18 : f32 to vector<8x8xf32>
    %35 = arith.mulf %33, %34 : vector<8x8xf32>
    %cst_19 = arith.constant dense<0xFF800000> : vector<8xf32>
    %36 = vector.multi_reduction <maximumf>, %35, %cst_19 [1] : vector<8x8xf32> to vector<8xf32>
    %37 = vector.shape_cast %36 : vector<8xf32> to vector<8x1xf32>
    %38 = vector.broadcast %37 : vector<8x1xf32> to vector<8x8xf32>
    %39 = arith.subf %35, %38 : vector<8x8xf32>
    %40 = math.exp %39 : vector<8x8xf32>
    %cst_20 = arith.constant dense<0.000000e+00> : vector<8xf32>
    %41 = vector.multi_reduction <add>, %40, %cst_20 [1] : vector<8x8xf32> to vector<8xf32>
    %42 = vector.shape_cast %41 : vector<8xf32> to vector<8x1xf32>
    %43 = tpu.reciprocal %42 {approx = true} : vector<8x1xf32> -> vector<8x1xf32>
    %44 = vector.broadcast %43 : vector<8x1xf32> to vector<8x8xf32>
    %45 = arith.mulf %40, %44 : vector<8x8xf32>
    %cst_21 = arith.constant dense<0.000000e+00> : vector<8x32xf32>
    %46 = tpu.matmul %45, %32, %cst_21 {dimension_numbers = #tpu.dot_dimension_numbers<[1], [0], [0], [1], [0, 0, 1, 1], [], []>} : vector<8x8xf32>, vector<8x32xf32>, vector<8x32xf32> -> vector<8x32xf32>
    %47 = vector.extract_strided_slice %27 {offsets = [0, 32], sizes = [8, 32], strides = [1, 1]} : vector<8x128xf32> to vector<8x32xf32>
    %48 = vector.extract_strided_slice %28 {offsets = [0, 32], sizes = [8, 32], strides = [1, 1]} : vector<8x128xf32> to vector<8x32xf32>
    %49 = vector.extract_strided_slice %29 {offsets = [0, 32], sizes = [8, 32], strides = [1, 1]} : vector<8x128xf32> to vector<8x32xf32>
    %cst_22 = arith.constant dense<0.000000e+00> : vector<8x8xf32>
    %50 = tpu.matmul %47, %48, %cst_22 {dimension_numbers = #tpu.dot_dimension_numbers<[1], [1], [0], [0], [0, 0, 1, 0], [], []>} : vector<8x32xf32>, vector<8x32xf32>, vector<8x8xf32> -> vector<8x8xf32>
    %cst_23 = arith.constant 0.176776692 : f32
    %51 = vector.broadcast %cst_23 : f32 to vector<8x8xf32>
    %52 = arith.mulf %50, %51 : vector<8x8xf32>
    %cst_24 = arith.constant dense<0xFF800000> : vector<8xf32>
    %53 = vector.multi_reduction <maximumf>, %52, %cst_24 [1] : vector<8x8xf32> to vector<8xf32>
    %54 = vector.shape_cast %53 : vector<8xf32> to vector<8x1xf32>
    %55 = vector.broadcast %54 : vector<8x1xf32> to vector<8x8xf32>
    %56 = arith.subf %52, %55 : vector<8x8xf32>
    %57 = math.exp %56 : vector<8x8xf32>
    %cst_25 = arith.constant dense<0.000000e+00> : vector<8xf32>
    %58 = vector.multi_reduction <add>, %57, %cst_25 [1] : vector<8x8xf32> to vector<8xf32>
    %59 = vector.shape_cast %58 : vector<8xf32> to vector<8x1xf32>
    %60 = tpu.reciprocal %59 {approx = true} : vector<8x1xf32> -> vector<8x1xf32>
    %61 = vector.broadcast %60 : vector<8x1xf32> to vector<8x8xf32>
    %62 = arith.mulf %57, %61 : vector<8x8xf32>
    %cst_26 = arith.constant dense<0.000000e+00> : vector<8x32xf32>
    %63 = tpu.matmul %62, %49, %cst_26 {dimension_numbers = #tpu.dot_dimension_numbers<[1], [0], [0], [1], [0, 0, 1, 1], [], []>} : vector<8x8xf32>, vector<8x32xf32>, vector<8x32xf32> -> vector<8x32xf32>
    %64 = vector.extract_strided_slice %27 {offsets = [0, 64], sizes = [8, 32], strides = [1, 1]} : vector<8x128xf32> to vector<8x32xf32>
    %65 = vector.extract_strided_slice %28 {offsets = [0, 64], sizes = [8, 32], strides = [1, 1]} : vector<8x128xf32> to vector<8x32xf32>
    %66 = vector.extract_strided_slice %29 {offsets = [0, 64], sizes = [8, 32], strides = [1, 1]} : vector<8x128xf32> to vector<8x32xf32>
    %cst_27 = arith.constant dense<0.000000e+00> : vector<8x8xf32>
    %67 = tpu.matmul %64, %65, %cst_27 {dimension_numbers = #tpu.dot_dimension_numbers<[1], [1], [0], [0], [0, 0, 1, 0], [], []>} : vector<8x32xf32>, vector<8x32xf32>, vector<8x8xf32> -> vector<8x8xf32>
    %cst_28 = arith.constant 0.176776692 : f32
    %68 = vector.broadcast %cst_28 : f32 to vector<8x8xf32>
    %69 = arith.mulf %67, %68 : vector<8x8xf32>
    %cst_29 = arith.constant dense<0xFF800000> : vector<8xf32>
    %70 = vector.multi_reduction <maximumf>, %69, %cst_29 [1] : vector<8x8xf32> to vector<8xf32>
    %71 = vector.shape_cast %70 : vector<8xf32> to vector<8x1xf32>
    %72 = vector.broadcast %71 : vector<8x1xf32> to vector<8x8xf32>
    %73 = arith.subf %69, %72 : vector<8x8xf32>
    %74 = math.exp %73 : vector<8x8xf32>
    %cst_30 = arith.constant dense<0.000000e+00> : vector<8xf32>
    %75 = vector.multi_reduction <add>, %74, %cst_30 [1] : vector<8x8xf32> to vector<8xf32>
    %76 = vector.shape_cast %75 : vector<8xf32> to vector<8x1xf32>
    %77 = tpu.reciprocal %76 {approx = true} : vector<8x1xf32> -> vector<8x1xf32>
    %78 = vector.broadcast %77 : vector<8x1xf32> to vector<8x8xf32>
    %79 = arith.mulf %74, %78 : vector<8x8xf32>
    %cst_31 = arith.constant dense<0.000000e+00> : vector<8x32xf32>
    %80 = tpu.matmul %79, %66, %cst_31 {dimension_numbers = #tpu.dot_dimension_numbers<[1], [0], [0], [1], [0, 0, 1, 1], [], []>} : vector<8x8xf32>, vector<8x32xf32>, vector<8x32xf32> -> vector<8x32xf32>
    %81 = vector.extract_strided_slice %27 {offsets = [0, 96], sizes = [8, 32], strides = [1, 1]} : vector<8x128xf32> to vector<8x32xf32>
    %82 = vector.extract_strided_slice %28 {offsets = [0, 96], sizes = [8, 32], strides = [1, 1]} : vector<8x128xf32> to vector<8x32xf32>
    %83 = vector.extract_strided_slice %29 {offsets = [0, 96], sizes = [8, 32], strides = [1, 1]} : vector<8x128xf32> to vector<8x32xf32>
    %cst_32 = arith.constant dense<0.000000e+00> : vector<8x8xf32>
    %84 = tpu.matmul %81, %82, %cst_32 {dimension_numbers = #tpu.dot_dimension_numbers<[1], [1], [0], [0], [0, 0, 1, 0], [], []>} : vector<8x32xf32>, vector<8x32xf32>, vector<8x8xf32> -> vector<8x8xf32>
    %cst_33 = arith.constant 0.176776692 : f32
    %85 = vector.broadcast %cst_33 : f32 to vector<8x8xf32>
    %86 = arith.mulf %84, %85 : vector<8x8xf32>
    %cst_34 = arith.constant dense<0xFF800000> : vector<8xf32>
    %87 = vector.multi_reduction <maximumf>, %86, %cst_34 [1] : vector<8x8xf32> to vector<8xf32>
    %88 = vector.shape_cast %87 : vector<8xf32> to vector<8x1xf32>
    %89 = vector.broadcast %88 : vector<8x1xf32> to vector<8x8xf32>
    %90 = arith.subf %86, %89 : vector<8x8xf32>
    %91 = math.exp %90 : vector<8x8xf32>
    %cst_35 = arith.constant dense<0.000000e+00> : vector<8xf32>
    %92 = vector.multi_reduction <add>, %91, %cst_35 [1] : vector<8x8xf32> to vector<8xf32>
    %93 = vector.shape_cast %92 : vector<8xf32> to vector<8x1xf32>
    %94 = tpu.reciprocal %93 {approx = true} : vector<8x1xf32> -> vector<8x1xf32>
    %95 = vector.broadcast %94 : vector<8x1xf32> to vector<8x8xf32>
    %96 = arith.mulf %91, %95 : vector<8x8xf32>
    %cst_36 = arith.constant dense<0.000000e+00> : vector<8x32xf32>
    %97 = tpu.matmul %96, %83, %cst_36 {dimension_numbers = #tpu.dot_dimension_numbers<[1], [0], [0], [1], [0, 0, 1, 1], [], []>} : vector<8x8xf32>, vector<8x32xf32>, vector<8x32xf32> -> vector<8x32xf32>
    %98 = tpu.concatenate %46, %63, %80, %97 in 1 : vector<8x32xf32>, vector<8x32xf32>, vector<8x32xf32>, vector<8x32xf32> -> vector<8x128xf32>
    %99 = vector.extract_strided_slice %26 {offsets = [8, 0], sizes = [8, 128], strides = [1, 1]} : vector<16x384xf32> to vector<8x128xf32>
    %100 = vector.extract_strided_slice %26 {offsets = [8, 128], sizes = [8, 128], strides = [1, 1]} : vector<16x384xf32> to vector<8x128xf32>
    %101 = vector.extract_strided_slice %26 {offsets = [8, 256], sizes = [8, 128], strides = [1, 1]} : vector<16x384xf32> to vector<8x128xf32>
    %102 = vector.extract_strided_slice %99 {offsets = [0, 0], sizes = [8, 32], strides = [1, 1]} : vector<8x128xf32> to vector<8x32xf32>
    %103 = vector.extract_strided_slice %100 {offsets = [0, 0], sizes = [8, 32], strides = [1, 1]} : vector<8x128xf32> to vector<8x32xf32>
    %104 = vector.extract_strided_slice %101 {offsets = [0, 0], sizes = [8, 32], strides = [1, 1]} : vector<8x128xf32> to vector<8x32xf32>
    %cst_37 = arith.constant dense<0.000000e+00> : vector<8x8xf32>
    %105 = tpu.matmul %102, %103, %cst_37 {dimension_numbers = #tpu.dot_dimension_numbers<[1], [1], [0], [0], [0, 0, 1, 0], [], []>} : vector<8x32xf32>, vector<8x32xf32>, vector<8x8xf32> -> vector<8x8xf32>
    %cst_38 = arith.constant 0.176776692 : f32
    %106 = vector.broadcast %cst_38 : f32 to vector<8x8xf32>
    %107 = arith.mulf %105, %106 : vector<8x8xf32>
    %cst_39 = arith.constant dense<0xFF800000> : vector<8xf32>
    %108 = vector.multi_reduction <maximumf>, %107, %cst_39 [1] : vector<8x8xf32> to vector<8xf32>
    %109 = vector.shape_cast %108 : vector<8xf32> to vector<8x1xf32>
    %110 = vector.broadcast %109 : vector<8x1xf32> to vector<8x8xf32>
    %111 = arith.subf %107, %110 : vector<8x8xf32>
    %112 = math.exp %111 : vector<8x8xf32>
    %cst_40 = arith.constant dense<0.000000e+00> : vector<8xf32>
    %113 = vector.multi_reduction <add>, %112, %cst_40 [1] : vector<8x8xf32> to vector<8xf32>
    %114 = vector.shape_cast %113 : vector<8xf32> to vector<8x1xf32>
    %115 = tpu.reciprocal %114 {approx = true} : vector<8x1xf32> -> vector<8x1xf32>
    %116 = vector.broadcast %115 : vector<8x1xf32> to vector<8x8xf32>
    %117 = arith.mulf %112, %116 : vector<8x8xf32>
    %cst_41 = arith.constant dense<0.000000e+00> : vector<8x32xf32>
    %118 = tpu.matmul %117, %104, %cst_41 {dimension_numbers = #tpu.dot_dimension_numbers<[1], [0], [0], [1], [0, 0, 1, 1], [], []>} : vector<8x8xf32>, vector<8x32xf32>, vector<8x32xf32> -> vector<8x32xf32>
    %119 = vector.extract_strided_slice %99 {offsets = [0, 32], sizes = [8, 32], strides = [1, 1]} : vector<8x128xf32> to vector<8x32xf32>
    %120 = vector.extract_strided_slice %100 {offsets = [0, 32], sizes = [8, 32], strides = [1, 1]} : vector<8x128xf32> to vector<8x32xf32>
    %121 = vector.extract_strided_slice %101 {offsets = [0, 32], sizes = [8, 32], strides = [1, 1]} : vector<8x128xf32> to vector<8x32xf32>
    %cst_42 = arith.constant dense<0.000000e+00> : vector<8x8xf32>
    %122 = tpu.matmul %119, %120, %cst_42 {dimension_numbers = #tpu.dot_dimension_numbers<[1], [1], [0], [0], [0, 0, 1, 0], [], []>} : vector<8x32xf32>, vector<8x32xf32>, vector<8x8xf32> -> vector<8x8xf32>
    %cst_43 = arith.constant 0.176776692 : f32
    %123 = vector.broadcast %cst_43 : f32 to vector<8x8xf32>
    %124 = arith.mulf %122, %123 : vector<8x8xf32>
    %cst_44 = arith.constant dense<0xFF800000> : vector<8xf32>
    %125 = vector.multi_reduction <maximumf>, %124, %cst_44 [1] : vector<8x8xf32> to vector<8xf32>
    %126 = vector.shape_cast %125 : vector<8xf32> to vector<8x1xf32>
    %127 = vector.broadcast %126 : vector<8x1xf32> to vector<8x8xf32>
    %128 = arith.subf %124, %127 : vector<8x8xf32>
    %129 = math.exp %128 : vector<8x8xf32>
    %cst_45 = arith.constant dense<0.000000e+00> : vector<8xf32>
    %130 = vector.multi_reduction <add>, %129, %cst_45 [1] : vector<8x8xf32> to vector<8xf32>
    %131 = vector.shape_cast %130 : vector<8xf32> to vector<8x1xf32>
    %132 = tpu.reciprocal %131 {approx = true} : vector<8x1xf32> -> vector<8x1xf32>
    %133 = vector.broadcast %132 : vector<8x1xf32> to vector<8x8xf32>
    %134 = arith.mulf %129, %133 : vector<8x8xf32>
    %cst_46 = arith.constant dense<0.000000e+00> : vector<8x32xf32>
    %135 = tpu.matmul %134, %121, %cst_46 {dimension_numbers = #tpu.dot_dimension_numbers<[1], [0], [0], [1], [0, 0, 1, 1], [], []>} : vector<8x8xf32>, vector<8x32xf32>, vector<8x32xf32> -> vector<8x32xf32>
    %136 = vector.extract_strided_slice %99 {offsets = [0, 64], sizes = [8, 32], strides = [1, 1]} : vector<8x128xf32> to vector<8x32xf32>
    %137 = vector.extract_strided_slice %100 {offsets = [0, 64], sizes = [8, 32], strides = [1, 1]} : vector<8x128xf32> to vector<8x32xf32>
    %138 = vector.extract_strided_slice %101 {offsets = [0, 64], sizes = [8, 32], strides = [1, 1]} : vector<8x128xf32> to vector<8x32xf32>
    %cst_47 = arith.constant dense<0.000000e+00> : vector<8x8xf32>
    %139 = tpu.matmul %136, %137, %cst_47 {dimension_numbers = #tpu.dot_dimension_numbers<[1], [1], [0], [0], [0, 0, 1, 0], [], []>} : vector<8x32xf32>, vector<8x32xf32>, vector<8x8xf32> -> vector<8x8xf32>
    %cst_48 = arith.constant 0.176776692 : f32
    %140 = vector.broadcast %cst_48 : f32 to vector<8x8xf32>
    %141 = arith.mulf %139, %140 : vector<8x8xf32>
    %cst_49 = arith.constant dense<0xFF800000> : vector<8xf32>
    %142 = vector.multi_reduction <maximumf>, %141, %cst_49 [1] : vector<8x8xf32> to vector<8xf32>
    %143 = vector.shape_cast %142 : vector<8xf32> to vector<8x1xf32>
    %144 = vector.broadcast %143 : vector<8x1xf32> to vector<8x8xf32>
    %145 = arith.subf %141, %144 : vector<8x8xf32>
    %146 = math.exp %145 : vector<8x8xf32>
    %cst_50 = arith.constant dense<0.000000e+00> : vector<8xf32>
    %147 = vector.multi_reduction <add>, %146, %cst_50 [1] : vector<8x8xf32> to vector<8xf32>
    %148 = vector.shape_cast %147 : vector<8xf32> to vector<8x1xf32>
    %149 = tpu.reciprocal %148 {approx = true} : vector<8x1xf32> -> vector<8x1xf32>
    %150 = vector.broadcast %149 : vector<8x1xf32> to vector<8x8xf32>
    %151 = arith.mulf %146, %150 : vector<8x8xf32>
    %cst_51 = arith.constant dense<0.000000e+00> : vector<8x32xf32>
    %152 = tpu.matmul %151, %138, %cst_51 {dimension_numbers = #tpu.dot_dimension_numbers<[1], [0], [0], [1], [0, 0, 1, 1], [], []>} : vector<8x8xf32>, vector<8x32xf32>, vector<8x32xf32> -> vector<8x32xf32>
    %153 = vector.extract_strided_slice %99 {offsets = [0, 96], sizes = [8, 32], strides = [1, 1]} : vector<8x128xf32> to vector<8x32xf32>
    %154 = vector.extract_strided_slice %100 {offsets = [0, 96], sizes = [8, 32], strides = [1, 1]} : vector<8x128xf32> to vector<8x32xf32>
    %155 = vector.extract_strided_slice %101 {offsets = [0, 96], sizes = [8, 32], strides = [1, 1]} : vector<8x128xf32> to vector<8x32xf32>
    %cst_52 = arith.constant dense<0.000000e+00> : vector<8x8xf32>
    %156 = tpu.matmul %153, %154, %cst_52 {dimension_numbers = #tpu.dot_dimension_numbers<[1], [1], [0], [0], [0, 0, 1, 0], [], []>} : vector<8x32xf32>, vector<8x32xf32>, vector<8x8xf32> -> vector<8x8xf32>
    %cst_53 = arith.constant 0.176776692 : f32
    %157 = vector.broadcast %cst_53 : f32 to vector<8x8xf32>
    %158 = arith.mulf %156, %157 : vector<8x8xf32>
    %cst_54 = arith.constant dense<0xFF800000> : vector<8xf32>
    %159 = vector.multi_reduction <maximumf>, %158, %cst_54 [1] : vector<8x8xf32> to vector<8xf32>
    %160 = vector.shape_cast %159 : vector<8xf32> to vector<8x1xf32>
    %161 = vector.broadcast %160 : vector<8x1xf32> to vector<8x8xf32>
    %162 = arith.subf %158, %161 : vector<8x8xf32>
    %163 = math.exp %162 : vector<8x8xf32>
    %cst_55 = arith.constant dense<0.000000e+00> : vector<8xf32>
    %164 = vector.multi_reduction <add>, %163, %cst_55 [1] : vector<8x8xf32> to vector<8xf32>
    %165 = vector.shape_cast %164 : vector<8xf32> to vector<8x1xf32>
    %166 = tpu.reciprocal %165 {approx = true} : vector<8x1xf32> -> vector<8x1xf32>
    %167 = vector.broadcast %166 : vector<8x1xf32> to vector<8x8xf32>
    %168 = arith.mulf %163, %167 : vector<8x8xf32>
    %cst_56 = arith.constant dense<0.000000e+00> : vector<8x32xf32>
    %169 = tpu.matmul %168, %155, %cst_56 {dimension_numbers = #tpu.dot_dimension_numbers<[1], [0], [0], [1], [0, 0, 1, 1], [], []>} : vector<8x8xf32>, vector<8x32xf32>, vector<8x32xf32> -> vector<8x32xf32>
    %170 = tpu.concatenate %118, %135, %152, %169 in 1 : vector<8x32xf32>, vector<8x32xf32>, vector<8x32xf32>, vector<8x32xf32> -> vector<8x128xf32>
    %171 = tpu.concatenate %98, %170 in 0 : vector<8x128xf32>, vector<8x128xf32> -> vector<16x128xf32>
    %172 = arith.truncf %171 : vector<16x128xf32> to vector<16x128xbf16>
    %c0_57 = arith.constant 0 : index
    %c0_58 = arith.constant 0 : index
    %173 = vector.load %arg6[%c0_57, %c0_58] : memref<128x128xbf16, #tpu.memory_space<vmem>>, vector<128x128xbf16>
    %cst_59 = arith.constant dense<0.000000e+00> : vector<16x128xf32>
    %174 = tpu.matmul %172, %173, %cst_59 {dimension_numbers = #tpu.dot_dimension_numbers<[1], [0], [0], [1], [0, 0, 1, 1], [], []>} : vector<16x128xbf16>, vector<128x128xbf16>, vector<16x128xf32> -> vector<16x128xf32>
    %175 = arith.addf %20, %174 : vector<16x128xf32>
    %c0_60 = arith.constant 0 : index
    %c0_61 = arith.constant 0 : index
    %176 = vector.load %arg7[%c0_60, %c0_61] : memref<1x128xf32, #tpu.memory_space<vmem>>, vector<1x128xf32>
    %177 = vector.broadcast %176 : vector<1x128xf32> to vector<16x128xf32>
    %178 = arith.addf %175, %177 : vector<16x128xf32>
    %c0_62 = arith.constant 0 : index
    %c0_63 = arith.constant 0 : index
    %179 = vector.load %arg14[%c0_62, %c0_63] : memref<3x128xf32, #tpu.memory_space<vmem>>, vector<1x128xf32>
    %c0_64 = arith.constant 0 : index
    %c0_65 = arith.constant 0 : index
    %180 = vector.load %arg15[%c0_64, %c0_65] : memref<3x128xf32, #tpu.memory_space<vmem>>, vector<1x128xf32>
    %cst_66 = arith.constant dense<0.000000e+00> : vector<16xf32>
    %181 = vector.multi_reduction <add>, %178, %cst_66 [1] : vector<16x128xf32> to vector<16xf32>
    %182 = vector.shape_cast %181 : vector<16xf32> to vector<16x1xf32>
    %cst_67 = arith.constant 1.280000e+02 : f32
    %183 = vector.broadcast %cst_67 : f32 to vector<16x1xf32>
    %184 = arith.divf %182, %183 : vector<16x1xf32>
    %185 = vector.broadcast %184 : vector<16x1xf32> to vector<16x128xf32>
    %186 = arith.subf %178, %185 : vector<16x128xf32>
    %187 = arith.mulf %186, %186 : vector<16x128xf32>
    %cst_68 = arith.constant dense<0.000000e+00> : vector<16xf32>
    %188 = vector.multi_reduction <add>, %187, %cst_68 [1] : vector<16x128xf32> to vector<16xf32>
    %189 = vector.shape_cast %188 : vector<16xf32> to vector<16x1xf32>
    %cst_69 = arith.constant 1.280000e+02 : f32
    %190 = vector.broadcast %cst_69 : f32 to vector<16x1xf32>
    %191 = arith.divf %189, %190 : vector<16x1xf32>
    %192 = vector.broadcast %184 : vector<16x1xf32> to vector<16x128xf32>
    %193 = arith.subf %178, %192 : vector<16x128xf32>
    %cst_70 = arith.constant 9.99999974E-6 : f32
    %194 = vector.broadcast %cst_70 : f32 to vector<16x1xf32>
    %195 = arith.addf %191, %194 : vector<16x1xf32>
    %196 = math.rsqrt %195 : vector<16x1xf32>
    %197 = vector.broadcast %196 : vector<16x1xf32> to vector<16x128xf32>
    %198 = arith.mulf %193, %197 : vector<16x128xf32>
    %199 = vector.broadcast %179 : vector<1x128xf32> to vector<16x128xf32>
    %200 = arith.mulf %198, %199 : vector<16x128xf32>
    %201 = vector.broadcast %180 : vector<1x128xf32> to vector<16x128xf32>
    %202 = arith.addf %200, %201 : vector<16x128xf32>
    %203 = arith.truncf %202 : vector<16x128xf32> to vector<16x128xbf16>
    %c0_71 = arith.constant 0 : index
    %c0_72 = arith.constant 0 : index
    %204 = vector.load %arg8[%c0_71, %c0_72] : memref<128x128xbf16, #tpu.memory_space<vmem>>, vector<128x128xbf16>
    %cst_73 = arith.constant dense<0.000000e+00> : vector<16x128xf32>
    %205 = tpu.matmul %203, %204, %cst_73 {dimension_numbers = #tpu.dot_dimension_numbers<[1], [0], [0], [1], [0, 0, 1, 1], [], []>} : vector<16x128xbf16>, vector<128x128xbf16>, vector<16x128xf32> -> vector<16x128xf32>
    %c0_74 = arith.constant 0 : index
    %c0_75 = arith.constant 0 : index
    %206 = vector.load %arg9[%c0_74, %c0_75] : memref<1x128xf32, #tpu.memory_space<vmem>>, vector<1x128xf32>
    %207 = vector.broadcast %206 : vector<1x128xf32> to vector<16x128xf32>
    %208 = arith.addf %205, %207 : vector<16x128xf32>
    %209 = arith.truncf %19 : vector<2x128xf32> to vector<2x128xbf16>
    %c0_76 = arith.constant 0 : index
    %c0_77 = arith.constant 0 : index
    %210 = vector.load %arg10[%c0_76, %c0_77] : memref<128x256xbf16, #tpu.memory_space<vmem>>, vector<128x256xbf16>
    %cst_78 = arith.constant dense<0.000000e+00> : vector<2x256xf32>
    %211 = tpu.matmul %209, %210, %cst_78 {dimension_numbers = #tpu.dot_dimension_numbers<[1], [0], [0], [1], [0, 0, 1, 1], [], []>} : vector<2x128xbf16>, vector<128x256xbf16>, vector<2x256xf32> -> vector<2x256xf32>
    %c0_79 = arith.constant 0 : index
    %c0_80 = arith.constant 0 : index
    %212 = vector.load %arg11[%c0_79, %c0_80] : memref<1x256xf32, #tpu.memory_space<vmem>>, vector<1x256xf32>
    %213 = vector.broadcast %212 : vector<1x256xf32> to vector<2x256xf32>
    %214 = arith.addf %211, %213 : vector<2x256xf32>
    %215 = vector.extract_strided_slice %214 {offsets = [0, 0], sizes = [1, 128], strides = [1, 1]} : vector<2x256xf32> to vector<1x128xf32>
    %216 = vector.shape_cast %215 : vector<1x128xf32> to vector<1x128xf32>
    %217 = vector.broadcast %216 : vector<1x128xf32> to vector<10x128xf32>
    %218 = vector.extract_strided_slice %214 {offsets = [0, 128], sizes = [1, 128], strides = [1, 1]} : vector<2x256xf32> to vector<1x128xf32>
    %219 = vector.shape_cast %218 : vector<1x128xf32> to vector<1x128xf32>
    %220 = vector.broadcast %219 : vector<1x128xf32> to vector<10x128xf32>
    %221 = vector.extract_strided_slice %208 {offsets = [0, 0], sizes = [8, 128], strides = [1, 1]} : vector<16x128xf32> to vector<8x128xf32>
    %222 = vector.extract_strided_slice %221 {offsets = [0, 0], sizes = [8, 32], strides = [1, 1]} : vector<8x128xf32> to vector<8x32xf32>
    %223 = vector.extract_strided_slice %217 {offsets = [0, 0], sizes = [10, 32], strides = [1, 1]} : vector<10x128xf32> to vector<10x32xf32>
    %224 = vector.extract_strided_slice %220 {offsets = [0, 0], sizes = [10, 32], strides = [1, 1]} : vector<10x128xf32> to vector<10x32xf32>
    %cst_81 = arith.constant dense<0.000000e+00> : vector<8x10xf32>
    %225 = tpu.matmul %222, %223, %cst_81 {dimension_numbers = #tpu.dot_dimension_numbers<[1], [1], [0], [0], [0, 0, 1, 0], [], []>} : vector<8x32xf32>, vector<10x32xf32>, vector<8x10xf32> -> vector<8x10xf32>
    %cst_82 = arith.constant 0.176776692 : f32
    %226 = vector.broadcast %cst_82 : f32 to vector<8x10xf32>
    %227 = arith.mulf %225, %226 : vector<8x10xf32>
    %cst_83 = arith.constant dense<0xFF800000> : vector<8xf32>
    %228 = vector.multi_reduction <maximumf>, %227, %cst_83 [1] : vector<8x10xf32> to vector<8xf32>
    %229 = vector.shape_cast %228 : vector<8xf32> to vector<8x1xf32>
    %230 = vector.broadcast %229 : vector<8x1xf32> to vector<8x10xf32>
    %231 = arith.subf %227, %230 : vector<8x10xf32>
    %232 = math.exp %231 : vector<8x10xf32>
    %cst_84 = arith.constant dense<0.000000e+00> : vector<8xf32>
    %233 = vector.multi_reduction <add>, %232, %cst_84 [1] : vector<8x10xf32> to vector<8xf32>
    %234 = vector.shape_cast %233 : vector<8xf32> to vector<8x1xf32>
    %235 = tpu.reciprocal %234 {approx = true} : vector<8x1xf32> -> vector<8x1xf32>
    %236 = vector.broadcast %235 : vector<8x1xf32> to vector<8x10xf32>
    %237 = arith.mulf %232, %236 : vector<8x10xf32>
    %cst_85 = arith.constant dense<0.000000e+00> : vector<8x32xf32>
    %238 = tpu.matmul %237, %224, %cst_85 {dimension_numbers = #tpu.dot_dimension_numbers<[1], [0], [0], [1], [0, 0, 1, 1], [], []>} : vector<8x10xf32>, vector<10x32xf32>, vector<8x32xf32> -> vector<8x32xf32>
    %239 = vector.extract_strided_slice %221 {offsets = [0, 32], sizes = [8, 32], strides = [1, 1]} : vector<8x128xf32> to vector<8x32xf32>
    %240 = vector.extract_strided_slice %217 {offsets = [0, 32], sizes = [10, 32], strides = [1, 1]} : vector<10x128xf32> to vector<10x32xf32>
    %241 = vector.extract_strided_slice %220 {offsets = [0, 32], sizes = [10, 32], strides = [1, 1]} : vector<10x128xf32> to vector<10x32xf32>
    %cst_86 = arith.constant dense<0.000000e+00> : vector<8x10xf32>
    %242 = tpu.matmul %239, %240, %cst_86 {dimension_numbers = #tpu.dot_dimension_numbers<[1], [1], [0], [0], [0, 0, 1, 0], [], []>} : vector<8x32xf32>, vector<10x32xf32>, vector<8x10xf32> -> vector<8x10xf32>
    %cst_87 = arith.constant 0.176776692 : f32
    %243 = vector.broadcast %cst_87 : f32 to vector<8x10xf32>
    %244 = arith.mulf %242, %243 : vector<8x10xf32>
    %cst_88 = arith.constant dense<0xFF800000> : vector<8xf32>
    %245 = vector.multi_reduction <maximumf>, %244, %cst_88 [1] : vector<8x10xf32> to vector<8xf32>
    %246 = vector.shape_cast %245 : vector<8xf32> to vector<8x1xf32>
    %247 = vector.broadcast %246 : vector<8x1xf32> to vector<8x10xf32>
    %248 = arith.subf %244, %247 : vector<8x10xf32>
    %249 = math.exp %248 : vector<8x10xf32>
    %cst_89 = arith.constant dense<0.000000e+00> : vector<8xf32>
    %250 = vector.multi_reduction <add>, %249, %cst_89 [1] : vector<8x10xf32> to vector<8xf32>
    %251 = vector.shape_cast %250 : vector<8xf32> to vector<8x1xf32>
    %252 = tpu.reciprocal %251 {approx = true} : vector<8x1xf32> -> vector<8x1xf32>
    %253 = vector.broadcast %252 : vector<8x1xf32> to vector<8x10xf32>
    %254 = arith.mulf %249, %253 : vector<8x10xf32>
    %cst_90 = arith.constant dense<0.000000e+00> : vector<8x32xf32>
    %255 = tpu.matmul %254, %241, %cst_90 {dimension_numbers = #tpu.dot_dimension_numbers<[1], [0], [0], [1], [0, 0, 1, 1], [], []>} : vector<8x10xf32>, vector<10x32xf32>, vector<8x32xf32> -> vector<8x32xf32>
    %256 = vector.extract_strided_slice %221 {offsets = [0, 64], sizes = [8, 32], strides = [1, 1]} : vector<8x128xf32> to vector<8x32xf32>
    %257 = vector.extract_strided_slice %217 {offsets = [0, 64], sizes = [10, 32], strides = [1, 1]} : vector<10x128xf32> to vector<10x32xf32>
    %258 = vector.extract_strided_slice %220 {offsets = [0, 64], sizes = [10, 32], strides = [1, 1]} : vector<10x128xf32> to vector<10x32xf32>
    %cst_91 = arith.constant dense<0.000000e+00> : vector<8x10xf32>
    %259 = tpu.matmul %256, %257, %cst_91 {dimension_numbers = #tpu.dot_dimension_numbers<[1], [1], [0], [0], [0, 0, 1, 0], [], []>} : vector<8x32xf32>, vector<10x32xf32>, vector<8x10xf32> -> vector<8x10xf32>
    %cst_92 = arith.constant 0.176776692 : f32
    %260 = vector.broadcast %cst_92 : f32 to vector<8x10xf32>
    %261 = arith.mulf %259, %260 : vector<8x10xf32>
    %cst_93 = arith.constant dense<0xFF800000> : vector<8xf32>
    %262 = vector.multi_reduction <maximumf>, %261, %cst_93 [1] : vector<8x10xf32> to vector<8xf32>
    %263 = vector.shape_cast %262 : vector<8xf32> to vector<8x1xf32>
    %264 = vector.broadcast %263 : vector<8x1xf32> to vector<8x10xf32>
    %265 = arith.subf %261, %264 : vector<8x10xf32>
    %266 = math.exp %265 : vector<8x10xf32>
    %cst_94 = arith.constant dense<0.000000e+00> : vector<8xf32>
    %267 = vector.multi_reduction <add>, %266, %cst_94 [1] : vector<8x10xf32> to vector<8xf32>
    %268 = vector.shape_cast %267 : vector<8xf32> to vector<8x1xf32>
    %269 = tpu.reciprocal %268 {approx = true} : vector<8x1xf32> -> vector<8x1xf32>
    %270 = vector.broadcast %269 : vector<8x1xf32> to vector<8x10xf32>
    %271 = arith.mulf %266, %270 : vector<8x10xf32>
    %cst_95 = arith.constant dense<0.000000e+00> : vector<8x32xf32>
    %272 = tpu.matmul %271, %258, %cst_95 {dimension_numbers = #tpu.dot_dimension_numbers<[1], [0], [0], [1], [0, 0, 1, 1], [], []>} : vector<8x10xf32>, vector<10x32xf32>, vector<8x32xf32> -> vector<8x32xf32>
    %273 = vector.extract_strided_slice %221 {offsets = [0, 96], sizes = [8, 32], strides = [1, 1]} : vector<8x128xf32> to vector<8x32xf32>
    %274 = vector.extract_strided_slice %217 {offsets = [0, 96], sizes = [10, 32], strides = [1, 1]} : vector<10x128xf32> to vector<10x32xf32>
    %275 = vector.extract_strided_slice %220 {offsets = [0, 96], sizes = [10, 32], strides = [1, 1]} : vector<10x128xf32> to vector<10x32xf32>
    %cst_96 = arith.constant dense<0.000000e+00> : vector<8x10xf32>
    %276 = tpu.matmul %273, %274, %cst_96 {dimension_numbers = #tpu.dot_dimension_numbers<[1], [1], [0], [0], [0, 0, 1, 0], [], []>} : vector<8x32xf32>, vector<10x32xf32>, vector<8x10xf32> -> vector<8x10xf32>
    %cst_97 = arith.constant 0.176776692 : f32
    %277 = vector.broadcast %cst_97 : f32 to vector<8x10xf32>
    %278 = arith.mulf %276, %277 : vector<8x10xf32>
    %cst_98 = arith.constant dense<0xFF800000> : vector<8xf32>
    %279 = vector.multi_reduction <maximumf>, %278, %cst_98 [1] : vector<8x10xf32> to vector<8xf32>
    %280 = vector.shape_cast %279 : vector<8xf32> to vector<8x1xf32>
    %281 = vector.broadcast %280 : vector<8x1xf32> to vector<8x10xf32>
    %282 = arith.subf %278, %281 : vector<8x10xf32>
    %283 = math.exp %282 : vector<8x10xf32>
    %cst_99 = arith.constant dense<0.000000e+00> : vector<8xf32>
    %284 = vector.multi_reduction <add>, %283, %cst_99 [1] : vector<8x10xf32> to vector<8xf32>
    %285 = vector.shape_cast %284 : vector<8xf32> to vector<8x1xf32>
    %286 = tpu.reciprocal %285 {approx = true} : vector<8x1xf32> -> vector<8x1xf32>
    %287 = vector.broadcast %286 : vector<8x1xf32> to vector<8x10xf32>
    %288 = arith.mulf %283, %287 : vector<8x10xf32>
    %cst_100 = arith.constant dense<0.000000e+00> : vector<8x32xf32>
    %289 = tpu.matmul %288, %275, %cst_100 {dimension_numbers = #tpu.dot_dimension_numbers<[1], [0], [0], [1], [0, 0, 1, 1], [], []>} : vector<8x10xf32>, vector<10x32xf32>, vector<8x32xf32> -> vector<8x32xf32>
    %290 = tpu.concatenate %238, %255, %272, %289 in 1 : vector<8x32xf32>, vector<8x32xf32>, vector<8x32xf32>, vector<8x32xf32> -> vector<8x128xf32>
    %291 = vector.extract_strided_slice %214 {offsets = [1, 0], sizes = [1, 128], strides = [1, 1]} : vector<2x256xf32> to vector<1x128xf32>
    %292 = vector.shape_cast %291 : vector<1x128xf32> to vector<1x128xf32>
    %293 = vector.broadcast %292 : vector<1x128xf32> to vector<10x128xf32>
    %294 = vector.extract_strided_slice %214 {offsets = [1, 128], sizes = [1, 128], strides = [1, 1]} : vector<2x256xf32> to vector<1x128xf32>
    %295 = vector.shape_cast %294 : vector<1x128xf32> to vector<1x128xf32>
    %296 = vector.broadcast %295 : vector<1x128xf32> to vector<10x128xf32>
    %297 = vector.extract_strided_slice %208 {offsets = [8, 0], sizes = [8, 128], strides = [1, 1]} : vector<16x128xf32> to vector<8x128xf32>
    %298 = vector.extract_strided_slice %297 {offsets = [0, 0], sizes = [8, 32], strides = [1, 1]} : vector<8x128xf32> to vector<8x32xf32>
    %299 = vector.extract_strided_slice %293 {offsets = [0, 0], sizes = [10, 32], strides = [1, 1]} : vector<10x128xf32> to vector<10x32xf32>
    %300 = vector.extract_strided_slice %296 {offsets = [0, 0], sizes = [10, 32], strides = [1, 1]} : vector<10x128xf32> to vector<10x32xf32>
    %cst_101 = arith.constant dense<0.000000e+00> : vector<8x10xf32>
    %301 = tpu.matmul %298, %299, %cst_101 {dimension_numbers = #tpu.dot_dimension_numbers<[1], [1], [0], [0], [0, 0, 1, 0], [], []>} : vector<8x32xf32>, vector<10x32xf32>, vector<8x10xf32> -> vector<8x10xf32>
    %cst_102 = arith.constant 0.176776692 : f32
    %302 = vector.broadcast %cst_102 : f32 to vector<8x10xf32>
    %303 = arith.mulf %301, %302 : vector<8x10xf32>
    %cst_103 = arith.constant dense<0xFF800000> : vector<8xf32>
    %304 = vector.multi_reduction <maximumf>, %303, %cst_103 [1] : vector<8x10xf32> to vector<8xf32>
    %305 = vector.shape_cast %304 : vector<8xf32> to vector<8x1xf32>
    %306 = vector.broadcast %305 : vector<8x1xf32> to vector<8x10xf32>
    %307 = arith.subf %303, %306 : vector<8x10xf32>
    %308 = math.exp %307 : vector<8x10xf32>
    %cst_104 = arith.constant dense<0.000000e+00> : vector<8xf32>
    %309 = vector.multi_reduction <add>, %308, %cst_104 [1] : vector<8x10xf32> to vector<8xf32>
    %310 = vector.shape_cast %309 : vector<8xf32> to vector<8x1xf32>
    %311 = tpu.reciprocal %310 {approx = true} : vector<8x1xf32> -> vector<8x1xf32>
    %312 = vector.broadcast %311 : vector<8x1xf32> to vector<8x10xf32>
    %313 = arith.mulf %308, %312 : vector<8x10xf32>
    %cst_105 = arith.constant dense<0.000000e+00> : vector<8x32xf32>
    %314 = tpu.matmul %313, %300, %cst_105 {dimension_numbers = #tpu.dot_dimension_numbers<[1], [0], [0], [1], [0, 0, 1, 1], [], []>} : vector<8x10xf32>, vector<10x32xf32>, vector<8x32xf32> -> vector<8x32xf32>
    %315 = vector.extract_strided_slice %297 {offsets = [0, 32], sizes = [8, 32], strides = [1, 1]} : vector<8x128xf32> to vector<8x32xf32>
    %316 = vector.extract_strided_slice %293 {offsets = [0, 32], sizes = [10, 32], strides = [1, 1]} : vector<10x128xf32> to vector<10x32xf32>
    %317 = vector.extract_strided_slice %296 {offsets = [0, 32], sizes = [10, 32], strides = [1, 1]} : vector<10x128xf32> to vector<10x32xf32>
    %cst_106 = arith.constant dense<0.000000e+00> : vector<8x10xf32>
    %318 = tpu.matmul %315, %316, %cst_106 {dimension_numbers = #tpu.dot_dimension_numbers<[1], [1], [0], [0], [0, 0, 1, 0], [], []>} : vector<8x32xf32>, vector<10x32xf32>, vector<8x10xf32> -> vector<8x10xf32>
    %cst_107 = arith.constant 0.176776692 : f32
    %319 = vector.broadcast %cst_107 : f32 to vector<8x10xf32>
    %320 = arith.mulf %318, %319 : vector<8x10xf32>
    %cst_108 = arith.constant dense<0xFF800000> : vector<8xf32>
    %321 = vector.multi_reduction <maximumf>, %320, %cst_108 [1] : vector<8x10xf32> to vector<8xf32>
    %322 = vector.shape_cast %321 : vector<8xf32> to vector<8x1xf32>
    %323 = vector.broadcast %322 : vector<8x1xf32> to vector<8x10xf32>
    %324 = arith.subf %320, %323 : vector<8x10xf32>
    %325 = math.exp %324 : vector<8x10xf32>
    %cst_109 = arith.constant dense<0.000000e+00> : vector<8xf32>
    %326 = vector.multi_reduction <add>, %325, %cst_109 [1] : vector<8x10xf32> to vector<8xf32>
    %327 = vector.shape_cast %326 : vector<8xf32> to vector<8x1xf32>
    %328 = tpu.reciprocal %327 {approx = true} : vector<8x1xf32> -> vector<8x1xf32>
    %329 = vector.broadcast %328 : vector<8x1xf32> to vector<8x10xf32>
    %330 = arith.mulf %325, %329 : vector<8x10xf32>
    %cst_110 = arith.constant dense<0.000000e+00> : vector<8x32xf32>
    %331 = tpu.matmul %330, %317, %cst_110 {dimension_numbers = #tpu.dot_dimension_numbers<[1], [0], [0], [1], [0, 0, 1, 1], [], []>} : vector<8x10xf32>, vector<10x32xf32>, vector<8x32xf32> -> vector<8x32xf32>
    %332 = vector.extract_strided_slice %297 {offsets = [0, 64], sizes = [8, 32], strides = [1, 1]} : vector<8x128xf32> to vector<8x32xf32>
    %333 = vector.extract_strided_slice %293 {offsets = [0, 64], sizes = [10, 32], strides = [1, 1]} : vector<10x128xf32> to vector<10x32xf32>
    %334 = vector.extract_strided_slice %296 {offsets = [0, 64], sizes = [10, 32], strides = [1, 1]} : vector<10x128xf32> to vector<10x32xf32>
    %cst_111 = arith.constant dense<0.000000e+00> : vector<8x10xf32>
    %335 = tpu.matmul %332, %333, %cst_111 {dimension_numbers = #tpu.dot_dimension_numbers<[1], [1], [0], [0], [0, 0, 1, 0], [], []>} : vector<8x32xf32>, vector<10x32xf32>, vector<8x10xf32> -> vector<8x10xf32>
    %cst_112 = arith.constant 0.176776692 : f32
    %336 = vector.broadcast %cst_112 : f32 to vector<8x10xf32>
    %337 = arith.mulf %335, %336 : vector<8x10xf32>
    %cst_113 = arith.constant dense<0xFF800000> : vector<8xf32>
    %338 = vector.multi_reduction <maximumf>, %337, %cst_113 [1] : vector<8x10xf32> to vector<8xf32>
    %339 = vector.shape_cast %338 : vector<8xf32> to vector<8x1xf32>
    %340 = vector.broadcast %339 : vector<8x1xf32> to vector<8x10xf32>
    %341 = arith.subf %337, %340 : vector<8x10xf32>
    %342 = math.exp %341 : vector<8x10xf32>
    %cst_114 = arith.constant dense<0.000000e+00> : vector<8xf32>
    %343 = vector.multi_reduction <add>, %342, %cst_114 [1] : vector<8x10xf32> to vector<8xf32>
    %344 = vector.shape_cast %343 : vector<8xf32> to vector<8x1xf32>
    %345 = tpu.reciprocal %344 {approx = true} : vector<8x1xf32> -> vector<8x1xf32>
    %346 = vector.broadcast %345 : vector<8x1xf32> to vector<8x10xf32>
    %347 = arith.mulf %342, %346 : vector<8x10xf32>
    %cst_115 = arith.constant dense<0.000000e+00> : vector<8x32xf32>
    %348 = tpu.matmul %347, %334, %cst_115 {dimension_numbers = #tpu.dot_dimension_numbers<[1], [0], [0], [1], [0, 0, 1, 1], [], []>} : vector<8x10xf32>, vector<10x32xf32>, vector<8x32xf32> -> vector<8x32xf32>
    %349 = vector.extract_strided_slice %297 {offsets = [0, 96], sizes = [8, 32], strides = [1, 1]} : vector<8x128xf32> to vector<8x32xf32>
    %350 = vector.extract_strided_slice %293 {offsets = [0, 96], sizes = [10, 32], strides = [1, 1]} : vector<10x128xf32> to vector<10x32xf32>
    %351 = vector.extract_strided_slice %296 {offsets = [0, 96], sizes = [10, 32], strides = [1, 1]} : vector<10x128xf32> to vector<10x32xf32>
    %cst_116 = arith.constant dense<0.000000e+00> : vector<8x10xf32>
    %352 = tpu.matmul %349, %350, %cst_116 {dimension_numbers = #tpu.dot_dimension_numbers<[1], [1], [0], [0], [0, 0, 1, 0], [], []>} : vector<8x32xf32>, vector<10x32xf32>, vector<8x10xf32> -> vector<8x10xf32>
    %cst_117 = arith.constant 0.176776692 : f32
    %353 = vector.broadcast %cst_117 : f32 to vector<8x10xf32>
    %354 = arith.mulf %352, %353 : vector<8x10xf32>
    %cst_118 = arith.constant dense<0xFF800000> : vector<8xf32>
    %355 = vector.multi_reduction <maximumf>, %354, %cst_118 [1] : vector<8x10xf32> to vector<8xf32>
    %356 = vector.shape_cast %355 : vector<8xf32> to vector<8x1xf32>
    %357 = vector.broadcast %356 : vector<8x1xf32> to vector<8x10xf32>
    %358 = arith.subf %354, %357 : vector<8x10xf32>
    %359 = math.exp %358 : vector<8x10xf32>
    %cst_119 = arith.constant dense<0.000000e+00> : vector<8xf32>
    %360 = vector.multi_reduction <add>, %359, %cst_119 [1] : vector<8x10xf32> to vector<8xf32>
    %361 = vector.shape_cast %360 : vector<8xf32> to vector<8x1xf32>
    %362 = tpu.reciprocal %361 {approx = true} : vector<8x1xf32> -> vector<8x1xf32>
    %363 = vector.broadcast %362 : vector<8x1xf32> to vector<8x10xf32>
    %364 = arith.mulf %359, %363 : vector<8x10xf32>
    %cst_120 = arith.constant dense<0.000000e+00> : vector<8x32xf32>
    %365 = tpu.matmul %364, %351, %cst_120 {dimension_numbers = #tpu.dot_dimension_numbers<[1], [0], [0], [1], [0, 0, 1, 1], [], []>} : vector<8x10xf32>, vector<10x32xf32>, vector<8x32xf32> -> vector<8x32xf32>
    %366 = tpu.concatenate %314, %331, %348, %365 in 1 : vector<8x32xf32>, vector<8x32xf32>, vector<8x32xf32>, vector<8x32xf32> -> vector<8x128xf32>
    %367 = tpu.concatenate %290, %366 in 0 : vector<8x128xf32>, vector<8x128xf32> -> vector<16x128xf32>
    %368 = arith.truncf %367 : vector<16x128xf32> to vector<16x128xbf16>
    %c0_121 = arith.constant 0 : index
    %c0_122 = arith.constant 0 : index
    %369 = vector.load %arg12[%c0_121, %c0_122] : memref<128x128xbf16, #tpu.memory_space<vmem>>, vector<128x128xbf16>
    %cst_123 = arith.constant dense<0.000000e+00> : vector<16x128xf32>
    %370 = tpu.matmul %368, %369, %cst_123 {dimension_numbers = #tpu.dot_dimension_numbers<[1], [0], [0], [1], [0, 0, 1, 1], [], []>} : vector<16x128xbf16>, vector<128x128xbf16>, vector<16x128xf32> -> vector<16x128xf32>
    %371 = arith.addf %202, %370 : vector<16x128xf32>
    %c0_124 = arith.constant 0 : index
    %c0_125 = arith.constant 0 : index
    %372 = vector.load %arg13[%c0_124, %c0_125] : memref<1x128xf32, #tpu.memory_space<vmem>>, vector<1x128xf32>
    %373 = vector.broadcast %372 : vector<1x128xf32> to vector<16x128xf32>
    %374 = arith.addf %371, %373 : vector<16x128xf32>
    %c1 = arith.constant 1 : index
    %c0_126 = arith.constant 0 : index
    %375 = vector.load %arg14[%c1, %c0_126] : memref<3x128xf32, #tpu.memory_space<vmem>>, vector<1x128xf32>
    %c1_127 = arith.constant 1 : index
    %c0_128 = arith.constant 0 : index
    %376 = vector.load %arg15[%c1_127, %c0_128] : memref<3x128xf32, #tpu.memory_space<vmem>>, vector<1x128xf32>
    %cst_129 = arith.constant dense<0.000000e+00> : vector<16xf32>
    %377 = vector.multi_reduction <add>, %374, %cst_129 [1] : vector<16x128xf32> to vector<16xf32>
    %378 = vector.shape_cast %377 : vector<16xf32> to vector<16x1xf32>
    %cst_130 = arith.constant 1.280000e+02 : f32
    %379 = vector.broadcast %cst_130 : f32 to vector<16x1xf32>
    %380 = arith.divf %378, %379 : vector<16x1xf32>
    %381 = vector.broadcast %380 : vector<16x1xf32> to vector<16x128xf32>
    %382 = arith.subf %374, %381 : vector<16x128xf32>
    %383 = arith.mulf %382, %382 : vector<16x128xf32>
    %cst_131 = arith.constant dense<0.000000e+00> : vector<16xf32>
    %384 = vector.multi_reduction <add>, %383, %cst_131 [1] : vector<16x128xf32> to vector<16xf32>
    %385 = vector.shape_cast %384 : vector<16xf32> to vector<16x1xf32>
    %cst_132 = arith.constant 1.280000e+02 : f32
    %386 = vector.broadcast %cst_132 : f32 to vector<16x1xf32>
    %387 = arith.divf %385, %386 : vector<16x1xf32>
    %388 = vector.broadcast %380 : vector<16x1xf32> to vector<16x128xf32>
    %389 = arith.subf %374, %388 : vector<16x128xf32>
    %cst_133 = arith.constant 9.99999974E-6 : f32
    %390 = vector.broadcast %cst_133 : f32 to vector<16x1xf32>
    %391 = arith.addf %387, %390 : vector<16x1xf32>
    %392 = math.rsqrt %391 : vector<16x1xf32>
    %393 = vector.broadcast %392 : vector<16x1xf32> to vector<16x128xf32>
    %394 = arith.mulf %389, %393 : vector<16x128xf32>
    %395 = vector.broadcast %375 : vector<1x128xf32> to vector<16x128xf32>
    %396 = arith.mulf %394, %395 : vector<16x128xf32>
    %397 = vector.broadcast %376 : vector<1x128xf32> to vector<16x128xf32>
    %398 = arith.addf %396, %397 : vector<16x128xf32>
    %399 = arith.truncf %398 : vector<16x128xf32> to vector<16x128xbf16>
    %c0_134 = arith.constant 0 : index
    %c0_135 = arith.constant 0 : index
    %400 = vector.load %arg16[%c0_134, %c0_135] : memref<128x512xbf16, #tpu.memory_space<vmem>>, vector<128x512xbf16>
    %cst_136 = arith.constant dense<0.000000e+00> : vector<16x512xf32>
    %401 = tpu.matmul %399, %400, %cst_136 {dimension_numbers = #tpu.dot_dimension_numbers<[1], [0], [0], [1], [0, 0, 1, 1], [], []>} : vector<16x128xbf16>, vector<128x512xbf16>, vector<16x512xf32> -> vector<16x512xf32>
    %c0_137 = arith.constant 0 : index
    %c0_138 = arith.constant 0 : index
    %402 = vector.load %arg17[%c0_137, %c0_138] : memref<1x512xf32, #tpu.memory_space<vmem>>, vector<1x512xf32>
    %403 = vector.broadcast %402 : vector<1x512xf32> to vector<16x512xf32>
    %404 = arith.addf %401, %403 : vector<16x512xf32>
    %cst_139 = arith.constant 0.000000e+00 : f32
    %405 = vector.broadcast %cst_139 : f32 to vector<16x512xf32>
    %406 = arith.maximumf %404, %405 : vector<16x512xf32>
    %407 = arith.truncf %406 : vector<16x512xf32> to vector<16x512xbf16>
    %c0_140 = arith.constant 0 : index
    %c0_141 = arith.constant 0 : index
    %408 = vector.load %arg18[%c0_140, %c0_141] : memref<512x128xbf16, #tpu.memory_space<vmem>>, vector<512x128xbf16>
    %cst_142 = arith.constant dense<0.000000e+00> : vector<16x128xf32>
    %409 = tpu.matmul %407, %408, %cst_142 {dimension_numbers = #tpu.dot_dimension_numbers<[1], [0], [0], [1], [0, 0, 1, 1], [], []>} : vector<16x512xbf16>, vector<512x128xbf16>, vector<16x128xf32> -> vector<16x128xf32>
    %410 = arith.addf %398, %409 : vector<16x128xf32>
    %c0_143 = arith.constant 0 : index
    %c0_144 = arith.constant 0 : index
    %411 = vector.load %arg19[%c0_143, %c0_144] : memref<1x128xf32, #tpu.memory_space<vmem>>, vector<1x128xf32>
    %412 = vector.broadcast %411 : vector<1x128xf32> to vector<16x128xf32>
    %413 = arith.addf %410, %412 : vector<16x128xf32>
    %c2 = arith.constant 2 : index
    %c0_145 = arith.constant 0 : index
    %414 = vector.load %arg14[%c2, %c0_145] : memref<3x128xf32, #tpu.memory_space<vmem>>, vector<1x128xf32>
    %c2_146 = arith.constant 2 : index
    %c0_147 = arith.constant 0 : index
    %415 = vector.load %arg15[%c2_146, %c0_147] : memref<3x128xf32, #tpu.memory_space<vmem>>, vector<1x128xf32>
    %cst_148 = arith.constant dense<0.000000e+00> : vector<16xf32>
    %416 = vector.multi_reduction <add>, %413, %cst_148 [1] : vector<16x128xf32> to vector<16xf32>
    %417 = vector.shape_cast %416 : vector<16xf32> to vector<16x1xf32>
    %cst_149 = arith.constant 1.280000e+02 : f32
    %418 = vector.broadcast %cst_149 : f32 to vector<16x1xf32>
    %419 = arith.divf %417, %418 : vector<16x1xf32>
    %420 = vector.broadcast %419 : vector<16x1xf32> to vector<16x128xf32>
    %421 = arith.subf %413, %420 : vector<16x128xf32>
    %422 = arith.mulf %421, %421 : vector<16x128xf32>
    %cst_150 = arith.constant dense<0.000000e+00> : vector<16xf32>
    %423 = vector.multi_reduction <add>, %422, %cst_150 [1] : vector<16x128xf32> to vector<16xf32>
    %424 = vector.shape_cast %423 : vector<16xf32> to vector<16x1xf32>
    %cst_151 = arith.constant 1.280000e+02 : f32
    %425 = vector.broadcast %cst_151 : f32 to vector<16x1xf32>
    %426 = arith.divf %424, %425 : vector<16x1xf32>
    %427 = vector.broadcast %419 : vector<16x1xf32> to vector<16x128xf32>
    %428 = arith.subf %413, %427 : vector<16x128xf32>
    %cst_152 = arith.constant 9.99999974E-6 : f32
    %429 = vector.broadcast %cst_152 : f32 to vector<16x1xf32>
    %430 = arith.addf %426, %429 : vector<16x1xf32>
    %431 = math.rsqrt %430 : vector<16x1xf32>
    %432 = vector.broadcast %431 : vector<16x1xf32> to vector<16x128xf32>
    %433 = arith.mulf %428, %432 : vector<16x128xf32>
    %434 = vector.broadcast %414 : vector<1x128xf32> to vector<16x128xf32>
    %435 = arith.mulf %433, %434 : vector<16x128xf32>
    %436 = vector.broadcast %415 : vector<1x128xf32> to vector<16x128xf32>
    %437 = arith.addf %435, %436 : vector<16x128xf32>
    %438 = arith.truncf %437 : vector<16x128xf32> to vector<16x128xbf16>
    %c0_153 = arith.constant 0 : index
    %c0_154 = arith.constant 0 : index
    %439 = vector.load %arg20[%c0_153, %c0_154] : memref<128x128xbf16, #tpu.memory_space<vmem>>, vector<128x128xbf16>
    %cst_155 = arith.constant dense<0.000000e+00> : vector<16x128xf32>
    %440 = tpu.matmul %438, %439, %cst_155 {dimension_numbers = #tpu.dot_dimension_numbers<[1], [0], [0], [1], [0, 0, 1, 1], [], []>} : vector<16x128xbf16>, vector<128x128xbf16>, vector<16x128xf32> -> vector<16x128xf32>
    %c0_156 = arith.constant 0 : index
    %c0_157 = arith.constant 0 : index
    %441 = vector.load %arg21[%c0_156, %c0_157] : memref<1x128xf32, #tpu.memory_space<vmem>>, vector<1x128xf32>
    %442 = vector.broadcast %441 : vector<1x128xf32> to vector<16x128xf32>
    %443 = arith.addf %440, %442 : vector<16x128xf32>
    %c0_158 = arith.constant 0 : index
    %c0_159 = arith.constant 0 : index
    %444 = vector.load %arg22[%c0_158, %c0_159] : memref<16x128xf32, #tpu.memory_space<vmem>>, vector<16x128xf32>
    tpu.vector_store %arg22[%c0_158, %c0_159], %443 {strides = array<i32>} : memref<16x128xf32, #tpu.memory_space<vmem>>, vector<16x128xf32>,
    return
  }
}

</mosaic_0001>

<bundles_post_ra>
// kernel: forward.4
= control target key start
LH: loop header
LB: loop body
LE: loop exit
PB: predicated region body
PF: predicated region fallthrough
CT: control target
= control target key end

     0   :  { %vm227_vm0 = vcmask 1044480   ;;  %vm228_vm1 = vcmask 1045504   ;;  %v586_v2 = vmov 65535   ;;  %vm130_vm2 = vcmask 220160   ;;  %s973_s1 = inlined_call_operand.vmem [shape: bf16[27,16], index: 1, kind: input, shape index: {}]   ;;  %s974_s0 = inlined_call_operand.vmem [shape: f32[512,27], index: 0, kind: input, shape index: {}]   ;;  %s975_s2 = inlined_call_operand.vmem [shape: f32[1,16], index: 2, kind: input, shape index: {}]   ;;  %s976_s3 = inlined_call_operand.vmem [shape: f32[128,16], index: 3, kind: output, shape index: {}]  }
   0x1   :  { %v542_v0 = vld [vmem:[%s973_s1 + $0x8] sm:$0xf]  ;;  %v577_v1 = vld [vmem:[%s973_s1 + $0x8] sm:$0x30]  ;;  %v229_v3 = vsel %vm227_vm0, 4294967295, %v586_v2  ;;  %v576_v7 = vld [vmem:[%s973_s1] sm:$0xff] }
   0x2   :  { %v543_v4 = vor.u32 %v577_v1, %v542_v0  ;;  %v230_v5 = vsel %vm228_vm1, %v229_v3, 0  ;;  %v15_v8 = vld [vmem:[%s974_s0] sm:$0xff]  ;;  %v16_v9 = vld [vmem:[%s974_s0 + $0x8] sm:$0xff]  ;;  %v17_v20 = vld [vmem:[%s974_s0 + $0x10] sm:$0xff]  ;;  %vm515_vm3 = vcmask 130048  }
   0x3   :  { %v31_v10 = vld [vmem:[%s974_s0 + $0x80] sm:$0xff]  ;;  %v32_v11 = vld [vmem:[%s974_s0 + $0x88] sm:$0xff]  ;;  %v79_v16 = vpack.c.bf16 %v16_v9, %v15_v8  ;;  %v18_v21 = vld [vmem:[%s974_s0 + $0x18] sm:$0xff] }
   0x4   :  { %v232_v6 = vand.u32 %v543_v4, %v230_v5  ;;  %v47_v12 = vld [vmem:[%s974_s0 + $0x100] sm:$0xff]  ;;  %v48_v13 = vld [vmem:[%s974_s0 + $0x108] sm:$0xff]  ;;  %v87_v17 = vpack.c.bf16 %v32_v11, %v31_v10  ;;  %v33_v22 = vld [vmem:[%s974_s0 + $0x90] sm:$0xff]  ;;  %v80_v28 = vpack.c.bf16 %v18_v21, %v17_v20 }
   0x5   :  { %v63_v14 = vld [vmem:[%s974_s0 + $0x180] sm:$0xff]  ;;  %v64_v15 = vld [vmem:[%s974_s0 + $0x188] sm:$0xff]  ;;  %v95_v18 = vpack.c.bf16 %v48_v13, %v47_v12  ;;  %v34_v23 = vld [vmem:[%s974_s0 + $0x98] sm:$0xff] }
   0x6   :  { %240 = vmatpush.bf16.msra.mxu0 %v232_v6  ;;  %578 = vmatpush.bf16.msra.mxu1 %v232_v6  ;;  %v103_v19 = vpack.c.bf16 %v64_v15, %v63_v14  ;;  %v49_v24 = vld [vmem:[%s974_s0 + $0x110] sm:$0xff]  ;;  %v50_v25 = vld [vmem:[%s974_s0 + $0x118] sm:$0xff]  ;;  %v88_v29 = vpack.c.bf16 %v34_v23, %v33_v22  ;;  %v19_v32 = vld [vmem:[%s974_s0 + $0x20] sm:$0xff] }
   0x7   :  { %579 = vmatpush.bf16.msra.mxu2 %v232_v6  ;;  %580 = vmatpush.bf16.msra.mxu3 %v232_v6  ;;  %v65_v26 = vld [vmem:[%s974_s0 + $0x190] sm:$0xff]  ;;  %v66_v27 = vld [vmem:[%s974_s0 + $0x198] sm:$0xff]  ;;  %v96_v30 = vpack.c.bf16 %v50_v25, %v49_v24  ;;  %v20_v33 = vld [vmem:[%s974_s0 + $0x28] sm:$0xff] }
   0x8   :  { %v104_v31 = vpack.c.bf16 %v66_v27, %v65_v26  ;;  %v35_v34 = vld [vmem:[%s974_s0 + $0xa0] sm:$0xff]  ;;  %v36_v35 = vld [vmem:[%s974_s0 + $0xa8] sm:$0xff]  ;;  %v81_v40 = vpack.c.bf16 %v20_v33, %v19_v32  ;;  %v21_v44 = vld [vmem:[%s974_s0 + $0x30] sm:$0xff] }
   0x9   :  { %v51_v36 = vld [vmem:[%s974_s0 + $0x120] sm:$0xff]  ;;  %v52_v37 = vld [vmem:[%s974_s0 + $0x128] sm:$0xff]  ;;  %v89_v41 = vpack.c.bf16 %v36_v35, %v35_v34  ;;  %v22_v45 = vld [vmem:[%s974_s0 + $0x38] sm:$0xff] }
   0xa   :  { %241 = vmatpush.bf16.msra.mxu0 %v576_v7  ;;  %581 = vmatpush.bf16.msra.mxu1 %v576_v7  ;;  %v67_v38 = vld [vmem:[%s974_s0 + $0x1a0] sm:$0xff]  ;;  %v68_v39 = vld [vmem:[%s974_s0 + $0x1a8] sm:$0xff]  ;;  %v97_v42 = vpack.c.bf16 %v52_v37, %v51_v36  ;;  %v37_v46 = vld [vmem:[%s974_s0 + $0xb0] sm:$0xff]  ;;  %v82_v52 = vpack.c.bf16 %v22_v45, %v21_v44 }
   0xb   :  { %582 = vmatpush.bf16.msra.mxu2 %v576_v7  ;;  %583 = vmatpush.bf16.msra.mxu3 %v576_v7  ;;  %v105_v43 = vpack.c.bf16 %v68_v39, %v67_v38  ;;  %v38_v47 = vld [vmem:[%s974_s0 + $0xb8] sm:$0xff]  ;;  %v53_v48 = vld [vmem:[%s974_s0 + $0x130] sm:$0xff]  ;;  %v23_v56 = vld [vmem:[%s974_s0 + $0x40] sm:$0xff] }
   0xc   :  { %v54_v49 = vld [vmem:[%s974_s0 + $0x138] sm:$0xff]  ;;  %v69_v50 = vld [vmem:[%s974_s0 + $0x1b0] sm:$0xff]  ;;  %v90_v53 = vpack.c.bf16 %v38_v47, %v37_v46  ;;  %v24_v57 = vld [vmem:[%s974_s0 + $0x48] sm:$0xff] }
   0xd   :  { %544 = vmatmul.msk.bf16.vlgmr.msra.gmra.mxu0 %vm130_vm2, %v79_v16  ;;  %552 = vmatmul.msk.bf16.vlgmr.msra.gmra.mxu1 %vm130_vm2, %v87_v17  ;;  %v70_v51 = vld [vmem:[%s974_s0 + $0x1b8] sm:$0xff]  ;;  %v98_v54 = vpack.c.bf16 %v54_v49, %v53_v48  ;;  %v39_v58 = vld [vmem:[%s974_s0 + $0xc0] sm:$0xff]  ;;  %v40_v59 = vld [vmem:[%s974_s0 + $0xc8] sm:$0xff]  ;;  %v83_v0 = vpack.c.bf16 %v24_v57, %v23_v56 }
   0xe   :  { %560 = vmatmul.msk.bf16.vlgmr.msra.gmra.mxu2 %vm130_vm2, %v95_v18  ;;  %568 = vmatmul.msk.bf16.vlgmr.msra.gmra.mxu3 %vm130_vm2, %v103_v19  ;;  %v106_v55 = vpack.c.bf16 %v70_v51, %v69_v50  ;;  %v55_v60 = vld [vmem:[%s974_s0 + $0x140] sm:$0xff]  ;;  %v56_v61 = vld [vmem:[%s974_s0 + $0x148] sm:$0xff]  ;;  %v91_v1 = vpack.c.bf16 %v40_v59, %v39_v58  ;;  %v25_v4 = vld [vmem:[%s974_s0 + $0x50] sm:$0xff] }
   0xf   :  { %v71_v62 = vld [vmem:[%s974_s0 + $0x1c0] sm:$0xff]  ;;  %v72_v63 = vld [vmem:[%s974_s0 + $0x1c8] sm:$0xff]  ;;  %v99_v2 = vpack.c.bf16 %v56_v61, %v55_v60  ;;  %v26_v5 = vld [vmem:[%s974_s0 + $0x58] sm:$0xff] }
  0x10   :  { %v107_v3 = vpack.c.bf16 %v72_v63, %v71_v62  ;;  %v41_v6 = vld [vmem:[%s974_s0 + $0xd0] sm:$0xff]  ;;  %v42_v7 = vld [vmem:[%s974_s0 + $0xd8] sm:$0xff]  ;;  %v84_v12 = vpack.c.bf16 %v26_v5, %v25_v4  ;;  %v27_v16 = vld [vmem:[%s974_s0 + $0x60] sm:$0xff] }
  0x11   :  { %v57_v8 = vld [vmem:[%s974_s0 + $0x150] sm:$0xff]  ;;  %v58_v9 = vld [vmem:[%s974_s0 + $0x158] sm:$0xff]  ;;  %v92_v13 = vpack.c.bf16 %v42_v7, %v41_v6  ;;  %v28_v17 = vld [vmem:[%s974_s0 + $0x68] sm:$0xff] }
  0x12   :  { %v73_v10 = vld [vmem:[%s974_s0 + $0x1d0] sm:$0xff]  ;;  %v74_v11 = vld [vmem:[%s974_s0 + $0x1d8] sm:$0xff]  ;;  %v100_v14 = vpack.c.bf16 %v58_v9, %v57_v8  ;;  %v43_v18 = vld [vmem:[%s974_s0 + $0xe0] sm:$0xff]  ;;  %v85_v24 = vpack.c.bf16 %v28_v17, %v27_v16 }
  0x13   :  { %v108_v15 = vpack.c.bf16 %v74_v11, %v73_v10  ;;  %v44_v19 = vld [vmem:[%s974_s0 + $0xe8] sm:$0xff]  ;;  %v59_v20 = vld [vmem:[%s974_s0 + $0x160] sm:$0xff]  ;;  %v61_v32 = vld [vmem:[%s974_s0 + $0x170] sm:$0xff] }
  0x14   :  { %v60_v21 = vld [vmem:[%s974_s0 + $0x168] sm:$0xff]  ;;  %v75_v22 = vld [vmem:[%s974_s0 + $0x1e0] sm:$0xff]  ;;  %v93_v25 = vpack.c.bf16 %v44_v19, %v43_v18  ;;  %v62_v33 = vld [vmem:[%s974_s0 + $0x178] sm:$0xff] }
  0x15   :  { %v76_v23 = vld [vmem:[%s974_s0 + $0x1e8] sm:$0xff]  ;;  %v101_v26 = vpack.c.bf16 %v60_v21, %v59_v20  ;;  %v77_v34 = vld [vmem:[%s974_s0 + $0x1f0] sm:$0xff]  ;;  %v78_v35 = vld [vmem:[%s974_s0 + $0x1f8] sm:$0xff]  ;;  %v102_v38 = vpack.c.bf16 %v62_v33, %v61_v32 }
  0x16   :  { %v109_v27 = vpack.c.bf16 %v76_v23, %v75_v22  ;;  %v110_v39 = vpack.c.bf16 %v78_v35, %v77_v34 }
  0x1d   :  { %545 = vmatmul.msk.bf16.gmra.mxu0 %vm130_vm2, %v80_v28  ;;  %553 = vmatmul.msk.bf16.gmra.mxu1 %vm130_vm2, %v88_v29  ;;  %v29_v28 = vld [vmem:[%s974_s0 + $0x70] sm:$0xff]  ;;  %v30_v29 = vld [vmem:[%s974_s0 + $0x78] sm:$0xff] }
  0x1e   :  { %561 = vmatmul.msk.bf16.gmra.mxu2 %vm130_vm2, %v96_v30  ;;  %569 = vmatmul.msk.bf16.gmra.mxu3 %vm130_vm2, %v104_v31  ;;  %v45_v30 = vld [vmem:[%s974_s0 + $0xf0] sm:$0xff]  ;;  %v46_v31 = vld [vmem:[%s974_s0 + $0xf8] sm:$0xff]  ;;  %v86_v36 = vpack.c.bf16 %v30_v29, %v29_v28 }
  0x1f   :  { %v94_v37 = vpack.c.bf16 %v46_v31, %v45_v30 }
  0x2d   :  { %546 = vmatmul.msk.bf16.gmra.mxu0 %vm130_vm2, %v81_v40  ;;  %554 = vmatmul.msk.bf16.gmra.mxu1 %vm130_vm2, %v89_v41  ;;  %v843_v40 = vld [vmem:[%s975_s2] ss:$0 sm:$0xff] }
  0x2e   :  { %562 = vmatmul.msk.bf16.gmra.mxu2 %vm130_vm2, %v97_v42  ;;  %570 = vmatmul.msk.bf16.gmra.mxu3 %vm130_vm2, %v105_v43 }
  0x3d   :  { %547 = vmatmul.msk.bf16.gmra.mxu0 %vm130_vm2, %v82_v52  ;;  %555 = vmatmul.msk.bf16.gmra.mxu1 %vm130_vm2, %v90_v53 }
  0x3e   :  { %563 = vmatmul.msk.bf16.gmra.mxu2 %vm130_vm2, %v98_v54  ;;  %571 = vmatmul.msk.bf16.gmra.mxu3 %vm130_vm2, %v106_v55 }
  0x4d   :  { %548 = vmatmul.msk.bf16.gmra.mxu0 %vm130_vm2, %v83_v0  ;;  %556 = vmatmul.msk.bf16.gmra.mxu1 %vm130_vm2, %v91_v1 }
  0x4e   :  { %564 = vmatmul.msk.bf16.gmra.mxu2 %vm130_vm2, %v99_v2  ;;  %572 = vmatmul.msk.bf16.gmra.mxu3 %vm130_vm2, %v107_v3 }
  0x5d   :  { %549 = vmatmul.msk.bf16.gmra.mxu0 %vm130_vm2, %v84_v12  ;;  %557 = vmatmul.msk.bf16.gmra.mxu1 %vm130_vm2, %v92_v13 }
  0x5e   :  { %565 = vmatmul.msk.bf16.gmra.mxu2 %vm130_vm2, %v100_v14  ;;  %573 = vmatmul.msk.bf16.gmra.mxu3 %vm130_vm2, %v108_v15 }
  0x6d   :  { %550 = vmatmul.msk.bf16.gmra.mxu0 %vm130_vm2, %v85_v24  ;;  %558 = vmatmul.msk.bf16.gmra.mxu1 %vm130_vm2, %v93_v25 }
  0x6e   :  { %566 = vmatmul.msk.bf16.gmra.mxu2 %vm130_vm2, %v101_v26  ;;  %574 = vmatmul.msk.bf16.gmra.mxu3 %vm130_vm2, %v109_v27 }
  0x7d   :  { %551 = vmatmul.msk.bf16.gmra.mxu0 %vm130_vm2, %v86_v36  ;;  %559 = vmatmul.msk.bf16.gmra.mxu1 %vm130_vm2, %v94_v37 }
  0x7e   :  { %567 = vmatmul.msk.bf16.gmra.mxu2 %vm130_vm2, %v102_v38  ;;  %575 = vmatmul.msk.bf16.gmra.mxu3 %vm130_vm2, %v110_v39 }
  0x8a   :  { %v243_v41 = vpop.f32.mrf.mxu0  ;;  %v283_v42 = vpop.f32.mrf.mxu1 }
  0x8b   :  { %v244_v43 = vadd.f32 %v843_v40, %v243_v41  ;;  %v284_v44 = vadd.f32 %v843_v40, %v283_v42 }
  0x8d   :  { %v403_v45 = vmax.f32 %v244_v43, 0.0  ;;  %v419_v46 = vmax.f32 %v284_v44, 0.0 }
  0x8f   :  { %v467_v53 = vmax.f32 %v403_v45, %v419_v46 }
  0x91   :  { %v323_v47 = vpop.f32.mrf.mxu2  ;;  %v363_v48 = vpop.f32.mrf.mxu3 }
  0x92   :  { %v324_v49 = vadd.f32 %v843_v40, %v323_v47  ;;  %v364_v50 = vadd.f32 %v843_v40, %v363_v48  ;;  %v245_v51 = vpop.f32.mrf.mxu0  ;;  %v285_v52 = vpop.f32.mrf.mxu1 }
  0x93   :  { %v246_v57 = vadd.f32 %v843_v40, %v245_v51  ;;  %v286_v58 = vadd.f32 %v843_v40, %v285_v52 }
  0x94   :  { %v435_v54 = vmax.f32 %v324_v49, 0.0  ;;  %v451_v55 = vmax.f32 %v364_v50, 0.0 }
  0x95   :  { %v404_v62 = vmax.f32 %v246_v57, 0.0  ;;  %v420_v63 = vmax.f32 %v286_v58, 0.0 }
  0x96   :  { %v483_v56 = vmax.f32 %v435_v54, %v451_v55 }
  0x97   :  { %v468_v8 = vmax.f32 %v404_v62, %v420_v63 }
  0x98   :  { %v499_v59 = vmax.f32 %v467_v53, %v483_v56 }
  0x99   :  { %v325_v60 = vpop.f32.mrf.mxu2  ;;  %v365_v61 = vpop.f32.mrf.mxu3 }
  0x9a   :  { %516 = vst.msk [vmem:[%s976_s3] sm:$0xff] %vm515_vm3, %v499_v59  ;;  %v326_v0 = vadd.f32 %v843_v40, %v325_v60  ;;  %v366_v1 = vadd.f32 %v843_v40, %v365_v61  ;;  %v248_v2 = vpop.f32.mrf.mxu0  ;;  %v288_v3 = vpop.f32.mrf.mxu1 }
  0x9b   :  { %v249_v6 = vadd.f32 %v843_v40, %v248_v2  ;;  %v289_v7 = vadd.f32 %v843_v40, %v288_v3 }
  0x9c   :  { %v436_v4 = vmax.f32 %v326_v0, 0.0  ;;  %v452_v5 = vmax.f32 %v366_v1, 0.0 }
  0x9d   :  { %v405_v11 = vmax.f32 %v249_v6, 0.0  ;;  %v421_v12 = vmax.f32 %v289_v7, 0.0 }
  0x9e   :  { %v484_v9 = vmax.f32 %v436_v4, %v452_v5 }
  0x9f   :  { %v469_v19 = vmax.f32 %v405_v11, %v421_v12 }
  0xa0   :  { %v500_v10 = vmax.f32 %v468_v8, %v484_v9 }
  0xa1   :  { %v328_v13 = vpop.f32.mrf.mxu2  ;;  %v368_v14 = vpop.f32.mrf.mxu3 }
  0xa2   :  { %517 = vst.msk [vmem:[%s976_s3 + $0x8] sm:$0xff] %vm515_vm3, %v500_v10  ;;  %v329_v15 = vadd.f32 %v843_v40, %v328_v13  ;;  %v369_v16 = vadd.f32 %v843_v40, %v368_v14  ;;  %v250_v17 = vpop.f32.mrf.mxu0  ;;  %v290_v18 = vpop.f32.mrf.mxu1 }
  0xa3   :  { %v251_v23 = vadd.f32 %v843_v40, %v250_v17  ;;  %v291_v24 = vadd.f32 %v843_v40, %v290_v18 }
  0xa4   :  { %v437_v20 = vmax.f32 %v329_v15, 0.0  ;;  %v453_v21 = vmax.f32 %v369_v16, 0.0 }
  0xa5   :  { %v406_v28 = vmax.f32 %v251_v23, 0.0  ;;  %v422_v29 = vmax.f32 %v291_v24, 0.0 }
  0xa6   :  { %v485_v22 = vmax.f32 %v437_v20, %v453_v21 }
  0xa7   :  { %v470_v38 = vmax.f32 %v406_v28, %v422_v29 }
  0xa8   :  { %v501_v25 = vmax.f32 %v469_v19, %v485_v22 }
  0xa9   :  { %v330_v26 = vpop.f32.mrf.mxu2  ;;  %v370_v27 = vpop.f32.mrf.mxu3 }
  0xaa   :  { %518 = vst.msk [vmem:[%s976_s3 + $0x10] sm:$0xff] %vm515_vm3, %v501_v25  ;;  %v331_v30 = vadd.f32 %v843_v40, %v330_v26  ;;  %v371_v31 = vadd.f32 %v843_v40, %v370_v27  ;;  %v253_v32 = vpop.f32.mrf.mxu0  ;;  %v293_v33 = vpop.f32.mrf.mxu1 }
  0xab   :  { %v254_v36 = vadd.f32 %v843_v40, %v253_v32  ;;  %v294_v37 = vadd.f32 %v843_v40, %v293_v33 }
  0xac   :  { %v438_v34 = vmax.f32 %v331_v30, 0.0  ;;  %v454_v35 = vmax.f32 %v371_v31, 0.0 }
  0xad   :  { %v407_v42 = vmax.f32 %v254_v36, 0.0  ;;  %v423_v43 = vmax.f32 %v294_v37, 0.0 }
  0xae   :  { %v486_v39 = vmax.f32 %v438_v34, %v454_v35 }
  0xaf   :  { %v471_v50 = vmax.f32 %v407_v42, %v423_v43 }
  0xb0   :  { %v502_v41 = vmax.f32 %v470_v38, %v486_v39 }
  0xb1   :  { %v333_v44 = vpop.f32.mrf.mxu2  ;;  %v373_v45 = vpop.f32.mrf.mxu3 }
  0xb2   :  { %519 = vst.msk [vmem:[%s976_s3 + $0x18] sm:$0xff] %vm515_vm3, %v502_v41  ;;  %v334_v46 = vadd.f32 %v843_v40, %v333_v44  ;;  %v374_v47 = vadd.f32 %v843_v40, %v373_v45  ;;  %v255_v48 = vpop.f32.mrf.mxu0  ;;  %v295_v49 = vpop.f32.mrf.mxu1 }
  0xb3   :  { %v256_v54 = vadd.f32 %v843_v40, %v255_v48  ;;  %v296_v55 = vadd.f32 %v843_v40, %v295_v49 }
  0xb4   :  { %v439_v51 = vmax.f32 %v334_v46, 0.0  ;;  %v455_v52 = vmax.f32 %v374_v47, 0.0 }
  0xb5   :  { %v408_v59 = vmax.f32 %v256_v54, 0.0  ;;  %v424_v60 = vmax.f32 %v296_v55, 0.0 }
  0xb6   :  { %v487_v53 = vmax.f32 %v439_v51, %v455_v52 }
  0xb7   :  { %v472_v5 = vmax.f32 %v408_v59, %v424_v60 }
  0xb8   :  { %v503_v56 = vmax.f32 %v471_v50, %v487_v53 }
  0xb9   :  { %v335_v57 = vpop.f32.mrf.mxu2  ;;  %v375_v58 = vpop.f32.mrf.mxu3 }
  0xba   :  { %520 = vst.msk [vmem:[%s976_s3 + $0x20] sm:$0xff] %vm515_vm3, %v503_v56  ;;  %v336_v61 = vadd.f32 %v843_v40, %v335_v57  ;;  %v376_v62 = vadd.f32 %v843_v40, %v375_v58  ;;  %v258_v63 = vpop.f32.mrf.mxu0  ;;  %v298_v0 = vpop.f32.mrf.mxu1 }
  0xbb   :  { %v259_v3 = vadd.f32 %v843_v40, %v258_v63  ;;  %v299_v4 = vadd.f32 %v843_v40, %v298_v0 }
  0xbc   :  { %v440_v1 = vmax.f32 %v336_v61, 0.0  ;;  %v456_v2 = vmax.f32 %v376_v62, 0.0 }
  0xbd   :  { %v409_v8 = vmax.f32 %v259_v3, 0.0  ;;  %v425_v9 = vmax.f32 %v299_v4, 0.0 }
  0xbe   :  { %v488_v6 = vmax.f32 %v440_v1, %v456_v2 }
  0xbf   :  { %v473_v16 = vmax.f32 %v409_v8, %v425_v9 }
  0xc0   :  { %v504_v7 = vmax.f32 %v472_v5, %v488_v6 }
  0xc1   :  { %v338_v10 = vpop.f32.mrf.mxu2  ;;  %v378_v11 = vpop.f32.mrf.mxu3 }
  0xc2   :  { %521 = vst.msk [vmem:[%s976_s3 + $0x28] sm:$0xff] %vm515_vm3, %v504_v7  ;;  %v339_v12 = vadd.f32 %v843_v40, %v338_v10  ;;  %v379_v13 = vadd.f32 %v843_v40, %v378_v11  ;;  %v260_v14 = vpop.f32.mrf.mxu0  ;;  %v300_v15 = vpop.f32.mrf.mxu1 }
  0xc3   :  { %v261_v20 = vadd.f32 %v843_v40, %v260_v14  ;;  %v301_v21 = vadd.f32 %v843_v40, %v300_v15 }
  0xc4   :  { %v441_v17 = vmax.f32 %v339_v12, 0.0  ;;  %v457_v18 = vmax.f32 %v379_v13, 0.0 }
  0xc5   :  { %v410_v25 = vmax.f32 %v261_v20, 0.0  ;;  %v426_v26 = vmax.f32 %v301_v21, 0.0 }
  0xc6   :  { %v489_v19 = vmax.f32 %v441_v17, %v457_v18 }
  0xc7   :  { %v474_v35 = vmax.f32 %v410_v25, %v426_v26 }
  0xc8   :  { %v505_v22 = vmax.f32 %v473_v16, %v489_v19 }
  0xc9   :  { %v340_v23 = vpop.f32.mrf.mxu2  ;;  %v380_v24 = vpop.f32.mrf.mxu3 }
  0xca   :  { %522 = vst.msk [vmem:[%s976_s3 + $0x30] sm:$0xff] %vm515_vm3, %v505_v22  ;;  %v341_v27 = vadd.f32 %v843_v40, %v340_v23  ;;  %v381_v28 = vadd.f32 %v843_v40, %v380_v24  ;;  %v263_v29 = vpop.f32.mrf.mxu0  ;;  %v303_v30 = vpop.f32.mrf.mxu1 }
  0xcb   :  { %v264_v33 = vadd.f32 %v843_v40, %v263_v29  ;;  %v304_v34 = vadd.f32 %v843_v40, %v303_v30 }
  0xcc   :  { %v442_v31 = vmax.f32 %v341_v27, 0.0  ;;  %v458_v32 = vmax.f32 %v381_v28, 0.0 }
  0xcd   :  { %v411_v38 = vmax.f32 %v264_v33, 0.0  ;;  %v427_v39 = vmax.f32 %v304_v34, 0.0 }
  0xce   :  { %v490_v36 = vmax.f32 %v442_v31, %v458_v32 }
  0xcf   :  { %v475_v47 = vmax.f32 %v411_v38, %v427_v39 }
  0xd0   :  { %v506_v37 = vmax.f32 %v474_v35, %v490_v36 }
  0xd1   :  { %v343_v41 = vpop.f32.mrf.mxu2  ;;  %v383_v42 = vpop.f32.mrf.mxu3 }
  0xd2   :  { %523 = vst.msk [vmem:[%s976_s3 + $0x38] sm:$0xff] %vm515_vm3, %v506_v37  ;;  %v344_v43 = vadd.f32 %v843_v40, %v343_v41  ;;  %v384_v44 = vadd.f32 %v843_v40, %v383_v42  ;;  %v265_v45 = vpop.f32.mrf.mxu0  ;;  %v305_v46 = vpop.f32.mrf.mxu1 }
  0xd3   :  { %v266_v51 = vadd.f32 %v843_v40, %v265_v45  ;;  %v306_v52 = vadd.f32 %v843_v40, %v305_v46 }
  0xd4   :  { %v443_v48 = vmax.f32 %v344_v43, 0.0  ;;  %v459_v49 = vmax.f32 %v384_v44, 0.0 }
  0xd5   :  { %v412_v56 = vmax.f32 %v266_v51, 0.0  ;;  %v428_v57 = vmax.f32 %v306_v52, 0.0 }
  0xd6   :  { %v491_v50 = vmax.f32 %v443_v48, %v459_v49 }
  0xd7   :  { %v476_v2 = vmax.f32 %v412_v56, %v428_v57 }
  0xd8   :  { %v507_v53 = vmax.f32 %v475_v47, %v491_v50 }
  0xd9   :  { %v345_v54 = vpop.f32.mrf.mxu2  ;;  %v385_v55 = vpop.f32.mrf.mxu3 }
  0xda   :  { %524 = vst.msk [vmem:[%s976_s3 + $0x40] sm:$0xff] %vm515_vm3, %v507_v53  ;;  %v346_v58 = vadd.f32 %v843_v40, %v345_v54  ;;  %v386_v59 = vadd.f32 %v843_v40, %v385_v55  ;;  %v268_v60 = vpop.f32.mrf.mxu0  ;;  %v308_v61 = vpop.f32.mrf.mxu1 }
  0xdb   :  { %v269_v0 = vadd.f32 %v843_v40, %v268_v60  ;;  %v309_v1 = vadd.f32 %v843_v40, %v308_v61 }
  0xdc   :  { %v444_v62 = vmax.f32 %v346_v58, 0.0  ;;  %v460_v63 = vmax.f32 %v386_v59, 0.0 }
  0xdd   :  { %v413_v5 = vmax.f32 %v269_v0, 0.0  ;;  %v429_v6 = vmax.f32 %v309_v1, 0.0 }
  0xde   :  { %v492_v3 = vmax.f32 %v444_v62, %v460_v63 }
  0xdf   :  { %v477_v13 = vmax.f32 %v413_v5, %v429_v6 }
  0xe0   :  { %v508_v4 = vmax.f32 %v476_v2, %v492_v3 }
  0xe1   :  { %v348_v7 = vpop.f32.mrf.mxu2  ;;  %v388_v8 = vpop.f32.mrf.mxu3 }
  0xe2   :  { %525 = vst.msk [vmem:[%s976_s3 + $0x48] sm:$0xff] %vm515_vm3, %v508_v4  ;;  %v349_v9 = vadd.f32 %v843_v40, %v348_v7  ;;  %v389_v10 = vadd.f32 %v843_v40, %v388_v8  ;;  %v270_v11 = vpop.f32.mrf.mxu0  ;;  %v310_v12 = vpop.f32.mrf.mxu1 }
  0xe3   :  { %v271_v17 = vadd.f32 %v843_v40, %v270_v11  ;;  %v311_v18 = vadd.f32 %v843_v40, %v310_v12 }
  0xe4   :  { %v445_v14 = vmax.f32 %v349_v9, 0.0  ;;  %v461_v15 = vmax.f32 %v389_v10, 0.0 }
  0xe5   :  { %v414_v22 = vmax.f32 %v271_v17, 0.0  ;;  %v430_v23 = vmax.f32 %v311_v18, 0.0 }
  0xe6   :  { %v493_v16 = vmax.f32 %v445_v14, %v461_v15 }
  0xe7   :  { %v478_v32 = vmax.f32 %v414_v22, %v430_v23 }
  0xe8   :  { %v509_v19 = vmax.f32 %v477_v13, %v493_v16 }
  0xe9   :  { %v350_v20 = vpop.f32.mrf.mxu2  ;;  %v390_v21 = vpop.f32.mrf.mxu3 }
  0xea   :  { %526 = vst.msk [vmem:[%s976_s3 + $0x50] sm:$0xff] %vm515_vm3, %v509_v19  ;;  %v351_v24 = vadd.f32 %v843_v40, %v350_v20  ;;  %v391_v25 = vadd.f32 %v843_v40, %v390_v21  ;;  %v273_v26 = vpop.f32.mrf.mxu0  ;;  %v313_v27 = vpop.f32.mrf.mxu1 }
  0xeb   :  { %v274_v30 = vadd.f32 %v843_v40, %v273_v26  ;;  %v314_v31 = vadd.f32 %v843_v40, %v313_v27 }
  0xec   :  { %v446_v28 = vmax.f32 %v351_v24, 0.0  ;;  %v462_v29 = vmax.f32 %v391_v25, 0.0 }
  0xed   :  { %v415_v35 = vmax.f32 %v274_v30, 0.0  ;;  %v431_v36 = vmax.f32 %v314_v31, 0.0 }
  0xee   :  { %v494_v33 = vmax.f32 %v446_v28, %v462_v29 }
  0xef   :  { %v479_v44 = vmax.f32 %v415_v35, %v431_v36 }
  0xf0   :  { %v510_v34 = vmax.f32 %v478_v32, %v494_v33 }
  0xf1   :  { %v353_v37 = vpop.f32.mrf.mxu2  ;;  %v393_v38 = vpop.f32.mrf.mxu3 }
  0xf2   :  { %527 = vst.msk [vmem:[%s976_s3 + $0x58] sm:$0xff] %vm515_vm3, %v510_v34  ;;  %v354_v39 = vadd.f32 %v843_v40, %v353_v37  ;;  %v394_v41 = vadd.f32 %v843_v40, %v393_v38  ;;  %v275_v42 = vpop.f32.mrf.mxu0  ;;  %v315_v43 = vpop.f32.mrf.mxu1 }
  0xf3   :  { %v276_v48 = vadd.f32 %v843_v40, %v275_v42  ;;  %v316_v49 = vadd.f32 %v843_v40, %v315_v43 }
  0xf4   :  { %v447_v45 = vmax.f32 %v354_v39, 0.0  ;;  %v463_v46 = vmax.f32 %v394_v41, 0.0 }
  0xf5   :  { %v416_v53 = vmax.f32 %v276_v48, 0.0  ;;  %v432_v54 = vmax.f32 %v316_v49, 0.0 }
  0xf6   :  { %v495_v47 = vmax.f32 %v447_v45, %v463_v46 }
  0xf7   :  { %v480_v63 = vmax.f32 %v416_v53, %v432_v54 }
  0xf8   :  { %v511_v50 = vmax.f32 %v479_v44, %v495_v47 }
  0xf9   :  { %v355_v51 = vpop.f32.mrf.mxu2  ;;  %v395_v52 = vpop.f32.mrf.mxu3 }
  0xfa   :  { %528 = vst.msk [vmem:[%s976_s3 + $0x60] sm:$0xff] %vm515_vm3, %v511_v50  ;;  %v356_v55 = vadd.f32 %v843_v40, %v355_v51  ;;  %v396_v56 = vadd.f32 %v843_v40, %v395_v52  ;;  %v278_v57 = vpop.f32.mrf.mxu0  ;;  %v318_v58 = vpop.f32.mrf.mxu1 }
  0xfb   :  { %v279_v61 = vadd.f32 %v843_v40, %v278_v57  ;;  %v319_v62 = vadd.f32 %v843_v40, %v318_v58 }
  0xfc   :  { %v448_v59 = vmax.f32 %v356_v55, 0.0  ;;  %v464_v60 = vmax.f32 %v396_v56, 0.0 }
  0xfd   :  { %v417_v2 = vmax.f32 %v279_v61, 0.0  ;;  %v433_v3 = vmax.f32 %v319_v62, 0.0 }
  0xfe   :  { %v496_v0 = vmax.f32 %v448_v59, %v464_v60 }
  0xff   :  { %v481_v10 = vmax.f32 %v417_v2, %v433_v3 }
 0x100   :  { %v512_v1 = vmax.f32 %v480_v63, %v496_v0 }
 0x101   :  { %v358_v4 = vpop.f32.mrf.mxu2  ;;  %v398_v5 = vpop.f32.mrf.mxu3 }
 0x102   :  { %529 = vst.msk [vmem:[%s976_s3 + $0x68] sm:$0xff] %vm515_vm3, %v512_v1  ;;  %v359_v6 = vadd.f32 %v843_v40, %v358_v4  ;;  %v399_v7 = vadd.f32 %v843_v40, %v398_v5  ;;  %v280_v8 = vpop.f32.mrf.mxu0  ;;  %v320_v9 = vpop.f32.mrf.mxu1 }
 0x103   :  { %v281_v14 = vadd.f32 %v843_v40, %v280_v8  ;;  %v321_v15 = vadd.f32 %v843_v40, %v320_v9 }
 0x104   :  { %v449_v11 = vmax.f32 %v359_v6, 0.0  ;;  %v465_v12 = vmax.f32 %v399_v7, 0.0 }
 0x105   :  { %v418_v19 = vmax.f32 %v281_v14, 0.0  ;;  %v434_v20 = vmax.f32 %v321_v15, 0.0 }
 0x106   :  { %v497_v13 = vmax.f32 %v449_v11, %v465_v12 }
 0x107   :  { %v482_v25 = vmax.f32 %v418_v19, %v434_v20 }
 0x108   :  { %v513_v16 = vmax.f32 %v481_v10, %v497_v13 }
 0x109   :  { %v360_v17 = vpop.f32.mrf.mxu2  ;;  %v400_v18 = vpop.f32.mrf.mxu3 }
 0x10a   :  { %530 = vst.msk [vmem:[%s976_s3 + $0x70] sm:$0xff] %vm515_vm3, %v513_v16  ;;  %v361_v21 = vadd.f32 %v843_v40, %v360_v17  ;;  %v401_v22 = vadd.f32 %v843_v40, %v400_v18 }
 0x10c   :  { %v450_v23 = vmax.f32 %v361_v21, 0.0  ;;  %v466_v24 = vmax.f32 %v401_v22, 0.0 }
 0x10e   :  { %v498_v26 = vmax.f32 %v450_v23, %v466_v24 }
 0x110   :  { %v514_v27 = vmax.f32 %v482_v25, %v498_v26 }
 0x112   :  { %531 = vst.msk [vmem:[%s976_s3 + $0x78] sm:$0xff] %vm515_vm3, %v514_v27 }

// kernel: forward.5
= control target key start
LH: loop header
LB: loop body
LE: loop exit
PB: predicated region body
PF: predicated region fallthrough
CT: control target
= control target key end

     0   :  { %vm139_vm0 = vcmask 130048   ;;  %vm290_vm1 = vcmask 261120   ;;  %s562_s1 = inlined_call_operand.vmem [shape: bf16[144,32], index: 1, kind: input, shape index: {}]   ;;  %s563_s0 = inlined_call_operand.vmem [shape: f32[128,144], index: 0, kind: input, shape index: {}]   ;;  %s564_s2 = inlined_call_operand.vmem [shape: f32[1,32], index: 2, kind: input, shape index: {}]   ;;  %s565_s3 = inlined_call_operand.vmem [shape: f32[32,32], index: 3, kind: output, shape index: {}]  }
   0x1   :  { %v350_v0 = vld [vmem:[%s562_s1 + $0x38] sm:$0xff]  ;;  %v351_v1 = vld [vmem:[%s562_s1 + $0x40] sm:$0xff]  ;;  %v16_v2 = vld [vmem:[%s563_s0 + $0x8] sm:$0xff] }
   0x2   :  { %v18_v3 = vld [vmem:[%s563_s0 + $0x18] sm:$0xff]  ;;  %164 = vmatpush.bf16.msra.mxu0 %v350_v0  ;;  %352 = vmatpush.bf16.msra.mxu2 %v350_v0  ;;  %v349_v5 = vld [vmem:[%s562_s1 + $0x30] sm:$0xff]  ;;  %v348_v6 = vld [vmem:[%s562_s1 + $0x28] sm:$0xff] }
   0x3   :  { %v48_v4 = vpack.c.bf16 %v18_v3, %v16_v2  ;;  %220 = vmatpush.bf16.msra.mxu1 %v351_v1  ;;  %360 = vmatpush.bf16.msra.mxu3 %v351_v1  ;;  %v36_v7 = vld [vmem:[%s563_s0 + $0xa8] sm:$0xff]  ;;  %v38_v8 = vld [vmem:[%s563_s0 + $0xb8] sm:$0xff]  ;;  %v347_v10 = vld [vmem:[%s562_s1 + $0x20] sm:$0xff] }
   0x4   :  { %v58_v9 = vpack.c.bf16 %v38_v8, %v36_v7  ;;  %v346_v11 = vld [vmem:[%s562_s1 + $0x18] sm:$0xff]  ;;  %v20_v12 = vld [vmem:[%s563_s0 + $0x28] sm:$0xff]  ;;  %v345_v15 = vld [vmem:[%s562_s1 + $0x10] sm:$0xff] }
   0x5   :  { %v22_v13 = vld [vmem:[%s563_s0 + $0x38] sm:$0xff]  ;;  %v344_v16 = vld [vmem:[%s562_s1 + $0x8] sm:$0xff]  ;;  %v343_v20 = vld [vmem:[%s562_s1] sm:$0xff] }
   0x6   :  { %335 = vmatmul.msk.bf16.vlgmr.msra.gmra.mxu1 %vm139_vm0, %v48_v4  ;;  %165 = vmatpush.bf16.msra.mxu0 %v349_v5  ;;  %v50_v14 = vpack.c.bf16 %v22_v13, %v20_v12  ;;  %v40_v17 = vld [vmem:[%s563_s0 + $0xc8] sm:$0xff]  ;;  %v42_v18 = vld [vmem:[%s563_s0 + $0xd8] sm:$0xff]  ;;  %v15_v21 = vld [vmem:[%s563_s0] sm:$0xff] }
   0x7   :  { %353 = vmatpush.bf16.msra.mxu2 %v349_v5  ;;  %340 = vmatmul.msk.bf16.vlgmr.msra.gmra.mxu3 %vm139_vm0, %v58_v9  ;;  %v60_v19 = vpack.c.bf16 %v42_v18, %v40_v17  ;;  %v17_v22 = vld [vmem:[%s563_s0 + $0x10] sm:$0xff]  ;;  %v31_v23 = vld [vmem:[%s563_s0 + $0x80] sm:$0xff]  ;;  %v24_v27 = vld [vmem:[%s563_s0 + $0x48] sm:$0xff] }
   0x8   :  { %v33_v24 = vld [vmem:[%s563_s0 + $0x90] sm:$0xff]  ;;  %v47_v25 = vpack.c.bf16 %v17_v22, %v15_v21  ;;  %v26_v28 = vld [vmem:[%s563_s0 + $0x58] sm:$0xff]  ;;  %v44_v30 = vld [vmem:[%s563_s0 + $0xe8] sm:$0xff] }
   0x9   :  { %v55_v26 = vpack.c.bf16 %v33_v24, %v31_v23  ;;  %v52_v29 = vpack.c.bf16 %v26_v28, %v24_v27  ;;  %v46_v31 = vld [vmem:[%s563_s0 + $0xf8] sm:$0xff]  ;;  %v19_v33 = vld [vmem:[%s563_s0 + $0x20] sm:$0xff]  ;;  %v21_v34 = vld [vmem:[%s563_s0 + $0x30] sm:$0xff] }
   0xa   :  { %166 = vmatpush.bf16.msra.mxu0 %v348_v6  ;;  %v62_v32 = vpack.c.bf16 %v46_v31, %v44_v30  ;;  %v35_v35 = vld [vmem:[%s563_s0 + $0xa0] sm:$0xff]  ;;  %v37_v36 = vld [vmem:[%s563_s0 + $0xb0] sm:$0xff]  ;;  %v49_v37 = vpack.c.bf16 %v21_v34, %v19_v33  ;;  %v28_v39 = vld [vmem:[%s563_s0 + $0x68] sm:$0xff] }
   0xb   :  { %354 = vmatpush.bf16.msra.mxu2 %v348_v6  ;;  %v57_v38 = vpack.c.bf16 %v37_v36, %v35_v35  ;;  %v30_v40 = vld [vmem:[%s563_s0 + $0x78] sm:$0xff]  ;;  %v23_v42 = vld [vmem:[%s563_s0 + $0x40] sm:$0xff]  ;;  %v25_v43 = vld [vmem:[%s563_s0 + $0x50] sm:$0xff] }
   0xc   :  { %v54_v41 = vpack.c.bf16 %v30_v40, %v28_v39  ;;  %v39_v44 = vld [vmem:[%s563_s0 + $0xc0] sm:$0xff]  ;;  %v41_v45 = vld [vmem:[%s563_s0 + $0xd0] sm:$0xff]  ;;  %v51_v46 = vpack.c.bf16 %v25_v43, %v23_v42  ;;  %v32_v48 = vld [vmem:[%s563_s0 + $0x88] sm:$0xff] }
   0xd   :  { %v59_v47 = vpack.c.bf16 %v41_v45, %v39_v44  ;;  %v34_v49 = vld [vmem:[%s563_s0 + $0x98] sm:$0xff]  ;;  %v27_v51 = vld [vmem:[%s563_s0 + $0x60] sm:$0xff]  ;;  %v29_v52 = vld [vmem:[%s563_s0 + $0x70] sm:$0xff] }
   0xe   :  { %167 = vmatpush.bf16.msra.mxu0 %v347_v10  ;;  %v56_v50 = vpack.c.bf16 %v34_v49, %v32_v48  ;;  %v43_v53 = vld [vmem:[%s563_s0 + $0xe0] sm:$0xff]  ;;  %v45_v54 = vld [vmem:[%s563_s0 + $0xf0] sm:$0xff]  ;;  %v53_v55 = vpack.c.bf16 %v29_v52, %v27_v51 }
   0xf   :  { %355 = vmatpush.bf16.msra.mxu2 %v347_v10  ;;  %v61_v56 = vpack.c.bf16 %v45_v54, %v43_v53 }
  0x12   :  { %168 = vmatpush.bf16.msra.mxu0 %v346_v11 }
  0x13   :  { %356 = vmatpush.bf16.msra.mxu2 %v346_v11  ;;  %v524_v11 = vld [vmem:[%s564_s2] ss:$0 sm:$0xff] }
  0x16   :  { %336 = vmatmul.msk.bf16.gmra.mxu1 %vm139_vm0, %v50_v14  ;;  %169 = vmatpush.bf16.msra.mxu0 %v345_v15 }
  0x17   :  { %357 = vmatpush.bf16.msra.mxu2 %v345_v15  ;;  %341 = vmatmul.msk.bf16.gmra.mxu3 %vm139_vm0, %v60_v19 }
  0x1a   :  { %170 = vmatpush.bf16.msra.mxu0 %v344_v16 }
  0x1b   :  { %358 = vmatpush.bf16.msra.mxu2 %v344_v16 }
  0x1e   :  { %171 = vmatpush.bf16.msra.mxu0 %v343_v20 }
  0x1f   :  { %359 = vmatpush.bf16.msra.mxu2 %v343_v20 }
  0x21   :  { %172 = vmatmul.bf16.vlgmr.msra.gmra.mxu0 %v47_v25 }
  0x22   :  { %192 = vmatmul.bf16.vlgmr.msra.gmra.mxu2 %v55_v26 }
  0x26   :  { %337 = vmatmul.msk.bf16.gmra.mxu1 %vm139_vm0, %v52_v29 }
  0x27   :  { %342 = vmatmul.msk.bf16.gmra.mxu3 %vm139_vm0, %v62_v32 }
  0x31   :  { %177 = vmatmul.bf16.gmra.mxu0 %v49_v37 }
  0x32   :  { %197 = vmatmul.bf16.gmra.mxu2 %v57_v38 }
  0x36   :  { %338 = vmatmul.msk.bf16.gmra.mxu1 %vm139_vm0, %v54_v41 }
  0x41   :  { %182 = vmatmul.bf16.gmra.mxu0 %v51_v46 }
  0x42   :  { %202 = vmatmul.bf16.gmra.mxu2 %v59_v47 }
  0x46   :  { %339 = vmatmul.msk.bf16.gmra.mxu1 %vm139_vm0, %v56_v50 }
  0x51   :  { %187 = vmatmul.bf16.gmra.mxu0 %v53_v55 }
  0x52   :  { %207 = vmatmul.bf16.gmra.mxu2 %v61_v56 }
  0x83   :  { %v222_v57 = vpop.f32.mrf.mxu1 }
  0x8a   :  { %v247_v3 = vpop.f32.mrf.mxu3 }
  0x8b   :  { %v224_v58 = vpop.f32.mrf.mxu1 }
  0x92   :  { %v517_v8 = vpop.f32.mrf.mxu3 }
  0x93   :  { %v227_v59 = vpop.f32.mrf.mxu1 }
  0x9a   :  { %v252_v14 = vpop.f32.mrf.mxu3 }
  0x9b   :  { %v513_v60 = vpop.f32.mrf.mxu1 }
  0x9e   :  { %v173_v61 = vpop.f32.mrf.mxu0 }
  0x9f   :  { %v174_v15 = vadd.f32 %v524_v11, %v173_v61 }
  0xa1   :  { %v223_v20 = vadd.f32 %v222_v57, %v174_v15 }
  0xa2   :  { %v254_v31 = vpop.f32.mrf.mxu3 }
  0xa3   :  { %v232_v62 = vpop.f32.mrf.mxu1  ;;  %v262_v27 = vmax.f32 %v223_v20, 0.0 }
  0xa5   :  { %v193_v63 = vpop.f32.mrf.mxu2 }
  0xa6   :  { %v175_v0 = vpop.f32.mrf.mxu0  ;;  %v194_v17 = vadd.f32 %v524_v11, %v193_v63 }
  0xa7   :  { %v176_v28 = vadd.f32 %v524_v11, %v175_v0 }
  0xa9   :  { %v225_v38 = vadd.f32 %v224_v58, %v176_v28 }
  0xaa   :  { %v257_v55 = vpop.f32.mrf.mxu3 }
  0xab   :  { %v234_v1 = vpop.f32.mrf.mxu1  ;;  %v263_v47 = vmax.f32 %v225_v38, 0.0 }
  0xad   :  { %v195_v2 = vpop.f32.mrf.mxu2 }
  0xae   :  { %v178_v4 = vpop.f32.mrf.mxu0  ;;  %v196_v33 = vadd.f32 %v524_v11, %v195_v2 }
  0xaf   :  { %v179_v46 = vadd.f32 %v524_v11, %v178_v4 }
  0xb1   :  { %v228_v54 = vadd.f32 %v227_v59, %v179_v46 }
  0xb3   :  { %v237_v5 = vpop.f32.mrf.mxu1  ;;  %v264_v2 = vmax.f32 %v228_v54, 0.0 }
  0xb5   :  { %v198_v6 = vpop.f32.mrf.mxu2 }
  0xb6   :  { %v515_v7 = vpop.f32.mrf.mxu0  ;;  %v199_v48 = vadd.f32 %v524_v11, %v198_v6 }
  0xb7   :  { %v181_v59 = vadd.f32 %v524_v11, %v515_v7 }
  0xb8   :  { %v248_v57 = vadd.f32 %v247_v3, %v199_v48 }
  0xb9   :  { %v230_v15 = vadd.f32 %v513_v60, %v181_v59 }
  0xba   :  { %v272_v4 = vmax.f32 %v248_v57, 0.0 }
  0xbb   :  { %v519_v9 = vpop.f32.mrf.mxu1  ;;  %v265_v20 = vmax.f32 %v230_v15, 0.0 }
  0xbd   :  { %v200_v10 = vpop.f32.mrf.mxu2 }
  0xbe   :  { %v183_v12 = vpop.f32.mrf.mxu0  ;;  %v201_v3 = vadd.f32 %v524_v11, %v200_v10 }
  0xbf   :  { %v184_v13 = vadd.f32 %v524_v11, %v183_v12 }
  0xc1   :  { %v233_v18 = vadd.f32 %v232_v62, %v184_v13 }
  0xc3   :  { %v242_v16 = vpop.f32.mrf.mxu1  ;;  %v266_v24 = vmax.f32 %v233_v18, 0.0 }
  0xc4   :  { %v243_v21 = vadd.f32 %v242_v16, %v194_v17  ;;  %v250_v16 = vadd.f32 %v517_v8, %v201_v3 }
  0xc5   :  { %v203_v19 = vpop.f32.mrf.mxu2  ;;  %v278_v34 = vmax.f32 %v262_v27, %v266_v24 }
  0xc6   :  { %v204_v22 = vadd.f32 %v524_v11, %v203_v19  ;;  %v185_v23 = vpop.f32.mrf.mxu0  ;;  %v270_v29 = vmax.f32 %v243_v21, 0.0  ;;  %v259_v19 = vpop.f32.mrf.mxu3  ;;  %v273_v21 = vmax.f32 %v250_v16, 0.0 }
  0xc7   :  { %v186_v26 = vadd.f32 %v524_v11, %v185_v23 }
  0xc8   :  { %v253_v25 = vadd.f32 %v252_v14, %v204_v22 }
  0xc9   :  { %v235_v36 = vadd.f32 %v234_v1, %v186_v26 }
  0xca   :  { %v274_v30 = vmax.f32 %v253_v25, 0.0 }
  0xcb   :  { %v244_v32 = vpop.f32.mrf.mxu1  ;;  %v267_v43 = vmax.f32 %v235_v36, 0.0 }
  0xcc   :  { %v282_v35 = vmax.f32 %v270_v29, %v274_v30  ;;  %v245_v40 = vadd.f32 %v244_v32, %v196_v33 }
  0xcd   :  { %v205_v37 = vpop.f32.mrf.mxu2  ;;  %v279_v51 = vmax.f32 %v263_v47, %v267_v43 }
  0xce   :  { %v286_v39 = vmax.f32 %v278_v34, %v282_v35  ;;  %v206_v41 = vadd.f32 %v524_v11, %v205_v37  ;;  %v188_v42 = vpop.f32.mrf.mxu0  ;;  %v271_v49 = vmax.f32 %v245_v40, 0.0 }
  0xcf   :  { %v189_v45 = vadd.f32 %v524_v11, %v188_v42 }
  0xd0   :  { %291 = vst.msk [vmem:[%s565_s3] sm:$0xff] %vm290_vm1, %v286_v39  ;;  %v255_v44 = vadd.f32 %v254_v31, %v206_v41 }
  0xd1   :  { %v238_v53 = vadd.f32 %v237_v5, %v189_v45 }
  0xd2   :  { %v275_v50 = vmax.f32 %v255_v44, 0.0 }
  0xd3   :  { %v268_v63 = vmax.f32 %v238_v53, 0.0 }
  0xd4   :  { %v283_v52 = vmax.f32 %v271_v49, %v275_v50 }
  0xd5   :  { %v208_v56 = vpop.f32.mrf.mxu2  ;;  %v280_v6 = vmax.f32 %v264_v2, %v268_v63 }
  0xd6   :  { %v287_v58 = vmax.f32 %v279_v51, %v283_v52  ;;  %v209_v61 = vadd.f32 %v524_v11, %v208_v56  ;;  %v190_v62 = vpop.f32.mrf.mxu0 }
  0xd7   :  { %v191_v1 = vadd.f32 %v524_v11, %v190_v62 }
  0xd8   :  { %292 = vst.msk [vmem:[%s565_s3 + $0x8] sm:$0xff] %vm290_vm1, %v287_v58  ;;  %v258_v0 = vadd.f32 %v257_v55, %v209_v61 }
  0xd9   :  { %v240_v13 = vadd.f32 %v519_v9, %v191_v1 }
  0xda   :  { %v276_v5 = vmax.f32 %v258_v0, 0.0 }
  0xdb   :  { %v269_v7 = vmax.f32 %v240_v13, 0.0 }
  0xdc   :  { %v284_v12 = vmax.f32 %v272_v4, %v276_v5 }
  0xdd   :  { %v210_v14 = vpop.f32.mrf.mxu2  ;;  %v281_v9 = vmax.f32 %v265_v20, %v269_v7 }
  0xde   :  { %v288_v17 = vmax.f32 %v280_v6, %v284_v12  ;;  %v211_v18 = vadd.f32 %v524_v11, %v210_v14 }
  0xe0   :  { %293 = vst.msk [vmem:[%s565_s3 + $0x10] sm:$0xff] %vm290_vm1, %v288_v17  ;;  %v260_v10 = vadd.f32 %v259_v19, %v211_v18 }
  0xe2   :  { %v277_v22 = vmax.f32 %v260_v10, 0.0 }
  0xe4   :  { %v285_v23 = vmax.f32 %v273_v21, %v277_v22 }
  0xe6   :  { %v289_v24 = vmax.f32 %v281_v9, %v285_v23 }
  0xe8   :  { %294 = vst.msk [vmem:[%s565_s3 + $0x18] sm:$0xff] %vm290_vm1, %v289_v24 }

// kernel: forward.6
= control target key start
LH: loop header
LB: loop body
LE: loop exit
PB: predicated region body
PF: predicated region fallthrough
CT: control target
= control target key end

     0   :  { %vm181_vm0 = vcmask 261120   ;;  %vm252_vm1 = vcmask 523264   ;;  %s477_s1 = inlined_call_operand.vmem [shape: bf16[288,64], index: 1, kind: input, shape index: {}]   ;;  %s478_s0 = inlined_call_operand.vmem [shape: f32[32,288], index: 0, kind: input, shape index: {}]   ;;  %s479_s2 = inlined_call_operand.vmem [shape: f32[1,64], index: 2, kind: input, shape index: {}]   ;;  %s480_s3 = inlined_call_operand.vmem [shape: f32[8,64], index: 3, kind: output, shape index: {}]  }
   0x1   :  { %v339_v0 = vld [vmem:[%s477_s1 + $0x38] sm:$0xff]  ;;  %v338_v2 = vld [vmem:[%s477_s1 + $0x30] sm:$0xff]  ;;  %v349_v3 = vld [vmem:[%s477_s1 + $0x88] sm:$0xff] }
   0x2   :  { %v347_v1 = vld [vmem:[%s477_s1 + $0x78] sm:$0xff]  ;;  %188 = vmatpush.bf16.msra.mxu0 %v339_v0  ;;  %350 = vmatpush.bf16.msra.mxu3 %v339_v0  ;;  %v346_v4 = vld [vmem:[%s477_s1 + $0x70] sm:$0xff]  ;;  %v348_v5 = vld [vmem:[%s477_s1 + $0x80] sm:$0xff] }
   0x3   :  { %207 = vmatpush.bf16.msra.mxu1 %v347_v1  ;;  %232 = vmatpush.bf16.msra.mxu2 %v349_v3  ;;  %v17_v6 = vld [vmem:[%s478_s0 + $0x10] sm:$0xff]  ;;  %v20_v7 = vld [vmem:[%s478_s0 + $0x28] sm:$0xff]  ;;  %v336_v11 = vld [vmem:[%s477_s1 + $0x20] sm:$0xff] }
   0x4   :  { %v337_v8 = vld [vmem:[%s477_s1 + $0x28] sm:$0xff]  ;;  %v29_v10 = vpack.c.bf16 %v20_v7, %v17_v6  ;;  %v344_v12 = vld [vmem:[%s477_s1 + $0x60] sm:$0xff]  ;;  %v335_v13 = vld [vmem:[%s477_s1 + $0x18] sm:$0xff] }
   0x5   :  { %v345_v9 = vld [vmem:[%s477_s1 + $0x68] sm:$0xff]  ;;  %v343_v14 = vld [vmem:[%s477_s1 + $0x58] sm:$0xff]  ;;  %v334_v15 = vld [vmem:[%s477_s1 + $0x10] sm:$0xff] }
   0x6   :  { %189 = vmatpush.bf16.msra.mxu0 %v338_v2  ;;  %351 = vmatpush.bf16.msra.mxu3 %v338_v2  ;;  %v342_v16 = vld [vmem:[%s477_s1 + $0x50] sm:$0xff]  ;;  %v23_v17 = vld [vmem:[%s478_s0 + $0x40] sm:$0xff]  ;;  %v26_v18 = vld [vmem:[%s478_s0 + $0x58] sm:$0xff] }
   0x7   :  { %208 = vmatpush.bf16.msra.mxu1 %v346_v4  ;;  %233 = vmatpush.bf16.msra.mxu2 %v348_v5  ;;  %v333_v19 = vld [vmem:[%s477_s1 + $0x8] sm:$0xff]  ;;  %v32_v21 = vpack.c.bf16 %v26_v18, %v23_v17  ;;  %v332_v22 = vld [vmem:[%s477_s1] sm:$0xff]  ;;  %v18_v24 = vld [vmem:[%s478_s0 + $0x18] sm:$0xff] }
   0x8   :  { %v341_v20 = vld [vmem:[%s477_s1 + $0x48] sm:$0xff]  ;;  %v15_v23 = vld [vmem:[%s478_s0] sm:$0xff]  ;;  %v21_v25 = vld [vmem:[%s478_s0 + $0x30] sm:$0xff] }
   0x9   :  { %v24_v26 = vld [vmem:[%s478_s0 + $0x48] sm:$0xff]  ;;  %v340_v27 = vld [vmem:[%s477_s1 + $0x40] sm:$0xff]  ;;  %v27_v30 = vpack.c.bf16 %v18_v24, %v15_v23  ;;  %v22_v33 = vld [vmem:[%s478_s0 + $0x38] sm:$0xff] }
   0xa   :  { %190 = vmatpush.bf16.msra.mxu0 %v337_v8  ;;  %352 = vmatpush.bf16.msra.mxu3 %v337_v8  ;;  %v16_v28 = vld [vmem:[%s478_s0 + $0x8] sm:$0xff]  ;;  %v19_v29 = vld [vmem:[%s478_s0 + $0x20] sm:$0xff]  ;;  %v30_v31 = vpack.c.bf16 %v24_v26, %v21_v25  ;;  %v25_v34 = vld [vmem:[%s478_s0 + $0x50] sm:$0xff] }
   0xb   :  { %209 = vmatpush.bf16.msra.mxu1 %v345_v9  ;;  %330 = vmatmul.msk.bf16.vlgmr.msra.gmra.mxu2 %vm181_vm0, %v29_v10  ;;  %v28_v32 = vpack.c.bf16 %v19_v29, %v16_v28  ;;  %v31_v35 = vpack.c.bf16 %v25_v34, %v22_v33  ;;  %v358_v43 = vld [vmem:[%s479_s2] ss:$0 sm:$0xff] }
   0xe   :  { %191 = vmatpush.bf16.msra.mxu0 %v336_v11  ;;  %353 = vmatpush.bf16.msra.mxu3 %v336_v11 }
   0xf   :  { %210 = vmatpush.bf16.msra.mxu1 %v344_v12 }
  0x12   :  { %192 = vmatpush.bf16.msra.mxu0 %v335_v13  ;;  %354 = vmatpush.bf16.msra.mxu3 %v335_v13 }
  0x13   :  { %211 = vmatpush.bf16.msra.mxu1 %v343_v14 }
  0x16   :  { %193 = vmatpush.bf16.msra.mxu0 %v334_v15  ;;  %355 = vmatpush.bf16.msra.mxu3 %v334_v15 }
  0x17   :  { %212 = vmatpush.bf16.msra.mxu1 %v342_v16 }
  0x1a   :  { %194 = vmatpush.bf16.msra.mxu0 %v333_v19  ;;  %356 = vmatpush.bf16.msra.mxu3 %v333_v19 }
  0x1b   :  { %213 = vmatpush.bf16.msra.mxu1 %v341_v20  ;;  %331 = vmatmul.msk.bf16.gmra.mxu2 %vm181_vm0, %v32_v21 }
  0x1e   :  { %195 = vmatpush.bf16.msra.mxu0 %v332_v22  ;;  %357 = vmatpush.bf16.msra.mxu3 %v332_v22 }
  0x1f   :  { %214 = vmatpush.bf16.msra.mxu1 %v340_v27 }
  0x21   :  { %196 = vmatmul.bf16.vlgmr.msra.gmra.mxu0 %v27_v30  ;;  %201 = vmatmul.bf16.vlgmr.msra.gmra.mxu3 %v30_v31 }
  0x22   :  { %215 = vmatmul.bf16.vlgmr.msra.gmra.mxu1 %v28_v32 }
  0x32   :  { %220 = vmatmul.bf16.gmra.mxu1 %v31_v35 }
  0x8e   :  { %v235_v36 = vpop.f32.mrf.mxu2 }
  0x96   :  { %v237_v39 = vpop.f32.mrf.mxu2 }
  0x9e   :  { %v197_v38 = vpop.f32.mrf.mxu0  ;;  %v240_v45 = vpop.f32.mrf.mxu2 }
  0x9f   :  { %v216_v37 = vpop.f32.mrf.mxu1  ;;  %v198_v47 = vadd.f32 %v358_v43, %v197_v38 }
  0xa1   :  { %v217_v51 = vadd.f32 %v216_v37, %v198_v47 }
  0xa3   :  { %v236_v56 = vadd.f32 %v235_v36, %v217_v51 }
  0xa4   :  { %v202_v41 = vpop.f32.mrf.mxu3 }
  0xa5   :  { %v203_v48 = vadd.f32 %v358_v43, %v202_v41  ;;  %v245_v62 = vmax.f32 %v236_v56, 0.0 }
  0xa6   :  { %v199_v42 = vpop.f32.mrf.mxu0  ;;  %v242_v59 = vpop.f32.mrf.mxu2 }
  0xa7   :  { %v218_v40 = vpop.f32.mrf.mxu1  ;;  %v200_v44 = vadd.f32 %v358_v43, %v199_v42 }
  0xa9   :  { %v219_v49 = vadd.f32 %v218_v40, %v200_v44 }
  0xab   :  { %v238_v53 = vadd.f32 %v237_v39, %v219_v49 }
  0xac   :  { %v204_v50 = vpop.f32.mrf.mxu3 }
  0xad   :  { %v205_v54 = vadd.f32 %v358_v43, %v204_v50  ;;  %v246_v60 = vmax.f32 %v238_v53, 0.0 }
  0xaf   :  { %v221_v46 = vpop.f32.mrf.mxu1  ;;  %v249_v1 = vmax.f32 %v245_v62, %v246_v60 }
  0xb0   :  { %v222_v52 = vadd.f32 %v221_v46, %v203_v48 }
  0xb2   :  { %v241_v57 = vadd.f32 %v240_v45, %v222_v52 }
  0xb4   :  { %v247_v63 = vmax.f32 %v241_v57, 0.0 }
  0xb7   :  { %v223_v55 = vpop.f32.mrf.mxu1 }
  0xb8   :  { %v224_v58 = vadd.f32 %v223_v55, %v205_v54 }
  0xba   :  { %v243_v61 = vadd.f32 %v242_v59, %v224_v58 }
  0xbc   :  { %v248_v0 = vmax.f32 %v243_v61, 0.0 }
  0xbe   :  { %v250_v2 = vmax.f32 %v247_v63, %v248_v0 }
  0xc0   :  { %v251_v3 = vmax.f32 %v249_v1, %v250_v2 }
  0xc2   :  { %253 = vst.msk [vmem:[%s480_s3] sm:$0xff] %vm252_vm1, %v251_v3 }

// kernel: forward.7
= control target key start
LH: loop header
LB: loop body
LE: loop exit
PB: predicated region body
PF: predicated region fallthrough
CT: control target
= control target key end

     0   :  { %vm374_vm0 = vcmask 523264   ;;  %vm686_vm1 = vcmask 261120   ;;  %s4081_s23 = smov 96   ;;  %vm714_vm2 = vcmask 64512   ;;  %vm444_vm3 = vcmask 1043456   ;;  %s5290_s1 = inlined_call_operand.vmem [shape: bf16[576,128], index: 1, kind: input, shape index: {}]   ;;  %s5291_s4 = inlined_call_operand.vmem [shape: bf16[128,384], index: 4, kind: input, shape index: {}]   ;;  %s5292_s2 = inlined_call_operand.vmem [shape: f32[1,128], index: 2, kind: input, shape index: {}]   ;;  %s5293_s0 = inlined_call_operand.vmem [shape: f32[8,576], index: 0, kind: input, shape index: {}]   ;;  %s5294_s3 = inlined_call_operand.vmem [shape: f32[16,128], index: 3, kind: input, shape index: {}]   ;;  %s5295_s5 = inlined_call_operand.vmem [shape: f32[1,384], index: 5, kind: input, shape index: {}]   ;;  %s5296_s10 = inlined_call_operand.vmem [shape: bf16[128,256], index: 10, kind: input, shape index: {}]   ;;  %s5297_s6 = inlined_call_operand.vmem [shape: bf16[128,128], index: 6, kind: input, shape index: {}]   ;;  %s5298_s11 = inlined_call_operand.vmem [shape: f32[1,256], index: 11, kind: input, shape index: {}]   ;;  %s5299_s8 = inlined_call_operand.vmem [shape: bf16[128,128], index: 8, kind: input, shape index: {}]   ;;  %s5300_s7 = inlined_call_operand.vmem [shape: f32[1,128], index: 7, kind: input, shape index: {}]   ;;  %s5301_s14 = inlined_call_operand.vmem [shape: f32[3,128], index: 14, kind: input, shape index: {}]   ;;  %s5302_s15 = inlined_call_operand.vmem [shape: f32[3,128], index: 15, kind: input, shape index: {}]   ;;  %s5303_s9 = inlined_call_operand.vmem [shape: f32[1,128], index: 9, kind: input, shape index: {}]   ;;  %s5304_s12 = inlined_call_operand.vmem [shape: bf16[128,128], index: 12, kind: input, shape index: {}]   ;;  %s5305_s13 = inlined_call_operand.vmem [shape: f32[1,128], index: 13, kind: input, shape index: {}]   ;;  %s5306_s16 = inlined_call_operand.vmem [shape: bf16[128,512], index: 16, kind: input, shape index: {}]   ;;  %s5307_s18 = inlined_call_operand.vmem [shape: bf16[512,128], index: 18, kind: input, shape index: {}]   ;;  %s5308_s17 = inlined_call_operand.vmem [shape: f32[1,512], index: 17, kind: input, shape index: {}]   ;;  %s5309_s19 = inlined_call_operand.vmem [shape: f32[1,128], index: 19, kind: input, shape index: {}]   ;;  %s5310_s21 = inlined_call_operand.vmem [shape: f32[1,128], index: 21, kind: input, shape index: {}]   ;;  %s5311_s20 = inlined_call_operand.vmem [shape: bf16[128,128], index: 20, kind: input, shape index: {}]   ;;  %s5312_s22 = inlined_call_operand.vmem [shape: f32[16,128], index: 22, kind: output, shape index: {}]  }
   0x1   :  { %5318 = sst [smem:[#allocation2_spill]] %s5290_s1  ;;  %vm471_vm5 = vcmask 1040384   ;;  %vm1638_vm6 = vcmask 1041408   ;;  %vm962_vm7 = vcmask 785408   ;;  %vm1622_vm15 = vcmask 80896  }
   0x2   :  { %5319 = sst [smem:[#allocation3_spill]] %s5291_s4  ;;  %s4082_s4 = smov 32  }
   0x3   :  { %5320 = sst [smem:[#allocation4_spill]] %s5292_s2 }
   0x4   :  { %5321 = sst [smem:[#allocation5_spill]] %s5293_s0 }
   0x5   :  { %5322 = sst [smem:[#allocation6_spill]] %s5294_s3 }
   0x6   :  { %5323 = sst [smem:[#allocation7_spill]] %s5295_s5 }
   0x7   :  { %5324 = sst [smem:[#allocation8_spill]] %s5296_s10 }
   0x8   :  { %s5325_s29 = sld [smem:[#allocation2_spill]] }
   0x9   :  { %s5326_s2 = sld [smem:[#allocation3_spill]] }
   0xa   :  { %s5327_s26 = sld [smem:[#allocation5_spill]] }
   0xb   :  { %s5328_s1 = sld [smem:[#allocation6_spill]] }
   0xc   :  { %s5329_s28 = sld [smem:[#allocation4_spill]] }
   0xd   :  { %s5330_s3 = sld [smem:[#allocation7_spill]] }
   0xe   :  { %v3788_v0 = vld [vmem:[%s5325_s29 + $0x38] sm:$0xff]  ;;  %v3787_v2 = vld [vmem:[%s5325_s29 + $0x30] sm:$0xff]  ;;  %v3786_v8 = vld [vmem:[%s5325_s29 + $0x28] sm:$0xff]  ;;  %s5331_s10 = sld [smem:[#allocation8_spill]] }
   0xf   :  { %v3804_v1 = vld [vmem:[%s5325_s29 + $0xb8] sm:$0xff]  ;;  %378 = vmatpush.bf16.msra.mxu0 %v3788_v0  ;;  %v3803_v3 = vld [vmem:[%s5325_s29 + $0xb0] sm:$0xff]  ;;  %v3802_v9 = vld [vmem:[%s5325_s29 + $0xa8] sm:$0xff] }
  0x10   :  { %404 = vmatpush.bf16.msra.mxu2 %v3804_v1  ;;  %v3812_v4 = vld [vmem:[%s5325_s29 + $0xf8] sm:$0xff]  ;;  %v3811_v6 = vld [vmem:[%s5325_s29 + $0xf0] sm:$0xff]  ;;  %v3810_v10 = vld [vmem:[%s5325_s29 + $0xe8] sm:$0xff] }
  0x11   :  { %v3796_v5 = vld [vmem:[%s5325_s29 + $0x78] sm:$0xff]  ;;  %417 = vmatpush.bf16.msra.mxu3 %v3812_v4  ;;  %v3795_v7 = vld [vmem:[%s5325_s29 + $0x70] sm:$0xff]  ;;  %v3794_v11 = vld [vmem:[%s5325_s29 + $0x68] sm:$0xff] }
  0x12   :  { %391 = vmatpush.bf16.msra.mxu1 %v3796_v5  ;;  %v3785_v12 = vld [vmem:[%s5325_s29 + $0x20] sm:$0xff]  ;;  %v3784_v16 = vld [vmem:[%s5325_s29 + $0x18] sm:$0xff]  ;;  %v3783_v20 = vld [vmem:[%s5325_s29 + $0x10] sm:$0xff] }
  0x13   :  { %379 = vmatpush.bf16.msra.mxu0 %v3787_v2  ;;  %v3801_v13 = vld [vmem:[%s5325_s29 + $0xa0] sm:$0xff]  ;;  %v3800_v17 = vld [vmem:[%s5325_s29 + $0x98] sm:$0xff]  ;;  %v3799_v21 = vld [vmem:[%s5325_s29 + $0x90] sm:$0xff] }
  0x14   :  { %405 = vmatpush.bf16.msra.mxu2 %v3803_v3  ;;  %v3809_v14 = vld [vmem:[%s5325_s29 + $0xe0] sm:$0xff]  ;;  %v3808_v18 = vld [vmem:[%s5325_s29 + $0xd8] sm:$0xff]  ;;  %v3807_v22 = vld [vmem:[%s5325_s29 + $0xd0] sm:$0xff] }
  0x15   :  { %418 = vmatpush.bf16.msra.mxu3 %v3811_v6  ;;  %v3793_v15 = vld [vmem:[%s5325_s29 + $0x60] sm:$0xff]  ;;  %v3792_v19 = vld [vmem:[%s5325_s29 + $0x58] sm:$0xff]  ;;  %v3791_v23 = vld [vmem:[%s5325_s29 + $0x50] sm:$0xff] }
  0x16   :  { %392 = vmatpush.bf16.msra.mxu1 %v3795_v7  ;;  %v3782_v24 = vld [vmem:[%s5325_s29 + $0x8] sm:$0xff]  ;;  %v3261_v27 = vld [vmem:[%s5326_s2 + $0xb4] sm:$0xf0]  ;;  %v3781_v30 = vld [vmem:[%s5325_s29] sm:$0xff] }
  0x17   :  { %380 = vmatpush.bf16.msra.mxu0 %v3786_v8  ;;  %v3798_v25 = vld [vmem:[%s5325_s29 + $0x88] sm:$0xff]  ;;  %v3797_v31 = vld [vmem:[%s5325_s29 + $0x80] sm:$0xff]  ;;  %v3816_v33 = vld [vmem:[%s5325_s29 + $0x118] sm:$0xff] }
  0x18   :  { %406 = vmatpush.bf16.msra.mxu2 %v3802_v9  ;;  %v3838_v26 = vld [vmem:[%s5326_s2 + $0xac] sm:$0xf]  ;;  %v72_v32 = vld [vmem:[%s5327_s26] sm:$0xff]  ;;  %v74_v34 = vld [vmem:[%s5327_s26 + $0x10] sm:$0xff] }
  0x19   :  { %419 = vmatpush.bf16.msra.mxu3 %v3810_v10  ;;  %v3806_v28 = vld [vmem:[%s5325_s29 + $0xc8] sm:$0xff]  ;;  %v3264_v35 = vor.u32 %v3838_v26, %v3261_v27  ;;  %v3835_v36 = vld [vmem:[%s5326_s2 + $0x94] sm:$0xf]  ;;  %v3249_v39 = vld [vmem:[%s5326_s2 + $0x9c] sm:$0xf0]  ;;  %v77_v42 = vpack.c.bf16 %v72_v32, %v72_v32  ;;  %v79_v43 = vpack.c.bf16 %v74_v34, %v74_v34 }
  0x1a   :  { %393 = vmatpush.bf16.msra.mxu1 %v3794_v11  ;;  %v3790_v29 = vld [vmem:[%s5325_s29 + $0x48] sm:$0xff]  ;;  %v3839_v38 = vld [vmem:[%s5326_s2 + $0xb0] sm:$0xf0]  ;;  %v3805_v40 = vld [vmem:[%s5325_s29 + $0xc0] sm:$0xff]  ;;  %v3252_v47 = vor.u32 %v3835_v36, %v3249_v39 }
  0x1b   :  { %381 = vmatpush.bf16.msra.mxu0 %v3785_v12  ;;  %v3259_v37 = vld [vmem:[%s5326_s2 + $0xa8] sm:$0xf]  ;;  %v3789_v41 = vld [vmem:[%s5325_s29 + $0x40] sm:$0xff]  ;;  %v75_v44 = vld [vmem:[%s5327_s26 + $0x18] sm:$0xff] }
  0x1c   :  { %407 = vmatpush.bf16.msra.mxu2 %v3801_v13  ;;  %v73_v45 = vld [vmem:[%s5327_s26 + $0x8] sm:$0xff]  ;;  %v3260_v46 = vor.u32 %v3839_v38, %v3259_v37  ;;  %v3815_v48 = vld [vmem:[%s5325_s29 + $0x110] sm:$0xff]  ;;  %v3836_v50 = vld [vmem:[%s5326_s2 + $0x98] sm:$0xf0]  ;;  %v80_v53 = vpack.c.bf16 %v75_v44, %v75_v44 }
  0x1d   :  { %420 = vmatpush.bf16.msra.mxu3 %v3809_v14  ;;  %v3247_v49 = vld [vmem:[%s5326_s2 + $0x90] sm:$0xf]  ;;  %v3832_v51 = vld [vmem:[%s5326_s2 + $0x7c] sm:$0xf]  ;;  %v3237_v52 = vld [vmem:[%s5326_s2 + $0x84] sm:$0xf0]  ;;  %v78_v54 = vpack.c.bf16 %v73_v45, %v73_v45 }
  0x1e   :  { %394 = vmatpush.bf16.msra.mxu1 %v3793_v15  ;;  %v3267_v55 = vld [vmem:[%s5326_s2 + $0xb0] sm:$0xf]  ;;  %v3840_v56 = vld [vmem:[%s5326_s2 + $0xb8] sm:$0xf0]  ;;  %v3248_v57 = vor.u32 %v3836_v50, %v3247_v49  ;;  %v3255_v59 = vld [vmem:[%s5326_s2 + $0x98] sm:$0xf]  ;;  %v3240_v61 = vor.u32 %v3832_v51, %v3237_v52 }
  0x1f   :  { %382 = vmatpush.bf16.msra.mxu0 %v3784_v16  ;;  %v3268_v58 = vor.u32 %v3840_v56, %v3267_v55  ;;  %v3837_v60 = vld [vmem:[%s5326_s2 + $0xa0] sm:$0xf0]  ;;  %v3814_v62 = vld [vmem:[%s5325_s29 + $0x108] sm:$0xff]  ;;  %v3235_v63 = vld [vmem:[%s5326_s2 + $0x78] sm:$0xf] }
  0x20   :  { %408 = vmatpush.bf16.msra.mxu2 %v3800_v17  ;;  %v3833_v0 = vld [vmem:[%s5326_s2 + $0x80] sm:$0xf0]  ;;  %v3225_v2 = vld [vmem:[%s5326_s2 + $0x6c] sm:$0xf0]  ;;  %v3256_v3 = vor.u32 %v3837_v60, %v3255_v59  ;;  %v3243_v5 = vld [vmem:[%s5326_s2 + $0x80] sm:$0xf] }
  0x21   :  { %421 = vmatpush.bf16.msra.mxu3 %v3808_v18  ;;  %v3829_v1 = vld [vmem:[%s5326_s2 + $0x64] sm:$0xf]  ;;  %v3236_v4 = vor.u32 %v3833_v0, %v3235_v63  ;;  %v3834_v6 = vld [vmem:[%s5326_s2 + $0x88] sm:$0xf0]  ;;  %v3223_v9 = vld [vmem:[%s5326_s2 + $0x60] sm:$0xf] }
  0x22   :  { %395 = vmatpush.bf16.msra.mxu1 %v3792_v19  ;;  %v3228_v7 = vor.u32 %v3829_v1, %v3225_v2  ;;  %v3813_v8 = vld [vmem:[%s5325_s29 + $0x100] sm:$0xff]  ;;  %v3830_v10 = vld [vmem:[%s5326_s2 + $0x68] sm:$0xf0]  ;;  %v3213_v12 = vld [vmem:[%s5326_s2 + $0x54] sm:$0xf0]  ;;  %v3244_v13 = vor.u32 %v3834_v6, %v3243_v5 }
  0x23   :  { %383 = vmatpush.bf16.msra.mxu0 %v3783_v20  ;;  %v3826_v11 = vld [vmem:[%s5326_s2 + $0x4c] sm:$0xf]  ;;  %v76_v14 = vld [vmem:[%s5327_s26 + $0x20] sm:$0xff]  ;;  %v3224_v15 = vor.u32 %v3830_v10, %v3223_v9  ;;  %v3231_v16 = vld [vmem:[%s5326_s2 + $0x68] sm:$0xf] }
  0x24   :  { %409 = vmatpush.bf16.msra.mxu2 %v3799_v21  ;;  %v3831_v17 = vld [vmem:[%s5326_s2 + $0x70] sm:$0xf0]  ;;  %v3216_v18 = vor.u32 %v3826_v11, %v3213_v12  ;;  %v3211_v19 = vld [vmem:[%s5326_s2 + $0x48] sm:$0xf]  ;;  %v3199_v27 = vld [vmem:[%s5326_s2 + $0x30] sm:$0xf] }
  0x25   :  { %422 = vmatpush.bf16.msra.mxu3 %v3807_v22  ;;  %v3827_v20 = vld [vmem:[%s5326_s2 + $0x50] sm:$0xf0]  ;;  %v3201_v22 = vld [vmem:[%s5326_s2 + $0x3c] sm:$0xf0]  ;;  %v3821_v34 = vld [vmem:[%s5326_s2 + $0x20] sm:$0xf0] }
  0x26   :  { %396 = vmatpush.bf16.msra.mxu1 %v3791_v23  ;;  %v3823_v21 = vld [vmem:[%s5326_s2 + $0x34] sm:$0xf]  ;;  %v81_v23 = vpack.c.bf16 %v76_v14, %v76_v14  ;;  %v3177_v36 = vld [vmem:[%s5326_s2 + $0xc] sm:$0xf0]  ;;  %v4441_v37 = vld [vmem:[%s5328_s1] sm:$0xff] }
  0x27   :  { %384 = vmatpush.bf16.msra.mxu0 %v3782_v24  ;;  %v3232_v24 = vor.u32 %v3831_v17, %v3231_v16  ;;  %v3204_v26 = vor.u32 %v3823_v21, %v3201_v22  ;;  %v3219_v45 = vld [vmem:[%s5326_s2 + $0x50] sm:$0xf]  ;;  %v3825_v49 = vld [vmem:[%s5326_s2 + $0x40] sm:$0xf0]  ;;  %v3195_v51 = vld [vmem:[%s5326_s2 + $0x20] sm:$0xf] }
  0x28   :  { %410 = vmatpush.bf16.msra.mxu2 %v3798_v25  ;;  %v3212_v25 = vor.u32 %v3827_v20, %v3211_v19  ;;  %v3822_v52 = vld [vmem:[%s5326_s2 + $0x28] sm:$0xf0]  ;;  %v3819_v55 = vld [vmem:[%s5326_s2 + $0x10] sm:$0xf0]  ;;  %v4488_v9 = vld [vmem:[%s5330_s3] sm:$0x7] }
  0x29   :  { %423 = vmatpush.bf16.msra.mxu3 %v3806_v28  ;;  %v3824_v28 = vld [vmem:[%s5326_s2 + $0x38] sm:$0xf0]  ;;  %v511_v10 = vperm.slane %v4488_v9, 1  ;;  %v510_v11 = vperm.slane %v4488_v9, 0  ;;  %v512_v20 = vperm.slane %v4488_v9, 2 }
  0x2a   :  { %397 = vmatpush.bf16.msra.mxu1 %v3790_v29  ;;  %v3820_v29 = vld [vmem:[%s5326_s2 + $0x1c] sm:$0xf]  ;;  %v3391_v9 = vld [vmem:[%s5331_s10 + $0x40] sm:$0xf] }
  0x2b   :  { %385 = vmatpush.bf16.msra.mxu0 %v3781_v30  ;;  %v3189_v30 = vld [vmem:[%s5326_s2 + $0x24] sm:$0xf0] }
  0x2c   :  { %411 = vmatpush.bf16.msra.mxu2 %v3797_v31  ;;  %v3200_v31 = vor.u32 %v3824_v28, %v3199_v27  ;;  %v3192_v32 = vor.u32 %v3820_v29, %v3189_v30 }
  0x2d   :  { %424 = vmatpush.bf16.msra.mxu3 %v3805_v40  ;;  %v4446_v40 = vld [vmem:[%s5328_s1 + $0x8] sm:$0xff]  ;;  %s4080_s1 = smov 64  }
  0x2e   :  { %398 = vmatpush.bf16.msra.mxu1 %v3789_v41  ;;  %386 = vmatmul.bf16.vlgmr.msra.gmra.mxu0 %v77_v42  ;;  %v3175_v41 = vld [vmem:[%s5326_s2] sm:$0xf]  ;;  %v3818_v42 = vld [vmem:[%s5326_s2 + $0x8] sm:$0xf0] }
  0x2f   :  { %434 = vmatpush.bf16.msrb.mxu0 %v3816_v33  ;;  %412 = vmatmul.bf16.vlgmr.msra.gmra.mxu2 %v79_v43  ;;  %v3187_v33 = vld [vmem:[%s5326_s2 + $0x18] sm:$0xf]  ;;  %v475_v43 = vpack.c.bf16 %v4446_v40, %v4441_v37  ;;  %v3176_v44 = vor.u32 %v3818_v42, %v3175_v41 }
  0x30   :  { %658 = vmatpush.bf16.msrb.mxu2 %v3264_v35  ;;  %425 = vmatmul.bf16.vlgmr.msra.gmra.mxu3 %v80_v53  ;;  %v3817_v35 = vld [vmem:[%s5326_s2 + $0x4] sm:$0xf]  ;;  %v3188_v38 = vor.u32 %v3821_v34, %v3187_v33  ;;  %v3196_v53 = vor.u32 %v3822_v52, %v3195_v51 }
  0x31   :  { %399 = vmatmul.bf16.vlgmr.msra.gmra.mxu1 %v78_v54  ;;  %672 = vmatpush.bf16.msrb.mxu3 %v3268_v58  ;;  %v3180_v39 = vor.u32 %v3817_v35, %v3177_v36  ;;  %v3183_v54 = vld [vmem:[%s5326_s2 + $0x8] sm:$0xf] }
  0x32   :  { %644 = vmatpush.bf16.msrb.mxu1 %v3260_v46  ;;  %v3828_v46 = vld [vmem:[%s5326_s2 + $0x58] sm:$0xf0]  ;;  %v3184_v56 = vor.u32 %v3819_v55, %v3183_v54  ;;  %v3415_v54 = vld [vmem:[%s5331_s10 + $0x70] sm:$0xf]  ;;  %v3872_v55 = vld [vmem:[%s5331_s10 + $0x74] sm:$0xf0] }
  0x33   :  { %435 = vmatpush.bf16.msrb.mxu0 %v3815_v48  ;;  %v3220_v48 = vor.u32 %v3828_v46, %v3219_v45 }
  0x34   :  { %659 = vmatpush.bf16.msrb.mxu2 %v3252_v47  ;;  %v3207_v47 = vld [vmem:[%s5326_s2 + $0x38] sm:$0xf] }
  0x35   :  { %673 = vmatpush.bf16.msrb.mxu3 %v3256_v3  ;;  %v3208_v50 = vor.u32 %v3825_v49, %v3207_v47 }
  0x36   :  { %645 = vmatpush.bf16.msrb.mxu1 %v3248_v57  ;;  %v3988_v57 = vld [vmem:[%s5329_s28] ss:$0 sm:$0xff] }
  0x37   :  { %436 = vmatpush.bf16.msrb.mxu0 %v3814_v62 }
  0x38   :  { %660 = vmatpush.bf16.msrb.mxu2 %v3240_v61 }
  0x39   :  { %674 = vmatpush.bf16.msrb.mxu3 %v3244_v13 }
  0x3a   :  { %646 = vmatpush.bf16.msrb.mxu1 %v3236_v4 }
  0x3b   :  { %437 = vmatpush.bf16.msrb.mxu0 %v3813_v8 }
  0x3c   :  { %661 = vmatpush.bf16.msrb.mxu2 %v3228_v7 }
  0x3d   :  { %675 = vmatpush.bf16.msrb.mxu3 %v3232_v24 }
  0x3e   :  { %647 = vmatpush.bf16.msrb.mxu1 %v3224_v15  ;;  %3172 = vmatmul.msk.bf16.vlgmr.msrb.gmra.mxu0 %vm374_vm0, %v81_v23 }
  0x40   :  { %662 = vmatpush.bf16.msrb.mxu2 %v3216_v18 }
  0x41   :  { %676 = vmatpush.bf16.msrb.mxu3 %v3220_v48 }
  0x42   :  { %648 = vmatpush.bf16.msrb.mxu1 %v3212_v25 }
  0x44   :  { %663 = vmatpush.bf16.msrb.mxu2 %v3204_v26 }
  0x45   :  { %677 = vmatpush.bf16.msrb.mxu3 %v3208_v50 }
  0x46   :  { %649 = vmatpush.bf16.msrb.mxu1 %v3200_v31 }
  0x48   :  { %664 = vmatpush.bf16.msrb.mxu2 %v3192_v32 }
  0x49   :  { %678 = vmatpush.bf16.msrb.mxu3 %v3196_v53 }
  0x4a   :  { %650 = vmatpush.bf16.msrb.mxu1 %v3188_v38 }
  0x4c   :  { %665 = vmatpush.bf16.msrb.mxu2 %v3180_v39 }
  0x4d   :  { %679 = vmatpush.bf16.msrb.mxu3 %v3184_v56  ;;  %v4083_v56 = vmov 4.0  }
  0x4e   :  { %651 = vmatpush.bf16.msrb.mxu1 %v3176_v44 }
  0x4f   :  { %666 = vmatmul.bf16.vlgmr.msrb.gmra.mxu2 %v475_v43 }
  0x50   :  { %680 = vmatmul.bf16.vlgmr.msrb.gmra.mxu3 %v475_v43 }
  0x51   :  { %652 = vmatmul.bf16.vlgmr.msrb.gmra.mxu1 %v475_v43 }
  0xab   :  { %v387_v58 = vpop.f32.mrf.mxu0 }
  0xac   :  { %v388_v59 = vadd.f32 %v3988_v57, %v387_v58 }
  0xae   :  { %v400_v60 = vpop.f32.mrf.mxu1 }
  0xaf   :  { %v401_v61 = vadd.f32 %v400_v60, %v388_v59  ;;  %v3416_v59 = vor.u32 %v3872_v55, %v3415_v54  ;;  %v3407_v60 = vld [vmem:[%s5331_s10 + $0x60] sm:$0xf] }
  0xb0   :  { %v3845_v54 = vld [vmem:[%s5297_s6 + $0x20] sm:$0xff] }
  0xb2   :  { %v413_v62 = vpop.f32.mrf.mxu2 }
  0xb3   :  { %v414_v63 = vadd.f32 %v413_v62, %v401_v61  ;;  %v389_v0 = vpop.f32.mrf.mxu0  ;;  %v426_v1 = vpop.f32.mrf.mxu3  ;;  %v3870_v61 = vld [vmem:[%s5331_s10 + $0x64] sm:$0xf0] }
  0xb5   :  { %v427_v2 = vadd.f32 %v426_v1, %v414_v63 }
  0xb6   :  { %v402_v3 = vpop.f32.mrf.mxu1 }
  0xb7   :  { %v3399_v3 = vld [vmem:[%s5331_s10 + $0x50] sm:$0xf] }
  0xba   :  { %v415_v4 = vpop.f32.mrf.mxu2 }
  0xbb   :  { %v439_v5 = vpop.f32.mrf.mxu0  ;;  %v428_v7 = vpop.f32.mrf.mxu3  ;;  %v3868_v4 = vld [vmem:[%s5331_s10 + $0x54] sm:$0xf0] }
  0xbc   :  { %v4483_v6 = vadd.f32 %v439_v5, %v427_v2  ;;  %v3408_v2 = vor.u32 %v3870_v61, %v3407_v60  ;;  %v3843_v60 = vld [vmem:[%s5297_s6 + $0x10] sm:$0xff] }
  0xbe   :  { %v443_v51 = vmax.f32 %v4483_v6, 0.0 }
  0xc0   :  { %v461_v52 = vrot.slane %v443_v51, 4  ;;  %v445_v57 = vsel %vm444_vm3, %v443_v51, 0.0  ;;  %v3847_v51 = vld [vmem:[%s5297_s6 + $0x30] sm:$0xff] }
  0xc1   :  { %v446_v62 = vrot.slane %v445_v57, 4 }
  0xc2   :  { %v463_v58 = vsel %vm444_vm3, %v461_v52, 0.0 }
  0xc3   :  { %v441_v8 = vpop.f32.mrf.mxu0  ;;  %v464_v63 = vrot.slane %v463_v58, 4  ;;  %v447_v5 = vadd.f32 %v446_v62, %v445_v57 }
  0xc4   :  { %v3400_v8 = vor.u32 %v3868_v4, %v3399_v3  ;;  %v3841_v3 = vld [vmem:[%s5297_s6] sm:$0xff] }
  0xc5   :  { %v465_v6 = vadd.f32 %v464_v63, %v463_v58  ;;  %v3844_v58 = vld [vmem:[%s5297_s6 + $0x18] sm:$0xff] }
  0xce   :  { %v653_v12 = vpop.f32.mrf.mxu1 }
  0xcf   :  { %v654_v15 = vadd.f32 %v653_v12, %v510_v11  ;;  %v466_v12 = vrot.slane %v465_v6, 2 }
  0xd2   :  { %v667_v13 = vpop.f32.mrf.mxu2 }
  0xd3   :  { %v668_v14 = vadd.f32 %v667_v13, %v511_v10  ;;  %v681_v21 = vpop.f32.mrf.mxu3 }
  0xd4   :  { %v4507_v22 = vadd.f32 %v681_v21, %v512_v20 }
  0xd5   :  { %818 = vrot.lane.b32.xlu2 %v668_v14, %s4080_s1  ;;  %751 = vrot.lane.b32.xlu1 %v668_v14, %s4081_s23 }
  0xd6   :  { %3269 = vmatpush.xpose.msk.msra.mxu0 %vm686_vm1, %v668_v14  ;;  %v655_v18 = vpop.f32.mrf.mxu1 }
  0xd7   :  { %v656_v19 = vadd.f32 %v655_v18, %v510_v11  ;;  %v448_v11 = vrot.slane %v447_v5, 2 }
  0xd9   :  { %3270 = vmatmul.msk.f32.vlgmr.msra.gmra.mxu0 %vm686_vm1, %v654_v15  ;;  %v449_v18 = vadd.f32 %v448_v11, %v447_v5 }
  0xda   :  { %v669_v16 = vpop.f32.mrf.mxu2  ;;  %744 = vmatpush.msrb.mxu0 %v4507_v22 }
  0xdb   :  { %v670_v17 = vadd.f32 %v669_v16, %v511_v10  ;;  %v683_v44 = vpop.f32.mrf.mxu3  ;;  %v3866_v10 = vld [vmem:[%s5331_s10 + $0x44] sm:$0xf0]  ;;  %v3383_v16 = vld [vmem:[%s5331_s10 + $0x30] sm:$0xf] }
  0xdc   :  { %v4523_v45 = vadd.f32 %v683_v44, %v512_v20 }
  0xdd   :  { %3281 = vmatpush.xpose.msk.msra.mxu2 %vm686_vm1, %v670_v17  ;;  %816 = vrot.lane.b32.xlu2 %v654_v15, %s4080_s1 }
  0xde   :  { %749 = vrot.lane.b32.xlu1 %v654_v15, %s4081_s23  ;;  %1020 = vmatpush.msra.mxu3 %v4523_v45 }
  0xe0   :  { %3282 = vmatmul.msk.f32.vlgmr.msra.gmra.mxu2 %vm686_vm1, %v656_v19 }
  0xe5   :  { %1094 = vrot.lane.b32.xlu2 %v670_v17, %s4080_s1 }
  0xe6   :  { %882 = vrot.lane.b32.xlu1 %v654_v15, %s4082_s4  ;;  %v3392_v15 = vor.u32 %v3866_v10, %v3391_v9 }
  0xed   :  { %1027 = vrot.lane.b32.xlu2 %v670_v17, %s4081_s23 }
  0xee   :  { %1092 = vrot.lane.b32.xlu1 %v656_v19, %s4080_s1 }
  0xf5   :  { %1160 = vrot.lane.b32.xlu2 %v670_v17, %s4082_s4  ;;  %v3864_v17 = vld [vmem:[%s5331_s10 + $0x34] sm:$0xf0] }
  0xf6   :  { %1025 = vrot.lane.b32.xlu1 %v656_v19, %s4081_s23  ;;  %v3384_v21 = vor.u32 %v3864_v17, %v3383_v16 }
 0x12f   :  { %v819_v23 = vpop.permute.xlu2 %818 }
 0x137   :  { %v817_v24 = vpop.permute.xlu2 %816 }
 0x13f   :  { %v1095_v25 = vpop.permute.xlu2 %1094 }
 0x140   :  { %3287 = vmatpush.xpose.msk.msrb.mxu2 %vm686_vm1, %v1095_v25  ;;  %v450_v25 = vrot.slane %v449_v18, 1 }
 0x147   :  { %v752_v26 = vpop.permute.xlu1 %751  ;;  %v1028_v50 = vpop.permute.xlu2 %1027 }
 0x148   :  { %3272 = vmatpush.xpose.msk.msra.mxu0 %vm686_vm1, %v752_v26 }
 0x14f   :  { %v1161_v53 = vpop.permute.xlu2 %1160 }
 0x150   :  { %v750_v27 = vpop.permute.xlu1 %749 }
 0x156   :  { %v710_v28 = vpop.f32.mrf.mxu0 }
 0x157   :  { %v713_v29 = vmul.f32 0.17677669, %v710_v28 }
 0x158   :  { %v883_v30 = vpop.permute.xlu1 %882 }
 0x159   :  { %v715_v31 = vsel %vm714_vm2, %v713_v29, -inf }
 0x15a   :  { %716 = vmax.xlane.f32.xlu0 %v715_v31  ;;  %v451_v31 = vadd.f32 %v450_v25, %v449_v18 }
 0x160   :  { %v1093_v32 = vpop.permute.xlu1 %1092 }
 0x161   :  { %3288 = vmatmul.msk.f32.vlgmr.msrb.gmra.mxu2 %vm686_vm1, %v1093_v32 }
 0x163   :  { %v4517_v39 = vpop.f32.mrf.mxu2 }
 0x168   :  { %v1026_v0 = vpop.permute.xlu1 %1025 }
 0x1cd   :  { %v717_v33 = vpop.xlane.xlu0 %716 }
 0x1ce   :  { %v718_v34 = vsub.f32 %v713_v29, %v717_v33  ;;  %v3367_v29 = vld [vmem:[%s5331_s10 + $0x10] sm:$0xf] }
 0x1d0   :  { %v719_v35 = vmul.f32 1.442695, %v718_v34 }
 0x1d2   :  { %4000 = vpow2.f32 %v719_v35  ;;  %v3359_v35 = vld [vmem:[%s5331_s10] sm:$0xf] }
 0x1d8   :  { %v4001_v36 = vpop.eup %4000 }
 0x1d9   :  { %v721_v38 = vsel %vm714_vm2, %v4001_v36, 0.0 }
 0x1da   :  { %722 = vadd.xlane.f32.xlu0 %v721_v38 }
 0x1e4   :  { %v1117_v41 = vpop.f32.mrf.mxu2 }
 0x1e5   :  { %v4519_v42 = vmul.f32 0.17677669, %v1117_v41 }
 0x1e7   :  { %v1121_v43 = vsel %vm714_vm2, %v4519_v42, -inf }
 0x1ee   :  { %884 = vrot.lane.b32.xlu0 %v668_v14, %s4082_s4 }
 0x1f6   :  { %1158 = vrot.lane.b32.xlu0 %v656_v19, %s4082_s4  ;;  %v467_v19 = vadd.f32 %v466_v12, %v465_v6 }
 0x1f8   :  { %v468_v26 = vrot.slane %v467_v19, 1 }
 0x1fa   :  { %v469_v32 = vadd.f32 %v468_v26, %v467_v19 }
 0x220   :  { %1122 = vmax.xlane.f32.xlu0 %v1121_v43 }
 0x24d   :  { %v723_v46 = vpop.xlane.xlu0 %722 }
 0x24e   :  { %4002 = vrcp.f32 %v723_v46 }
 0x24f   :  { %4004 = vrcp.f32 %v4083_v56 }
 0x254   :  { %v4003_v47 = vpop.eup %4002 }
 0x255   :  { %v725_v48 = vmul.f32 %v4003_v47, %v4001_v36  ;;  %v4005_v1 = vpop.eup %4004  ;;  %v3858_v36 = vld [vmem:[%s5331_s10 + $0x4] sm:$0xf0] }
 0x256   :  { %v453_v7 = vmul.f32 4.0, %v4005_v1  ;;  %vm457_vm4 = vweird.f32 %v4005_v1  ;;  %v3360_v43 = vor.u32 %v3858_v36, %v3359_v35 }
 0x257   :  { %3271 = vmatmul.msk.f32.vlgmr.msrb.gmra.mxu0 %vm714_vm2, %v725_v48  ;;  %v3848_v48 = vld [vmem:[%s5297_s6 + $0x38] sm:$0xff] }
 0x258   :  { %3275 = vmatpush.xpose.msk.msrb.mxu0 %vm686_vm1, %v819_v23  ;;  %v454_v14 = vsub.f32 1.0, %v453_v7  ;;  %v3375_v23 = vld [vmem:[%s5331_s10 + $0x20] sm:$0xf]  ;;  %1304 = vmatpush.bf16.msra.mxu2 %v3848_v48 }
 0x25a   :  { %v455_v20 = vmul.f32 %v4005_v1, %v454_v14 }
 0x25c   :  { %1305 = vmatpush.bf16.msra.mxu2 %v3847_v51 }
 0x25f   :  { %3273 = vmatmul.msk.f32.vlgmr.msra.gmra.mxu0 %vm686_vm1, %v750_v27  ;;  %v456_v27 = vadd.f32 %v4005_v1, %v455_v20 }
 0x260   :  { %v885_v49 = vpop.permute.xlu0 %884 }
 0x261   :  { %3278 = vmatpush.xpose.msk.msra.mxu0 %vm686_vm1, %v885_v49  ;;  %v458_v33 = vsel %vm457_vm4, %v4005_v1, %v456_v27  ;;  %v3842_v1 = vld [vmem:[%s5297_s6 + $0x8] sm:$0xff] }
 0x262   :  { %v459_v38 = vmul.f32 %v458_v33, %v451_v31  ;;  %v470_v41 = vmul.f32 %v469_v32, %v458_v33 }
 0x264   :  { %v472_v44 = vsel %vm471_vm5, %v459_v38, %v470_v41 }
 0x265   :  { %v4585_v46 = vpack.c.bf16 %v472_v44, %v472_v44 }
 0x267   :  { %3276 = vmatmul.msk.f32.vlgmr.msrb.gmra.mxu0 %vm686_vm1, %v817_v24  ;;  %v3862_v24 = vld [vmem:[%s5331_s10 + $0x24] sm:$0xf0] }
 0x268   :  { %3284 = vmatpush.xpose.msk.msrb.mxu0 %vm686_vm1, %v1028_v50  ;;  %v1159_v13 = vpop.permute.xlu0 %1158  ;;  %v3376_v28 = vor.u32 %v3862_v24, %v3375_v23 }
 0x26f   :  { %3279 = vmatmul.msk.f32.vlgmr.msra.gmra.mxu0 %vm686_vm1, %v883_v30  ;;  %v3860_v30 = vld [vmem:[%s5331_s10 + $0x14] sm:$0xf0] }
 0x270   :  { %3290 = vmatpush.xpose.msk.msra.mxu0 %vm686_vm1, %v1161_v53  ;;  %v3368_v34 = vor.u32 %v3860_v30, %v3367_v29  ;;  %v3846_v53 = vld [vmem:[%s5297_s6 + $0x28] sm:$0xff] }
 0x271   :  { %1306 = vmatpush.bf16.msra.mxu2 %v3846_v53 }
 0x275   :  { %1307 = vmatpush.bf16.msra.mxu2 %v3845_v54 }
 0x277   :  { %3285 = vmatmul.msk.f32.vlgmr.msrb.gmra.mxu0 %vm686_vm1, %v1026_v0 }
 0x278   :  { %1567 = vmatpush.bf16.msrb.mxu0 %v3416_v59  ;;  %v990_v59 = vmul.f32 0.17677669, %v4517_v39 }
 0x279   :  { %1308 = vmatpush.bf16.msra.mxu2 %v3844_v58 }
 0x27a   :  { %v991_v63 = vsel %vm714_vm2, %v990_v59, -inf }
 0x27c   :  { %1568 = vmatpush.bf16.msrb.mxu0 %v3408_v2 }
 0x27d   :  { %1309 = vmatpush.bf16.msra.mxu2 %v3843_v60 }
 0x27f   :  { %3291 = vmatmul.msk.f32.vlgmr.msra.gmra.mxu0 %vm686_vm1, %v1159_v13 }
 0x280   :  { %1569 = vmatpush.bf16.msrb.mxu0 %v3400_v8  ;;  %v4624_v8 = vld [vmem:[%s5298_s11] sm:$0x3] }
 0x281   :  { %1310 = vmatpush.bf16.msra.mxu2 %v3842_v1  ;;  %v1483_v9 = vperm.slane %v4624_v8, 0 }
 0x284   :  { %1570 = vmatpush.bf16.msrb.mxu0 %v3392_v15 }
 0x285   :  { %1311 = vmatpush.bf16.msra.mxu2 %v3841_v3 }
 0x288   :  { %1571 = vmatpush.bf16.msrb.mxu0 %v3384_v21 }
 0x28c   :  { %1572 = vmatpush.bf16.msrb.mxu0 %v3376_v28 }
 0x290   :  { %1573 = vmatpush.bf16.msrb.mxu0 %v3368_v34 }
 0x293   :  { %v1123_v17 = vpop.xlane.xlu0 %1122 }
 0x294   :  { %1574 = vmatpush.bf16.msrb.mxu0 %v3360_v43  ;;  %v1124_v54 = vsub.f32 %v4519_v42, %v1123_v17  ;;  %v3409_v17 = vld [vmem:[%s5331_s10 + $0x68] sm:$0xf0] }
 0x297   :  { %1575 = vmatmul.bf16.vlgmr.msrb.gmra.mxu0 %v4585_v46 }
 0x2d4   :  { %v4588_v47 = vpop.f32.mrf.mxu0 }
 0x2dc   :  { %v774_v49 = vpop.f32.mrf.mxu0 }
 0x2dd   :  { %v777_v50 = vmul.f32 0.17677669, %v774_v49 }
 0x2df   :  { %v778_v52 = vsel %vm714_vm2, %v777_v50, -inf }
 0x2e0   :  { %779 = vmax.xlane.f32.xlu1 %v778_v52 }
 0x2e4   :  { %v841_v55 = vpop.f32.mrf.mxu0 }
 0x2e5   :  { %v844_v56 = vmul.f32 0.17677669, %v841_v55  ;;  %v1125_v55 = vmul.f32 1.442695, %v1124_v54  ;;  %v3854_v54 = vld [vmem:[%s5299_s8 + $0x28] sm:$0xff] }
 0x2e7   :  { %v845_v57 = vsel %vm714_vm2, %v844_v56, -inf }
 0x2e8   :  { %846 = vmax.xlane.f32.xlu2 %v845_v57 }
 0x2ec   :  { %v907_v61 = vpop.f32.mrf.mxu0 }
 0x2ed   :  { %v910_v62 = vmul.f32 0.17677669, %v907_v61 }
 0x2ef   :  { %v911_v0 = vsel %vm714_vm2, %v910_v62, -inf }
 0x2f0   :  { %992 = vmax.xlane.f32.xlu2 %v991_v63  ;;  %912 = vmax.xlane.f32.xlu0 %v911_v0 }
 0x2f4   :  { %v1050_v39 = vpop.f32.mrf.mxu0 }
 0x2f5   :  { %v1053_v2 = vmul.f32 0.17677669, %v1050_v39 }
 0x2f7   :  { %v1054_v4 = vsel %vm714_vm2, %v1053_v2, -inf }
 0x2f8   :  { %1055 = vmax.xlane.f32.xlu1 %v1054_v4 }
 0x2fc   :  { %v1183_v5 = vpop.f32.mrf.mxu0 }
 0x2fd   :  { %v1186_v6 = vmul.f32 0.17677669, %v1183_v5 }
 0x2ff   :  { %v1187_v7 = vsel %vm714_vm2, %v1186_v6, -inf }
 0x300   :  { %1188 = vmax.xlane.f32.xlu2 %v1187_v7  ;;  %v3871_v7 = vld [vmem:[%s5331_s10 + $0x74] sm:$0xf] }
 0x314   :  { %v1576_v10 = vpop.f32.mrf.mxu0 }
 0x315   :  { %v4627_v11 = vadd.f32 %v1576_v10, %v1483_v9  ;;  %v3417_v9 = vld [vmem:[%s5331_s10 + $0x78] sm:$0xf0] }
 0x317   :  { %v4630_v12 = vperm.slane %v4627_v11, 0 }
 0x318   :  { %790 = vrot.lane.b32.xlu2 %v4507_v22, %s4081_s23 }
 0x319   :  { %3421 = vmatpush.xpose.msk.msrb.mxu2 %vm686_vm1, %v4630_v12 }
 0x31c   :  { %v1578_v13 = vpop.f32.mrf.mxu0 }
 0x31d   :  { %3422 = vmatpush.xpose.msk.msrb.mxu2 %vm686_vm1, %v4630_v12 }
 0x320   :  { %922 = vrot.lane.b32.xlu2 %v4507_v22, %s4082_s4 }
 0x328   :  { %1066 = vrot.lane.b32.xlu2 %v4523_v45, %s4081_s23 }
 0x330   :  { %1198 = vrot.lane.b32.xlu2 %v4523_v45, %s4082_s4 }
 0x353   :  { %v780_v14 = vpop.xlane.xlu1 %779 }
 0x354   :  { %v781_v15 = vsub.f32 %v777_v50, %v780_v14  ;;  %v3420_v14 = vor.u32 %v3871_v7, %v3417_v9 }
 0x356   :  { %v782_v16 = vmul.f32 1.442695, %v781_v15 }
 0x358   :  { %4006 = vpow2.f32 %v782_v16  ;;  %v3869_v16 = vld [vmem:[%s5331_s10 + $0x64] sm:$0xf] }
 0x35b   :  { %v847_v18 = vpop.xlane.xlu2 %846 }
 0x35c   :  { %v848_v19 = vsub.f32 %v844_v56, %v847_v18  ;;  %v3412_v18 = vor.u32 %v3869_v16, %v3409_v17 }
 0x35e   :  { %v4007_v20 = vpop.eup %4006  ;;  %v849_v21 = vmul.f32 1.442695, %v848_v19  ;;  %v3867_v19 = vld [vmem:[%s5331_s10 + $0x54] sm:$0xf] }
 0x35f   :  { %v784_v23 = vsel %vm714_vm2, %v4007_v20, 0.0 }
 0x360   :  { %4008 = vpow2.f32 %v849_v21  ;;  %785 = vadd.xlane.f32.xlu1 %v784_v23 }
 0x363   :  { %v993_v24 = vpop.xlane.xlu2 %992  ;;  %v913_v25 = vpop.xlane.xlu0 %912 }
 0x364   :  { %v994_v26 = vsub.f32 %v990_v59, %v993_v24  ;;  %v914_v29 = vsub.f32 %v910_v62, %v913_v25  ;;  %v3865_v25 = vld [vmem:[%s5331_s10 + $0x44] sm:$0xf] }
 0x366   :  { %v4009_v27 = vpop.eup %4008  ;;  %v995_v28 = vmul.f32 1.442695, %v994_v26  ;;  %v915_v31 = vmul.f32 1.442695, %v914_v29  ;;  %v3393_v26 = vld [vmem:[%s5331_s10 + $0x48] sm:$0xf0] }
 0x367   :  { %v851_v30 = vsel %vm714_vm2, %v4009_v27, 0.0  ;;  %v3385_v29 = vld [vmem:[%s5331_s10 + $0x38] sm:$0xf0] }
 0x368   :  { %4010 = vpow2.f32 %v995_v28  ;;  %852 = vadd.xlane.f32.xlu0 %v851_v30  ;;  %v3863_v28 = vld [vmem:[%s5331_s10 + $0x34] sm:$0xf] }
 0x369   :  { %4012 = vpow2.f32 %v915_v31  ;;  %v3388_v30 = vor.u32 %v3863_v28, %v3385_v29  ;;  %v3861_v31 = vld [vmem:[%s5331_s10 + $0x24] sm:$0xf] }
 0x36b   :  { %v1056_v32 = vpop.xlane.xlu1 %1055 }
 0x36c   :  { %v1057_v34 = vsub.f32 %v1053_v2, %v1056_v32  ;;  %v3377_v32 = vld [vmem:[%s5331_s10 + $0x28] sm:$0xf0] }
 0x36e   :  { %v4011_v33 = vpop.eup %4010  ;;  %v1058_v36 = vmul.f32 1.442695, %v1057_v34  ;;  %v3859_v34 = vld [vmem:[%s5331_s10 + $0x14] sm:$0xf] }
 0x36f   :  { %v997_v35 = vsel %vm714_vm2, %v4011_v33, 0.0  ;;  %v4013_v41 = vpop.eup %4012 }
 0x370   :  { %998 = vadd.xlane.f32.xlu1 %v997_v35  ;;  %4014 = vpow2.f32 %v1058_v36  ;;  %v917_v44 = vsel %vm714_vm2, %v4013_v41, 0.0  ;;  %v3369_v35 = vld [vmem:[%s5331_s10 + $0x18] sm:$0xf0] }
 0x373   :  { %v1189_v38 = vpop.xlane.xlu2 %1188 }
 0x374   :  { %v1190_v43 = vsub.f32 %v1186_v6, %v1189_v38  ;;  %v3372_v38 = vor.u32 %v3859_v34, %v3369_v35 }
 0x376   :  { %v1191_v48 = vmul.f32 1.442695, %v1190_v43  ;;  %v4015_v50 = vpop.eup %4014  ;;  %v3361_v43 = vld [vmem:[%s5331_s10 + $0x8] sm:$0xf0] }
 0x377   :  { %v1060_v51 = vsel %vm714_vm2, %v4015_v50, 0.0 }
 0x378   :  { %918 = vadd.xlane.f32.xlu1 %v917_v44  ;;  %4016 = vpow2.f32 %v1191_v48 }
 0x379   :  { %4018 = vpow2.f32 %v1125_v55 }
 0x37b   :  { %v791_v49 = vpop.permute.xlu2 %790 }
 0x37c   :  { %856 = vrot.lane.b32.xlu0 %v4507_v22, %s4080_s1  ;;  %811 = vmatpush.msra.mxu1 %v791_v49 }
 0x37e   :  { %v4017_v52 = vpop.eup %4016 }
 0x37f   :  { %v1193_v53 = vsel %vm714_vm2, %v4017_v52, 0.0  ;;  %v4655_v56 = vpop.eup %4018 }
 0x380   :  { %1061 = vadd.xlane.f32.xlu1 %v1060_v51  ;;  %v1127_v22 = vsel %vm714_vm2, %v4655_v56, 0.0  ;;  %v3856_v51 = vld [vmem:[%s5299_s8 + $0x38] sm:$0xff] }
 0x383   :  { %v923_v42 = vpop.permute.xlu2 %922 }
 0x388   :  { %1194 = vadd.xlane.f32.xlu1 %v1193_v53  ;;  %v3855_v53 = vld [vmem:[%s5299_s8 + $0x30] sm:$0xff] }
 0x38b   :  { %v1067_v1 = vpop.permute.xlu2 %1066 }
 0x393   :  { %v1199_v6 = vpop.permute.xlu2 %1198 }
 0x3a1   :  { %1132 = vrot.lane.b32.xlu1 %v4523_v45, %s4080_s1 }
 0x3a6   :  { %1128 = vadd.xlane.f32.xlu0 %v1127_v22  ;;  %v3851_v22 = vld [vmem:[%s5299_s8 + $0x10] sm:$0xff] }
 0x3d3   :  { %v786_v57 = vpop.xlane.xlu1 %785 }
 0x3d4   :  { %4020 = vrcp.f32 %v786_v57 }
 0x3da   :  { %v4021_v58 = vpop.eup %4020 }
 0x3db   :  { %v788_v59 = vmul.f32 %v4021_v58, %v4007_v20  ;;  %v853_v60 = vpop.xlane.xlu0 %852  ;;  %v3401_v20 = vld [vmem:[%s5331_s10 + $0x58] sm:$0xf0]  ;;  %v3850_v58 = vld [vmem:[%s5299_s8 + $0x8] sm:$0xff] }
 0x3dc   :  { %v3404_v23 = vor.u32 %v3867_v19, %v3401_v20 }
 0x3dd   :  { %3274 = vmatmul.msk.f32.vlgmr.msra.gmra.mxu1 %vm714_vm2, %v788_v59 }
 0x3e3   :  { %v999_v61 = vpop.xlane.xlu1 %998 }
 0x3e4   :  { %4022 = vrcp.f32 %v999_v61  ;;  %v3849_v61 = vld [vmem:[%s5299_s8] sm:$0xff] }
 0x3e5   :  { %4024 = vrcp.f32 %v853_v60 }
 0x3ea   :  { %v4023_v62 = vpop.eup %4022 }
 0x3eb   :  { %v4025_v63 = vpop.eup %4024  ;;  %v1001_v45 = vmul.f32 %v4023_v62, %v4011_v33  ;;  %v919_v0 = vpop.xlane.xlu1 %918  ;;  %v3380_v33 = vor.u32 %v3861_v31, %v3377_v32 }
 0x3ec   :  { %4026 = vrcp.f32 %v919_v0  ;;  %v855_v39 = vmul.f32 %v4025_v63, %v4009_v27  ;;  %v3396_v27 = vor.u32 %v3865_v25, %v3393_v26  ;;  %v1484_v63 = vperm.slane %v4624_v8, 1 }
 0x3ed   :  { %3283 = vmatmul.msk.f32.vlgmr.msra.gmra.mxu3 %vm714_vm2, %v1001_v45 }
 0x3ee   :  { %v857_v2 = vpop.permute.xlu0 %856 }
 0x3ef   :  { %877 = vmatpush.msrb.mxu1 %v857_v2 }
 0x3f0   :  { %3277 = vmatmul.msk.f32.vlgmr.msrb.gmra.mxu1 %vm714_vm2, %v855_v39 }
 0x3f1   :  { %943 = vmatpush.msra.mxu1 %v923_v42 }
 0x3f2   :  { %v4027_v3 = vpop.eup %4026 }
 0x3f3   :  { %1087 = vmatpush.msrb.mxu1 %v1067_v1  ;;  %v1062_v4 = vpop.xlane.xlu1 %1061  ;;  %v921_v5 = vmul.f32 %v4027_v3, %v4013_v41  ;;  %v3857_v41 = vld [vmem:[%s5331_s10 + $0x4] sm:$0xf] }
 0x3f4   :  { %4028 = vrcp.f32 %v1062_v4  ;;  %v3364_v48 = vor.u32 %v3857_v41, %v3361_v43 }
 0x3f8   :  { %3280 = vmatmul.msk.f32.vlgmr.msra.gmra.mxu1 %vm714_vm2, %v921_v5 }
 0x3f9   :  { %1219 = vmatpush.msra.mxu1 %v1199_v6 }
 0x3fa   :  { %v4029_v10 = vpop.eup %4028 }
 0x3fb   :  { %v1195_v13 = vpop.xlane.xlu1 %1194  ;;  %v1064_v15 = vmul.f32 %v4029_v10, %v4015_v50 }
 0x3fc   :  { %4030 = vrcp.f32 %v1195_v13 }
 0x400   :  { %3286 = vmatmul.msk.f32.vlgmr.msrb.gmra.mxu1 %vm714_vm2, %v1064_v15 }
 0x401   :  { %1580 = vmatpush.bf16.msrb.mxu1 %v3420_v14 }
 0x402   :  { %v4031_v21 = vpop.eup %4030 }
 0x403   :  { %v1197_v24 = vmul.f32 %v4031_v21, %v4017_v52 }
 0x405   :  { %1581 = vmatpush.bf16.msrb.mxu1 %v3412_v18 }
 0x408   :  { %3292 = vmatmul.msk.f32.vlgmr.msra.gmra.mxu1 %vm714_vm2, %v1197_v24  ;;  %v3989_v24 = vld [vmem:[%s5300_s7] ss:$0 sm:$0xff] }
 0x409   :  { %1582 = vmatpush.bf16.msrb.mxu1 %v3404_v23 }
 0x40d   :  { %1583 = vmatpush.bf16.msrb.mxu1 %v3396_v27 }
 0x411   :  { %1584 = vmatpush.bf16.msrb.mxu1 %v3388_v30  ;;  %v4084_v30 = vmov 128.0  }
 0x413   :  { %v1133_v36 = vpop.permute.xlu1 %1132 }
 0x414   :  { %1153 = vmatpush.msrb.mxu3 %v1133_v36 }
 0x415   :  { %1585 = vmatpush.bf16.msrb.mxu1 %v3380_v33 }
 0x416   :  { %1450 = vmatpush.bf16.msra.mxu3 %v3856_v51 }
 0x419   :  { %1586 = vmatpush.bf16.msrb.mxu1 %v3372_v38  ;;  %v1129_v44 = vpop.xlane.xlu0 %1128 }
 0x41a   :  { %4032 = vrcp.f32 %v1129_v44  ;;  %1451 = vmatpush.bf16.msra.mxu3 %v3855_v53 }
 0x41b   :  { %4034 = vrcp.f32 %v4084_v30 }
 0x41d   :  { %1587 = vmatpush.bf16.msrb.mxu1 %v3364_v48 }
 0x41e   :  { %1452 = vmatpush.bf16.msra.mxu3 %v3854_v54 }
 0x420   :  { %v4033_v49 = vpop.eup %4032  ;;  %1588 = vmatmul.bf16.vlgmr.msrb.gmra.mxu1 %v4585_v46  ;;  %v3853_v46 = vld [vmem:[%s5299_s8 + $0x20] sm:$0xff] }
 0x421   :  { %v1131_v50 = vmul.f32 %v4033_v49, %v4655_v56  ;;  %v3852_v56 = vld [vmem:[%s5299_s8 + $0x18] sm:$0xff]  ;;  %v4035_v31 = vpop.eup %4034 }
 0x422   :  { %1453 = vmatpush.bf16.msra.mxu3 %v3853_v46  ;;  %v1333_v32 = vmul.f32 128.0, %v4035_v31  ;;  %vm1337_vm8 = vweird.f32 %v4035_v31 }
 0x423   :  { %3289 = vmatmul.msk.f32.vlgmr.msrb.gmra.mxu3 %vm714_vm2, %v1131_v50  ;;  %v4775_v50 = vperm.slane %v4627_v11, 1 }
 0x424   :  { %v1334_v33 = vsub.f32 1.0, %v1333_v32 }
 0x426   :  { %1454 = vmatpush.bf16.msra.mxu3 %v3852_v56  ;;  %v1335_v34 = vmul.f32 %v4035_v31, %v1334_v33 }
 0x428   :  { %v1336_v35 = vadd.f32 %v4035_v31, %v1335_v34 }
 0x42a   :  { %1455 = vmatpush.bf16.msra.mxu3 %v3851_v22  ;;  %v4764_v36 = vsel %vm1337_vm8, %v4035_v31, %v1336_v35 }
 0x42e   :  { %1456 = vmatpush.bf16.msra.mxu3 %v3850_v58 }
 0x432   :  { %1457 = vmatpush.bf16.msra.mxu3 %v3849_v61 }
 0x45a   :  { %v813_v52 = vpop.f32.mrf.mxu1 }
 0x46d   :  { %v879_v55 = vpop.f32.mrf.mxu1 }
 0x470   :  { %v1022_v0 = vpop.f32.mrf.mxu3 }
 0x475   :  { %v945_v57 = vpop.f32.mrf.mxu1 }
 0x47d   :  { %v1089_v59 = vpop.f32.mrf.mxu1 }
 0x47e   :  { %v3958_v60 = vpack.i.bf16 %v1089_v59, %v813_v52 }
 0x480   :  { %3959 = vrot.lane.b32.xlu2 %v3958_v60, %s4082_s4 }
 0x485   :  { %v1221_v42 = vpop.f32.mrf.mxu1 }
 0x486   :  { %v3968_v62 = vpack.i.bf16 %v1221_v42, %v945_v57 }
 0x488   :  { %3969 = vrot.lane.b32.xlu1 %v3968_v62, %s4081_s23 }
 0x49d   :  { %v1589_v45 = vpop.f32.mrf.mxu1 }
 0x49e   :  { %v4743_v1 = vadd.f32 %v1589_v45, %v1484_v63 }
 0x4a0   :  { %v4746_v39 = vperm.slane %v4743_v1, 0 }
 0x4a2   :  { %3424 = vmatpush.msk.msrb.mxu3 %vm1638_vm6, %v4746_v39 }
 0x4a4   :  { %1656 = vmatpush.msrb.mxu3 %v4746_v39 }
 0x4a5   :  { %v1591_v2 = vpop.f32.mrf.mxu1 }
 0x4a6   :  { %v1155_v3 = vpop.f32.mrf.mxu3  ;;  %v3990_v2 = vld [vmem:[%s5301_s14] ss:$0 sm:$0xff] }
 0x4a7   :  { %v3963_v4 = vpack.i.bf16 %v1155_v3, %v879_v55 }
 0x4a9   :  { %3964 = vrot.lane.b32.xlu2 %v3963_v4, %s4080_s1 }
 0x4da   :  { %v3960_v5 = vpop.permute.xlu2 %3959 }
 0x4db   :  { %v3962_v8 = vunpack.i.h.bf16 %v3960_v5  ;;  %v3961_v6 = vunpack.i.l.bf16 %v3960_v5 }
 0x4dd   :  { %v1236_v14 = vsel %vm686_vm1, %v1022_v0, %v3962_v8  ;;  %v960_v15 = vsel %vm686_vm1, %v4588_v47, %v3961_v6  ;;  %v3991_v6 = vld [vmem:[%s5302_s15] ss:$0 sm:$0xff] }
 0x4fa   :  { %v3970_v7 = vpop.permute.xlu1 %3969 }
 0x4fb   :  { %v3972_v16 = vunpack.i.h.bf16 %v3970_v7  ;;  %v3971_v17 = vunpack.i.l.bf16 %v3970_v7 }
 0x503   :  { %v3965_v9 = vpop.permute.xlu2 %3964 }
 0x504   :  { %v3967_v10 = vunpack.i.h.bf16 %v3965_v9  ;;  %v3966_v13 = vunpack.i.l.bf16 %v3965_v9 }
 0x506   :  { %v1237_v18 = vsel %vm374_vm0, %v1236_v14, %v3967_v10  ;;  %v961_v19 = vsel %vm374_vm0, %v960_v15, %v3966_v13 }
 0x507   :  { %v963_v20 = vsel %vm962_vm7, %v961_v19, %v3971_v17  ;;  %v1238_v21 = vsel %vm962_vm7, %v1237_v18, %v3972_v16  ;;  %v3992_v16 = vld [vmem:[%s5303_s9] ss:$0 sm:$0xff] }
 0x508   :  { %v1239_v23 = vpack.c.bf16 %v1238_v21, %v963_v20 }
 0x50a   :  { %1312 = vmatmul.bf16.vlgmr.msra.gmra.mxu2 %v1239_v23 }
 0x58d   :  { %v1313_v25 = vpop.f32.mrf.mxu2 }
 0x58e   :  { %v1318_v26 = vadd.f32 %v1313_v25, %v4441_v37 }
 0x590   :  { %v1324_v47 = vadd.f32 %v3989_v24, %v1318_v26 }
 0x592   :  { %1328 = vadd.xlane.f32.xlu2 %v1324_v47 }
 0x595   :  { %v1315_v27 = vpop.f32.mrf.mxu2 }
 0x596   :  { %v1319_v28 = vadd.f32 %v1315_v27, %v4446_v40 }
 0x598   :  { %v1325_v29 = vadd.f32 %v3989_v24, %v1319_v28 }
 0x59a   :  { %1330 = vadd.xlane.f32.xlu1 %v1325_v29 }
 0x605   :  { %v1329_v38 = vpop.xlane.xlu2 %1328 }
 0x606   :  { %v1339_v37 = vmul.f32 %v4764_v36, %v1329_v38 }
 0x608   :  { %v1341_v41 = vsub.f32 %v1324_v47, %v1339_v37 }
 0x60a   :  { %v1343_v43 = vmul.f32 %v1341_v41, %v1341_v41 }
 0x60c   :  { %1345 = vadd.xlane.f32.xlu0 %v1343_v43 }
 0x60d   :  { %v1331_v44 = vpop.xlane.xlu1 %1330 }
 0x60e   :  { %v1340_v40 = vmul.f32 %v4764_v36, %v1331_v44 }
 0x610   :  { %v1342_v48 = vsub.f32 %v1325_v29, %v1340_v40 }
 0x612   :  { %v1344_v49 = vmul.f32 %v1342_v48, %v1342_v48 }
 0x614   :  { %1347 = vadd.xlane.f32.xlu0 %v1344_v49 }
 0x628   :  { %1731 = vrot.lane.b32.xlu0 %v4630_v12, %s4080_s1 }
 0x630   :  { %1663 = vrot.lane.b32.xlu0 %v4630_v12, %s4081_s23 }
 0x638   :  { %1799 = vrot.lane.b32.xlu0 %v4630_v12, %s4082_s4 }
 0x640   :  { %2016 = vrot.lane.b32.xlu0 %v4775_v50, %s4080_s1 }
 0x67f   :  { %v1346_v51 = vpop.xlane.xlu0 %1345 }
 0x680   :  { %v1349_v52 = vmul.f32 %v1346_v51, %v4764_v36 }
 0x682   :  { %v1351_v53 = vadd.f32 1e-05, %v1349_v52 }
 0x684   :  { %4036 = vrsqrt.f32 %v1351_v53  ;;  %vm1359_vm10 = vweird.f32 %v1351_v53 }
 0x687   :  { %v1348_v54 = vpop.xlane.xlu0 %1347 }
 0x688   :  { %v1350_v46 = vmul.f32 %v1348_v54, %v4764_v36 }
 0x68a   :  { %v4037_v55 = vpop.eup %4036  ;;  %v1352_v56 = vadd.f32 1e-05, %v1350_v46 }
 0x68b   :  { %v1354_v22 = vmul.f32 %v4037_v55, %v1351_v53  ;;  %vm1360_vm9 = vweird.f32 %v4037_v55 }
 0x68c   :  { %4038 = vrsqrt.f32 %v1352_v56  ;;  %vm1361_vm11 = vmor %vm1359_vm10, %vm1360_vm9  ;;  %vm1369_vm13 = vweird.f32 %v1352_v56 }
 0x68d   :  { %v1355_v57 = vmul.f32 %v4037_v55, %v1354_v22 }
 0x68f   :  { %v1356_v12 = vmul.f32 0.5, %v1355_v57 }
 0x691   :  { %v1357_v58 = vsub.f32 1.5, %v1356_v12 }
 0x692   :  { %v4039_v11 = vpop.eup %4038 }
 0x693   :  { %v1358_v59 = vmul.f32 %v4037_v55, %v1357_v58  ;;  %v1364_v60 = vmul.f32 %v4039_v11, %v1352_v56  ;;  %vm1370_vm12 = vweird.f32 %v4039_v11 }
 0x694   :  { %vm1371_vm14 = vmor %vm1369_vm13, %vm1370_vm12 }
 0x695   :  { %v1365_v61 = vmul.f32 %v4039_v11, %v1364_v60  ;;  %v1362_v42 = vsel %vm1361_vm11, %v4037_v55, %v1358_v59 }
 0x696   :  { %v1373_v45 = vmul.f32 %v1362_v42, %v1341_v41 }
 0x697   :  { %v1366_v62 = vmul.f32 0.5, %v1365_v61 }
 0x698   :  { %v1376_v8 = vmul.f32 %v3990_v2, %v1373_v45 }
 0x699   :  { %v1367_v63 = vsub.f32 1.5, %v1366_v62 }
 0x69a   :  { %v1732_v0 = vpop.permute.xlu0 %1731  ;;  %v4789_v10 = vadd.f32 %v3991_v6, %v1376_v8 }
 0x69b   :  { %v1368_v3 = vmul.f32 %v4039_v11, %v1367_v63  ;;  %3431 = vmatpush.xpose.msk.msra.mxu2 %vm686_vm1, %v1732_v0 }
 0x69d   :  { %v1372_v4 = vsel %vm1371_vm14, %v4039_v11, %v1368_v3 }
 0x69e   :  { %v1374_v5 = vmul.f32 %v1372_v4, %v1342_v48 }
 0x69f   :  { %3432 = vmatpush.xpose.msk.msra.mxu2 %vm686_vm1, %v1732_v0 }
 0x6a0   :  { %v1377_v7 = vmul.f32 %v3990_v2, %v1374_v5 }
 0x6a2   :  { %v1664_v9 = vpop.permute.xlu0 %1663  ;;  %v4791_v13 = vadd.f32 %v3991_v6, %v1377_v7 }
 0x6a3   :  { %3426 = vmatpush.xpose.msk.msra.mxu0 %vm686_vm1, %v1664_v9 }
 0x6a4   :  { %v1381_v14 = vpack.c.bf16 %v4791_v13, %v4789_v10 }
 0x6a6   :  { %1458 = vmatmul.bf16.vlgmr.msra.gmra.mxu3 %v1381_v14 }
 0x6a7   :  { %3427 = vmatpush.xpose.msk.msra.mxu0 %vm686_vm1, %v1664_v9 }
 0x6aa   :  { %v1800_v15 = vpop.permute.xlu0 %1799 }
 0x6ab   :  { %3436 = vmatpush.xpose.msk.msrb.mxu0 %vm686_vm1, %v1800_v15 }
 0x6af   :  { %3437 = vmatpush.xpose.msk.msrb.mxu0 %vm686_vm1, %v1800_v15 }
 0x6b2   :  { %v2017_v23 = vpop.permute.xlu0 %2016 }
 0x729   :  { %v1459_v17 = vpop.f32.mrf.mxu3 }
 0x72a   :  { %v1460_v18 = vadd.f32 %v3992_v16, %v1459_v17 }
 0x72c   :  { %1661 = vrot.lane.b32.xlu1 %v1460_v18, %s4081_s23  ;;  %1729 = vrot.lane.b32.xlu2 %v1460_v18, %s4080_s1 }
 0x72d   :  { %1797 = vrot.lane.b32.xlu0 %v1460_v18, %s4082_s4  ;;  %3423 = vmatmul.msk.f32.vlgmr.msrb.gmra.mxu2 %vm686_vm1, %v1460_v18 }
 0x72e   :  { %3441 = vmatpush.xpose.msk.msrb.mxu2 %vm686_vm1, %v4775_v50 }
 0x731   :  { %v1461_v19 = vpop.f32.mrf.mxu3 }
 0x732   :  { %3442 = vmatpush.xpose.msk.msrb.mxu2 %vm686_vm1, %v4775_v50  ;;  %v1462_v20 = vadd.f32 %v3992_v16, %v1461_v19 }
 0x734   :  { %2014 = vrot.lane.b32.xlu1 %v1462_v20, %s4080_s1  ;;  %1948 = vrot.lane.b32.xlu2 %v4775_v50, %s4081_s23 }
 0x735   :  { %1946 = vrot.lane.b32.xlu0 %v1462_v20, %s4081_s23 }
 0x73c   :  { %2082 = vrot.lane.b32.xlu1 %v1462_v20, %s4082_s4  ;;  %2084 = vrot.lane.b32.xlu2 %v4775_v50, %s4082_s4 }
 0x786   :  { %v1730_v21 = vpop.permute.xlu2 %1729 }
 0x787   :  { %3433 = vmatmul.msk.f32.vlgmr.msra.gmra.mxu2 %vm686_vm1, %v1730_v21 }
 0x788   :  { %3451 = vmatpush.xpose.msk.msra.mxu2 %vm686_vm1, %v2017_v23 }
 0x78c   :  { %3452 = vmatpush.xpose.msk.msra.mxu2 %vm686_vm1, %v2017_v23 }
 0x78e   :  { %v1949_v24 = vpop.permute.xlu2 %1948 }
 0x78f   :  { %3443 = vmatmul.msk.f32.vlgmr.msrb.gmra.mxu2 %vm686_vm1, %v1462_v20 }
 0x796   :  { %v2085_v27 = vpop.permute.xlu2 %2084 }
 0x79e   :  { %v1662_v25 = vpop.permute.xlu1 %1661 }
 0x79f   :  { %3428 = vmatmul.msk.f32.vlgmr.msra.gmra.mxu0 %vm686_vm1, %v1662_v25  ;;  %v1798_v26 = vpop.permute.xlu0 %1797 }
 0x7a0   :  { %3446 = vmatpush.xpose.msk.msra.mxu0 %vm686_vm1, %v1949_v24 }
 0x7a4   :  { %3447 = vmatpush.xpose.msk.msra.mxu0 %vm686_vm1, %v1949_v24 }
 0x7a6   :  { %v2015_v47 = vpop.permute.xlu1 %2014 }
 0x7a7   :  { %3438 = vmatmul.msk.f32.vlgmr.msrb.gmra.mxu0 %vm686_vm1, %v1798_v26  ;;  %3453 = vmatmul.msk.f32.vlgmr.msra.gmra.mxu2 %vm686_vm1, %v2015_v47  ;;  %v1947_v28 = vpop.permute.xlu0 %1946 }
 0x7a8   :  { %3456 = vmatpush.xpose.msk.msrb.mxu0 %vm686_vm1, %v2085_v27 }
 0x7ac   :  { %3457 = vmatpush.xpose.msk.msrb.mxu0 %vm686_vm1, %v2085_v27 }
 0x7ae   :  { %v2083_v32 = vpop.permute.xlu1 %2082 }
 0x7af   :  { %3448 = vmatmul.msk.f32.vlgmr.msra.gmra.mxu0 %vm686_vm1, %v1947_v28 }
 0x7b0   :  { %v1618_v29 = vpop.f32.mrf.mxu2 }
 0x7b1   :  { %v1621_v30 = vmul.f32 0.17677669, %v1618_v29 }
 0x7b3   :  { %v1623_v31 = vsel %vm1622_vm15, %v1621_v30, -inf }
 0x7b4   :  { %1624 = vmax.xlane.f32.xlu0 %v1623_v31 }
 0x7b7   :  { %3458 = vmatmul.msk.f32.vlgmr.msrb.gmra.mxu0 %vm686_vm1, %v2083_v32 }
 0x80a   :  { %v1754_v33 = vpop.f32.mrf.mxu2 }
 0x80b   :  { %v1757_v34 = vmul.f32 0.17677669, %v1754_v33  ;;  %v1881_v33 = vperm.slane %v4743_v1, 1 }
 0x80d   :  { %v1758_v35 = vsel %vm1622_vm15, %v1757_v34, -inf }
 0x80e   :  { %1759 = vmax.xlane.f32.xlu1 %v1758_v35 }
 0x812   :  { %v1905_v43 = vpop.f32.mrf.mxu2 }
 0x813   :  { %v1908_v44 = vmul.f32 0.17677669, %v1905_v43 }
 0x815   :  { %v1909_v50 = vsel %vm1622_vm15, %v1908_v44, -inf }
 0x81c   :  { %v1686_v38 = vpop.f32.mrf.mxu0 }
 0x81d   :  { %v1689_v37 = vmul.f32 0.17677669, %v1686_v38 }
 0x81f   :  { %v1690_v41 = vsel %vm1622_vm15, %v1689_v37, -inf }
 0x820   :  { %1691 = vmax.xlane.f32.xlu2 %v1690_v41 }
 0x824   :  { %v1822_v40 = vpop.f32.mrf.mxu0 }
 0x825   :  { %v1825_v48 = vmul.f32 0.17677669, %v1822_v40 }
 0x827   :  { %v1625_v49 = vpop.xlane.xlu0 %1624  ;;  %v1826_v51 = vsel %vm1622_vm15, %v1825_v48, -inf }
 0x828   :  { %v1626_v52 = vsub.f32 %v1621_v30, %v1625_v49  ;;  %1910 = vmax.xlane.f32.xlu2 %v1909_v50  ;;  %1827 = vmax.xlane.f32.xlu0 %v1826_v51 }
 0x82a   :  { %v1627_v53 = vmul.f32 1.442695, %v1626_v52  ;;  %v2039_v54 = vpop.f32.mrf.mxu2 }
 0x82b   :  { %v2042_v46 = vmul.f32 0.17677669, %v2039_v54 }
 0x82c   :  { %v1971_v55 = vpop.f32.mrf.mxu0  ;;  %4040 = vpow2.f32 %v1627_v53 }
 0x82d   :  { %v1974_v56 = vmul.f32 0.17677669, %v1971_v55  ;;  %v2043_v57 = vsel %vm1622_vm15, %v2042_v46, -inf }
 0x82f   :  { %v1975_v22 = vsel %vm1622_vm15, %v1974_v56, -inf }
 0x830   :  { %1976 = vmax.xlane.f32.xlu1 %v1975_v22  ;;  %2044 = vmax.xlane.f32.xlu0 %v2043_v57 }
 0x832   :  { %v4041_v12 = vpop.eup %4040 }
 0x833   :  { %v1629_v58 = vsel %vm1622_vm15, %v4041_v12, 0.0 }
 0x834   :  { %v2107_v11 = vpop.f32.mrf.mxu0 }
 0x835   :  { %v4844_v59 = vmul.f32 0.17677669, %v2107_v11 }
 0x837   :  { %v2111_v60 = vsel %vm1622_vm15, %v4844_v59, -inf }
 0x838   :  { %1630 = vadd.xlane.f32.xlu1 %v1629_v58 }
 0x840   :  { %1837 = vrot.lane.b32.xlu2 %v4746_v39, %s4082_s4 }
 0x844   :  { %1769 = vrot.lane.b32.xlu0 %v4746_v39, %s4080_s1 }
 0x851   :  { %1701 = vrot.lane.b32.xlu1 %v4746_v39, %s4081_s23 }
 0x869   :  { %2112 = vmax.xlane.f32.xlu2 %v2111_v60 }
 0x881   :  { %v1760_v61 = vpop.xlane.xlu1 %1759 }
 0x882   :  { %v1761_v42 = vsub.f32 %v1757_v34, %v1760_v61 }
 0x884   :  { %v1762_v62 = vmul.f32 1.442695, %v1761_v42 }
 0x886   :  { %4042 = vpow2.f32 %v1762_v62 }
 0x88c   :  { %v4848_v63 = vpop.eup %4042 }
 0x88d   :  { %v1764_v45 = vsel %vm1622_vm15, %v4848_v63, 0.0 }
 0x88e   :  { %1765 = vadd.xlane.f32.xlu2 %v1764_v45 }
 0x893   :  { %v1692_v0 = vpop.xlane.xlu2 %1691 }
 0x894   :  { %v1693_v2 = vsub.f32 %v1689_v37, %v1692_v0 }
 0x896   :  { %v1694_v39 = vmul.f32 1.442695, %v1693_v2 }
 0x898   :  { %4044 = vpow2.f32 %v1694_v39 }
 0x89b   :  { %v1828_v3 = vpop.xlane.xlu0 %1827  ;;  %v1911_v4 = vpop.xlane.xlu2 %1910 }
 0x89c   :  { %v1829_v5 = vsub.f32 %v1825_v48, %v1828_v3  ;;  %v1912_v7 = vsub.f32 %v1908_v44, %v1911_v4 }
 0x89e   :  { %v4852_v8 = vpop.eup %4044  ;;  %v1830_v6 = vmul.f32 1.442695, %v1829_v5  ;;  %v1913_v14 = vmul.f32 1.442695, %v1912_v7 }
 0x89f   :  { %v1696_v9 = vsel %vm1622_vm15, %v4852_v8, 0.0 }
 0x8a0   :  { %1697 = vadd.xlane.f32.xlu0 %v1696_v9  ;;  %4046 = vpow2.f32 %v1830_v6 }
 0x8a1   :  { %4048 = vpow2.f32 %v1913_v14 }
 0x8a3   :  { %v1977_v15 = vpop.xlane.xlu1 %1976  ;;  %v2045_v17 = vpop.xlane.xlu0 %2044 }
 0x8a4   :  { %v1978_v16 = vsub.f32 %v1974_v56, %v1977_v15  ;;  %v2046_v18 = vsub.f32 %v2042_v46, %v2045_v17  ;;  %v1838_v35 = vpop.permute.xlu2 %1837  ;;  %v3880_v15 = vld [vmem:[%s5304_s12 + $0x38] sm:$0xff]  ;;  %v3878_v17 = vld [vmem:[%s5304_s12 + $0x28] sm:$0xff] }
 0x8a5   :  { %2230 = vmatpush.bf16.msrb.mxu2 %v3880_v15  ;;  %v3575_v15 = vld [vmem:[%s5306_s16 + $0xa0] sm:$0xf] }
 0x8a6   :  { %v1979_v19 = vmul.f32 1.442695, %v1978_v16  ;;  %v4047_v20 = vpop.eup %4046  ;;  %v2047_v21 = vmul.f32 1.442695, %v2046_v18  ;;  %v3879_v16 = vld [vmem:[%s5304_s12 + $0x30] sm:$0xff]  ;;  %v3877_v18 = vld [vmem:[%s5304_s12 + $0x20] sm:$0xff] }
 0x8a7   :  { %v1832_v23 = vsel %vm1622_vm15, %v4047_v20, 0.0  ;;  %v4049_v25 = vpop.eup %4048 }
 0x8a8   :  { %4050 = vpow2.f32 %v1979_v19  ;;  %1833 = vadd.xlane.f32.xlu2 %v1832_v23  ;;  %v1915_v28 = vsel %vm1622_vm15, %v4049_v25, 0.0  ;;  %v3876_v19 = vld [vmem:[%s5304_s12 + $0x18] sm:$0xff]  ;;  %v3873_v23 = vld [vmem:[%s5304_s12] sm:$0xff] }
 0x8a9   :  { %4052 = vpow2.f32 %v2047_v21  ;;  %2231 = vmatpush.bf16.msrb.mxu2 %v3879_v16  ;;  %v3874_v21 = vld [vmem:[%s5304_s12 + $0x8] sm:$0xff]  ;;  %v3903_v16 = vld [vmem:[%s5306_s16 + $0xac] sm:$0xf0] }
 0x8ab   :  { %v1631_v24 = vpop.xlane.xlu1 %1630 }
 0x8ac   :  { %4054 = vrcp.f32 %v1631_v24 }
 0x8ad   :  { %2232 = vmatpush.bf16.msrb.mxu2 %v3878_v17  ;;  %v3901_v17 = vld [vmem:[%s5306_s16 + $0xa4] sm:$0xf] }
 0x8ae   :  { %v4051_v26 = vpop.eup %4050 }
 0x8af   :  { %v4857_v47 = vpop.eup %4052  ;;  %v1981_v27 = vsel %vm1622_vm15, %v4051_v26, 0.0 }
 0x8b0   :  { %1982 = vadd.xlane.f32.xlu0 %v1981_v27  ;;  %v2049_v29 = vsel %vm1622_vm15, %v4857_v47, 0.0  ;;  %1916 = vadd.xlane.f32.xlu2 %v1915_v28 }
 0x8b1   :  { %2050 = vadd.xlane.f32.xlu1 %v2049_v29  ;;  %2233 = vmatpush.bf16.msrb.mxu2 %v3877_v18  ;;  %v3576_v18 = vor.u32 %v3903_v16, %v3575_v15 }
 0x8b2   :  { %v4055_v30 = vpop.eup %4054 }
 0x8b3   :  { %v1633_v31 = vmul.f32 %v4055_v30, %v4041_v12 }
 0x8b5   :  { %3425 = vmatmul.msk.f32.vlgmr.msrb.gmra.mxu3 %vm1622_vm15, %v1633_v31  ;;  %2234 = vmatpush.bf16.msrb.mxu2 %v3876_v19  ;;  %v3577_v19 = vld [vmem:[%s5306_s16 + $0xb0] sm:$0xf0] }
 0x8b6   :  { %v1770_v32 = vpop.permute.xlu0 %1769 }
 0x8b7   :  { %3434 = vmatpush.msk.msra.mxu3 %vm1638_vm6, %v1770_v32 }
 0x8b9   :  { %1792 = vmatpush.msra.mxu3 %v1770_v32 }
 0x8bb   :  { %3444 = vmatpush.msk.msrb.mxu3 %vm1638_vm6, %v1881_v33 }
 0x8bd   :  { %1941 = vmatpush.msrb.mxu3 %v1881_v33 }
 0x8c3   :  { %v1702_v34 = vpop.permute.xlu1 %1701 }
 0x8c4   :  { %2122 = vrot.lane.b32.xlu0 %v1881_v33, %s4082_s4  ;;  %3429 = vmatpush.msk.msra.mxu1 %vm1638_vm6, %v1702_v34 }
 0x8c6   :  { %1724 = vmatpush.msra.mxu1 %v1702_v34 }
 0x8c8   :  { %3439 = vmatpush.msk.msrb.mxu1 %vm1638_vm6, %v1838_v35  ;;  %1986 = vrot.lane.b32.xlu2 %v1881_v33, %s4081_s23 }
 0x8ca   :  { %1860 = vmatpush.msrb.mxu1 %v1838_v35 }
 0x8d0   :  { %2054 = vrot.lane.b32.xlu2 %v1881_v33, %s4080_s1 }
 0x8dc   :  { %v2113_v38 = vpop.xlane.xlu2 %2112 }
 0x8dd   :  { %v2114_v1 = vsub.f32 %v4844_v59, %v2113_v38 }
 0x8df   :  { %v2115_v37 = vmul.f32 1.442695, %v2114_v1 }
 0x8e1   :  { %4056 = vpow2.f32 %v2115_v37 }
 0x8e7   :  { %v4057_v41 = vpop.eup %4056 }
 0x8e8   :  { %v2117_v43 = vsel %vm1622_vm15, %v4057_v41, 0.0 }
 0x8f9   :  { %2118 = vadd.xlane.f32.xlu2 %v2117_v43 }
 0x901   :  { %v1766_v44 = vpop.xlane.xlu2 %1765 }
 0x902   :  { %4058 = vrcp.f32 %v1766_v44 }
 0x908   :  { %v4059_v40 = vpop.eup %4058 }
 0x909   :  { %v1768_v48 = vmul.f32 %v4059_v40, %v4848_v63 }
 0x90b   :  { %3435 = vmatmul.msk.f32.vlgmr.msra.gmra.mxu3 %vm1622_vm15, %v1768_v48 }
 0x913   :  { %v1698_v49 = vpop.xlane.xlu0 %1697 }
 0x914   :  { %4060 = vrcp.f32 %v1698_v49 }
 0x91a   :  { %v4061_v50 = vpop.eup %4060 }
 0x91b   :  { %v1700_v51 = vmul.f32 %v4061_v50, %v4852_v8  ;;  %v1834_v52 = vpop.xlane.xlu2 %1833 }
 0x91c   :  { %4062 = vrcp.f32 %v1834_v52 }
 0x91d   :  { %3430 = vmatmul.msk.f32.vlgmr.msra.gmra.mxu1 %vm1622_vm15, %v1700_v51 }
 0x922   :  { %v4063_v53 = vpop.eup %4062 }
 0x923   :  { %v1983_v54 = vpop.xlane.xlu0 %1982  ;;  %v1836_v46 = vmul.f32 %v4063_v53, %v4047_v20  ;;  %v1917_v55 = vpop.xlane.xlu2 %1916  ;;  %v3875_v20 = vld [vmem:[%s5304_s12 + $0x10] sm:$0xff] }
 0x924   :  { %4064 = vrcp.f32 %v1983_v54  ;;  %v2051_v22 = vpop.xlane.xlu1 %2050  ;;  %2235 = vmatpush.bf16.msrb.mxu2 %v3875_v20  ;;  %v3583_v20 = vld [vmem:[%s5306_s16 + $0xa8] sm:$0xf] }
 0x925   :  { %4066 = vrcp.f32 %v1917_v55  ;;  %3440 = vmatmul.msk.f32.vlgmr.msrb.gmra.mxu1 %vm1622_vm15, %v1836_v46 }
 0x926   :  { %4068 = vrcp.f32 %v2051_v22  ;;  %v3911_v22 = vld [vmem:[%s5306_s16 + $0xec] sm:$0xf0] }
 0x928   :  { %2236 = vmatpush.bf16.msrb.mxu2 %v3874_v21  ;;  %v3904_v21 = vld [vmem:[%s5306_s16 + $0xb4] sm:$0xf0] }
 0x92a   :  { %v4065_v56 = vpop.eup %4064 }
 0x92b   :  { %v4067_v57 = vpop.eup %4066  ;;  %v1987_v58 = vpop.permute.xlu2 %1986  ;;  %v1985_v11 = vmul.f32 %v4065_v56, %v4051_v26 }
 0x92c   :  { %v1919_v12 = vmul.f32 %v4067_v57, %v4049_v25  ;;  %3449 = vmatpush.msk.msra.mxu1 %vm1638_vm6, %v1987_v58  ;;  %v4069_v59 = vpop.eup %4068  ;;  %2237 = vmatpush.bf16.msrb.mxu2 %v3873_v23  ;;  %v3909_v57 = vld [vmem:[%s5306_s16 + $0xe4] sm:$0xf]  ;;  %v3580_v23 = vor.u32 %v3901_v17, %v3577_v19  ;;  %v3883_v17 = vld [vmem:[%s5306_s16 + $0xc] sm:$0xf0]  ;;  %v3497_v19 = vld [vmem:[%s5306_s16 + $0x10] sm:$0xf0] }
 0x92d   :  { %v2053_v61 = vmul.f32 %v4069_v59, %v4857_v47  ;;  %v3912_v59 = vld [vmem:[%s5306_s16 + $0xf4] sm:$0xf0] }
 0x92e   :  { %3445 = vmatmul.msk.f32.vlgmr.msrb.gmra.mxu3 %vm1622_vm15, %v1919_v12  ;;  %2009 = vmatpush.msra.mxu1 %v1987_v58  ;;  %v3609_v58 = vld [vmem:[%s5306_s16 + $0xf0] sm:$0xf0] }
 0x92f   :  { %3450 = vmatmul.msk.f32.vlgmr.msra.gmra.mxu1 %vm1622_vm15, %v1985_v11  ;;  %v3615_v11 = vld [vmem:[%s5306_s16 + $0xe8] sm:$0xf] }
 0x933   :  { %v2055_v60 = vpop.permute.xlu2 %2054 }
 0x934   :  { %3454 = vmatpush.msk.msra.mxu3 %vm1638_vm6, %v2055_v60 }
 0x936   :  { %v2123_v42 = vpop.permute.xlu0 %2122  ;;  %2077 = vmatpush.msra.mxu3 %v2055_v60  ;;  %v3612_v60 = vor.u32 %v3909_v57, %v3609_v58  ;;  %v3535_v58 = vld [vmem:[%s5306_s16 + $0x48] sm:$0xf] }
 0x937   :  { %3459 = vmatpush.msk.msrb.mxu1 %vm1638_vm6, %v2123_v42  ;;  %3455 = vmatmul.msk.f32.vlgmr.msra.gmra.mxu3 %vm1622_vm15, %v2053_v61  ;;  %v3616_v61 = vor.u32 %v3912_v59, %v3615_v11  ;;  %v3892_v11 = vld [vmem:[%s5306_s16 + $0x54] sm:$0xf0] }
 0x938   :  { %v1658_v2 = vpop.f32.mrf.mxu3  ;;  %2517 = vmatpush.bf16.msra.mxu0 %v3612_v60  ;;  %v3536_v60 = vor.u32 %v3892_v11, %v3535_v58 }
 0x939   :  { %2145 = vmatpush.msrb.mxu1 %v2123_v42  ;;  %v3910_v42 = vld [vmem:[%s5306_s16 + $0xec] sm:$0xf] }
 0x93b   :  { %2531 = vmatpush.bf16.msra.mxu1 %v3616_v61  ;;  %v3890_v61 = vld [vmem:[%s5306_s16 + $0x4c] sm:$0xf] }
 0x96c   :  { %v2119_v62 = vpop.xlane.xlu2 %2118 }
 0x96d   :  { %4070 = vrcp.f32 %v2119_v62  ;;  %v3617_v62 = vld [vmem:[%s5306_s16 + $0xf8] sm:$0xf0] }
 0x973   :  { %v4071_v63 = vpop.eup %4070 }
 0x974   :  { %v2121_v45 = vmul.f32 %v4071_v63, %v4057_v41  ;;  %v3993_v41 = vld [vmem:[%s5305_s13] ss:$0 sm:$0xff]  ;;  %v3620_v63 = vor.u32 %v3910_v42, %v3617_v62  ;;  %v3537_v42 = vld [vmem:[%s5306_s16 + $0x58] sm:$0xf0] }
 0x975   :  { %v3540_v62 = vor.u32 %v3890_v61, %v3537_v42 }
 0x976   :  { %3460 = vmatmul.msk.f32.vlgmr.msrb.gmra.mxu1 %vm1622_vm15, %v2121_v45  ;;  %v3591_v45 = vld [vmem:[%s5306_s16 + $0xc0] sm:$0xf]  ;;  %2545 = vmatpush.bf16.msra.mxu2 %v3620_v63 }
 0x977   :  { %v3511_v63 = vld [vmem:[%s5306_s16 + $0x20] sm:$0xf] }
 0x98e   :  { %v1794_v3 = vpop.f32.mrf.mxu3 }
 0x99a   :  { %v1726_v0 = vpop.f32.mrf.mxu1 }
 0x9a2   :  { %v1862_v39 = vpop.f32.mrf.mxu1 }
 0x9ac   :  { %v2011_v4 = vpop.f32.mrf.mxu1 }
 0x9ad   :  { %v3973_v5 = vpack.i.bf16 %v2011_v4, %v1726_v0  ;;  %v3907_v0 = vld [vmem:[%s5306_s16 + $0xcc] sm:$0xf0]  ;;  %v3599_v4 = vld [vmem:[%s5306_s16 + $0xc8] sm:$0xf] }
 0x9af   :  { %3974 = vrot.lane.b32.xlu1 %v3973_v5, %s4082_s4  ;;  %v3908_v5 = vld [vmem:[%s5306_s16 + $0xd4] sm:$0xf0] }
 0x9b1   :  { %v1943_v8 = vpop.f32.mrf.mxu3 }
 0x9ba   :  { %v2079_v6 = vpop.f32.mrf.mxu3 }
 0x9bb   :  { %v3978_v7 = vpack.i.bf16 %v2079_v6, %v1794_v3  ;;  %v3593_v3 = vld [vmem:[%s5306_s16 + $0xd0] sm:$0xf0]  ;;  %v3600_v6 = vor.u32 %v3908_v5, %v3599_v4  ;;  %v3888_v4 = vld [vmem:[%s5306_s16 + $0x34] sm:$0xf0] }
 0x9bd   :  { %3979 = vrot.lane.b32.xlu0 %v3978_v7, %s4080_s1  ;;  %v3906_v7 = vld [vmem:[%s5306_s16 + $0xcc] sm:$0xf]  ;;  %2532 = vmatpush.bf16.msra.mxu1 %v3600_v6 }
 0x9f3   :  { %v2147_v9 = vpop.f32.mrf.mxu1 }
 0x9f4   :  { %v3983_v14 = vpack.i.bf16 %v2147_v9, %v1862_v39  ;;  %v3592_v39 = vor.u32 %v3907_v0, %v3591_v45  ;;  %v3601_v9 = vld [vmem:[%s5306_s16 + $0xd8] sm:$0xf0]  ;;  %v3887_v45 = vld [vmem:[%s5306_s16 + $0x2c] sm:$0xf0]  ;;  %v3885_v0 = vld [vmem:[%s5306_s16 + $0x24] sm:$0xf] }
 0x9f6   :  { %3984 = vrot.lane.b32.xlu0 %v3983_v14, %s4081_s23  ;;  %v3604_v14 = vor.u32 %v3906_v7, %v3601_v9  ;;  %v3886_v7 = vld [vmem:[%s5306_s16 + $0x2c] sm:$0xf]  ;;  %v3521_v9 = vld [vmem:[%s5306_s16 + $0x38] sm:$0xf0] }
 0x9f7   :  { %v3524_v16 = vor.u32 %v3886_v7, %v3521_v9  ;;  %v3916_v7 = vld [vmem:[%s5307_s18 + $0x18] sm:$0xff] }
 0x9f8   :  { %2546 = vmatpush.bf16.msra.mxu2 %v3604_v14  ;;  %v3495_v14 = vld [vmem:[%s5306_s16] sm:$0xf]  ;;  %v3940_v9 = vld [vmem:[%s5307_s18 + $0xd8] sm:$0xff] }
 0xa21   :  { %v3975_v25 = vpop.permute.xlu1 %3974 }
 0xa22   :  { %v3977_v26 = vunpack.i.h.bf16 %v3975_v25  ;;  %v3976_v47 = vunpack.i.l.bf16 %v3975_v25  ;;  %v3902_v25 = vld [vmem:[%s5306_s16 + $0xac] sm:$0xf] }
 0xa24   :  { %v2162_v30 = vsel %vm686_vm1, %v1943_v8, %v3977_v26  ;;  %v1877_v31 = vsel %vm686_vm1, %v1658_v2, %v3976_v47  ;;  %v3905_v2 = vld [vmem:[%s5306_s16 + $0xc4] sm:$0xf]  ;;  %v3585_v26 = vld [vmem:[%s5306_s16 + $0xb8] sm:$0xf0] }
 0xa25   :  { %v3596_v8 = vor.u32 %v3905_v2, %v3593_v3  ;;  %v3588_v47 = vor.u32 %v3902_v25, %v3585_v26  ;;  %v3512_v2 = vor.u32 %v3887_v45, %v3511_v63  ;;  %v3519_v3 = vld [vmem:[%s5306_s16 + $0x28] sm:$0xf]  ;;  %v3882_v25 = vld [vmem:[%s5306_s16 + $0xc] sm:$0xf]  ;;  %v3995_v45 = vld [vmem:[%s5302_s15 + $0x1] ss:$0 sm:$0xff] }
 0xa26   :  { %v3520_v6 = vor.u32 %v3888_v4, %v3519_v3  ;;  %v3932_v3 = vld [vmem:[%s5307_s18 + $0x98] sm:$0xff]  ;;  %v3917_v4 = vld [vmem:[%s5307_s18 + $0x20] sm:$0xff] }
 0xa27   :  { %2518 = vmatpush.bf16.msra.mxu0 %v3596_v8  ;;  %2547 = vmatpush.bf16.msra.mxu2 %v3588_v47 }
 0xa2b   :  { %2519 = vmatpush.bf16.msra.mxu0 %v3580_v23  ;;  %v3503_v23 = vld [vmem:[%s5306_s16 + $0x8] sm:$0xf] }
 0xa2f   :  { %v3980_v24 = vpop.permute.xlu0 %3979 }
 0xa30   :  { %v3982_v27 = vunpack.i.h.bf16 %v3980_v24  ;;  %v3981_v28 = vunpack.i.l.bf16 %v3980_v24  ;;  %v3584_v24 = vor.u32 %v3904_v21, %v3583_v20  ;;  %v3496_v20 = vor.u32 %v3883_v17, %v3495_v14  ;;  %v3922_v14 = vld [vmem:[%s5307_s18 + $0x48] sm:$0xff]  ;;  %v3939_v17 = vld [vmem:[%s5307_s18 + $0xd0] sm:$0xff] }
 0xa32   :  { %v2163_v34 = vsel %vm374_vm0, %v2162_v30, %v3982_v27  ;;  %v1878_v35 = vsel %vm374_vm0, %v1877_v31, %v3981_v28  ;;  %2533 = vmatpush.bf16.msra.mxu1 %v3584_v24  ;;  %v3559_v27 = vld [vmem:[%s5306_s16 + $0x80] sm:$0xf]  ;;  %v3899_v28 = vld [vmem:[%s5306_s16 + $0x8c] sm:$0xf0]  ;;  %v3561_v31 = vld [vmem:[%s5306_s16 + $0x90] sm:$0xf0] }
 0xa33   :  { %v3560_v30 = vor.u32 %v3899_v28, %v3559_v27  ;;  %v3884_v24 = vld [vmem:[%s5306_s16 + $0x14] sm:$0xf0]  ;;  %v3505_v27 = vld [vmem:[%s5306_s16 + $0x18] sm:$0xf0] }
 0xa34   :  { %v3504_v47 = vor.u32 %v3884_v24, %v3503_v23  ;;  %v3508_v28 = vor.u32 %v3882_v25, %v3505_v27  ;;  %v3913_v23 = vld [vmem:[%s5307_s18] sm:$0xff] }
 0xa35   :  { %v3937_v24 = vld [vmem:[%s5307_s18 + $0xc0] sm:$0xff] }
 0xa36   :  { %v2333_v25 = vld [vmem:[%s5308_s17] sm:$0xf] }
 0xa37   :  { %v2336_v27 = vperm.slane %v2333_v25, 1 }
 0xa68   :  { %v3985_v29 = vpop.permute.xlu0 %3984 }
 0xa69   :  { %v3987_v32 = vunpack.i.h.bf16 %v3985_v29  ;;  %v3986_v33 = vunpack.i.l.bf16 %v3985_v29  ;;  %v3897_v29 = vld [vmem:[%s5306_s16 + $0x84] sm:$0xf] }
 0xa6b   :  { %v1879_v38 = vsel %vm962_vm7, %v1878_v35, %v3986_v33  ;;  %v2164_v1 = vsel %vm962_vm7, %v2163_v34, %v3987_v32  ;;  %v3567_v32 = vld [vmem:[%s5306_s16 + $0x88] sm:$0xf]  ;;  %v3900_v33 = vld [vmem:[%s5306_s16 + $0x94] sm:$0xf0]  ;;  %v3564_v34 = vor.u32 %v3897_v29, %v3561_v31 }
 0xa6c   :  { %v2165_v37 = vpack.c.bf16 %v2164_v1, %v1879_v38  ;;  %v3568_v35 = vor.u32 %v3900_v33, %v3567_v32  ;;  %v3898_v38 = vld [vmem:[%s5306_s16 + $0x8c] sm:$0xf]  ;;  %v3569_v1 = vld [vmem:[%s5306_s16 + $0x98] sm:$0xf0] }
 0xa6d   :  { %2520 = vmatpush.bf16.msra.mxu0 %v3564_v34  ;;  %v3936_v31 = vld [vmem:[%s5307_s18 + $0xb8] sm:$0xff] }
 0xa6e   :  { %2238 = vmatmul.bf16.vlgmr.msrb.gmra.mxu2 %v2165_v37  ;;  %v3572_v37 = vor.u32 %v3898_v38, %v3569_v1  ;;  %2534 = vmatpush.bf16.msra.mxu1 %v3568_v35  ;;  %v3920_v33 = vld [vmem:[%s5307_s18 + $0x38] sm:$0xff]  ;;  %v3927_v35 = vld [vmem:[%s5307_s18 + $0x70] sm:$0xff] }
 0xa6f   :  { %v3944_v34 = vld [vmem:[%s5307_s18 + $0xf8] sm:$0xff]  ;;  %v3935_v38 = vld [vmem:[%s5307_s18 + $0xb0] sm:$0xff] }
 0xa70   :  { %2548 = vmatpush.bf16.msra.mxu2 %v3572_v37 }
 0xaf1   :  { %v2239_v43 = vpop.f32.mrf.mxu2 }
 0xaf2   :  { %v2244_v44 = vadd.f32 %v2239_v43, %v4789_v10  ;;  %v3895_v43 = vld [vmem:[%s5306_s16 + $0x6c] sm:$0xf0] }
 0xaf4   :  { %v2250_v40 = vadd.f32 %v3993_v41, %v2244_v44  ;;  %v3893_v44 = vld [vmem:[%s5306_s16 + $0x64] sm:$0xf] }
 0xaf6   :  { %2254 = vadd.xlane.f32.xlu1 %v2250_v40 }
 0xaf9   :  { %v2241_v48 = vpop.f32.mrf.mxu2 }
 0xafa   :  { %v2245_v49 = vadd.f32 %v2241_v48, %v4791_v13  ;;  %v3607_v13 = vld [vmem:[%s5306_s16 + $0xe0] sm:$0xf]  ;;  %v3545_v48 = vld [vmem:[%s5306_s16 + $0x70] sm:$0xf0] }
 0xafb   :  { %v3608_v12 = vor.u32 %v3911_v22, %v3607_v13  ;;  %v3891_v13 = vld [vmem:[%s5306_s16 + $0x4c] sm:$0xf0]  ;;  %v3889_v22 = vld [vmem:[%s5306_s16 + $0x44] sm:$0xf] }
 0xafc   :  { %v2251_v50 = vadd.f32 %v3993_v41, %v2245_v49  ;;  %v3543_v41 = vld [vmem:[%s5306_s16 + $0x60] sm:$0xf]  ;;  %v3551_v49 = vld [vmem:[%s5306_s16 + $0x68] sm:$0xf] }
 0xafd   :  { %2503 = vmatpush.bf16.msrb.mxu3 %v3608_v12  ;;  %v3529_v12 = vld [vmem:[%s5306_s16 + $0x50] sm:$0xf0] }
 0xafe   :  { %2256 = vadd.xlane.f32.xlu0 %v2251_v50  ;;  %v3532_v59 = vor.u32 %v3889_v22, %v3529_v12 }
 0xb01   :  { %2504 = vmatpush.bf16.msrb.mxu3 %v3592_v39  ;;  %v3513_v39 = vld [vmem:[%s5306_s16 + $0x30] sm:$0xf0] }
 0xb02   :  { %v3516_v8 = vor.u32 %v3885_v0, %v3513_v39 }
 0xb05   :  { %2505 = vmatpush.bf16.msrb.mxu3 %v3576_v18  ;;  %v3881_v18 = vld [vmem:[%s5306_s16 + $0x4] sm:$0xf] }
 0xb06   :  { %v3500_v21 = vor.u32 %v3881_v18, %v3497_v19  ;;  %v3921_v18 = vld [vmem:[%s5307_s18 + $0x40] sm:$0xff] }
 0xb07   :  { %v3929_v19 = vld [vmem:[%s5307_s18 + $0x80] sm:$0xff] }
 0xb09   :  { %2506 = vmatpush.bf16.msrb.mxu3 %v3560_v30  ;;  %v3928_v30 = vld [vmem:[%s5307_s18 + $0x78] sm:$0xff] }
 0xb69   :  { %v2255_v51 = vpop.xlane.xlu1 %2254 }
 0xb6a   :  { %v2258_v52 = vmul.f32 %v2255_v51, %v4764_v36  ;;  %v3548_v51 = vor.u32 %v3893_v44, %v3545_v48  ;;  %v3926_v48 = vld [vmem:[%s5307_s18 + $0x68] sm:$0xff] }
 0xb6c   :  { %v4926_v53 = vsub.f32 %v2250_v40, %v2258_v52  ;;  %v3544_v40 = vor.u32 %v3895_v43, %v3543_v41  ;;  %2521 = vmatpush.bf16.msra.mxu0 %v3548_v51  ;;  %v3919_v41 = vld [vmem:[%s5307_s18 + $0x30] sm:$0xff]  ;;  %v3942_v51 = vld [vmem:[%s5307_s18 + $0xe8] sm:$0xff] }
 0xb6d   :  { %v3943_v43 = vld [vmem:[%s5307_s18 + $0xf0] sm:$0xff] }
 0xb6e   :  { %v2262_v54 = vmul.f32 %v4926_v53, %v4926_v53  ;;  %2507 = vmatpush.bf16.msrb.mxu3 %v3544_v40 }
 0xb70   :  { %2264 = vadd.xlane.f32.xlu2 %v2262_v54  ;;  %v3894_v54 = vld [vmem:[%s5306_s16 + $0x6c] sm:$0xf]  ;;  %2522 = vmatpush.bf16.msra.mxu0 %v3532_v59 }
 0xb71   :  { %v2257_v46 = vpop.xlane.xlu0 %2256 }
 0xb72   :  { %v2259_v55 = vmul.f32 %v2257_v46, %v4764_v36  ;;  %v3553_v46 = vld [vmem:[%s5306_s16 + $0x78] sm:$0xf0] }
 0xb74   :  { %v4931_v10 = vsub.f32 %v2251_v50, %v2259_v55  ;;  %v3896_v50 = vld [vmem:[%s5306_s16 + $0x74] sm:$0xf0]  ;;  %v3556_v55 = vor.u32 %v3894_v54, %v3553_v46  ;;  %2523 = vmatpush.bf16.msra.mxu0 %v3516_v8  ;;  %v3925_v46 = vld [vmem:[%s5307_s18 + $0x60] sm:$0xff]  ;;  %v3923_v8 = vld [vmem:[%s5307_s18 + $0x50] sm:$0xff] }
 0xb75   :  { %v3552_v52 = vor.u32 %v3896_v50, %v3551_v49  ;;  %v3934_v49 = vld [vmem:[%s5307_s18 + $0xa8] sm:$0xff] }
 0xb76   :  { %v2263_v56 = vmul.f32 %v4931_v10, %v4931_v10  ;;  %2549 = vmatpush.bf16.msra.mxu2 %v3556_v55  ;;  %v3918_v50 = vld [vmem:[%s5307_s18 + $0x28] sm:$0xff]  ;;  %v3933_v55 = vld [vmem:[%s5307_s18 + $0xa0] sm:$0xff] }
 0xb77   :  { %2535 = vmatpush.bf16.msra.mxu1 %v3552_v52 }
 0xb78   :  { %2266 = vadd.xlane.f32.xlu2 %v2263_v56  ;;  %v3527_v56 = vld [vmem:[%s5306_s16 + $0x40] sm:$0xf]  ;;  %2524 = vmatpush.bf16.msra.mxu0 %v3500_v21  ;;  %v3938_v21 = vld [vmem:[%s5307_s18 + $0xc8] sm:$0xff] }
 0xb79   :  { %v3528_v57 = vor.u32 %v3891_v13, %v3527_v56 }
 0xb7a   :  { %2550 = vmatpush.bf16.msra.mxu2 %v3540_v62 }
 0xb7b   :  { %2508 = vmatpush.bf16.msrb.mxu3 %v3528_v57  ;;  %2536 = vmatpush.bf16.msra.mxu1 %v3536_v60  ;;  %v3994_v60 = vld [vmem:[%s5301_s14 + $0x1] ss:$0 sm:$0xff] }
 0xb7c   :  { %2841 = vmatpush.bf16.msrb.mxu0 %v3928_v30 }
 0xb7e   :  { %2551 = vmatpush.bf16.msra.mxu2 %v3524_v16  ;;  %v3915_v16 = vld [vmem:[%s5307_s18 + $0x10] sm:$0xff] }
 0xb7f   :  { %2509 = vmatpush.bf16.msrb.mxu3 %v3512_v2  ;;  %2537 = vmatpush.bf16.msra.mxu1 %v3520_v6  ;;  %v3931_v6 = vld [vmem:[%s5307_s18 + $0x90] sm:$0xff] }
 0xb80   :  { %2842 = vmatpush.bf16.msrb.mxu0 %v3927_v35 }
 0xb82   :  { %2552 = vmatpush.bf16.msra.mxu2 %v3508_v28  ;;  %v2337_v28 = vperm.slane %v2333_v25, 2 }
 0xb83   :  { %2510 = vmatpush.bf16.msrb.mxu3 %v3496_v20  ;;  %2538 = vmatpush.bf16.msra.mxu1 %v3504_v47  ;;  %v3914_v20 = vld [vmem:[%s5307_s18 + $0x8] sm:$0xff] }
 0xb84   :  { %2843 = vmatpush.bf16.msrb.mxu0 %v3926_v48 }
 0xb86   :  { %2869 = vmatpush.bf16.msrb.mxu2 %v3944_v34  ;;  %v2335_v34 = vperm.slane %v2333_v25, 0 }
 0xb87   :  { %2855 = vmatpush.bf16.msrb.mxu1 %v3936_v31  ;;  %2827 = vmatpush.bf16.msra.mxu3 %v3920_v33 }
 0xb88   :  { %2844 = vmatpush.bf16.msrb.mxu0 %v3925_v46 }
 0xb8a   :  { %2870 = vmatpush.bf16.msrb.mxu2 %v3943_v43 }
 0xb8b   :  { %2856 = vmatpush.bf16.msrb.mxu1 %v3935_v38  ;;  %2828 = vmatpush.bf16.msra.mxu3 %v3919_v41 }
 0xb8e   :  { %2871 = vmatpush.bf16.msrb.mxu2 %v3942_v51 }
 0xb8f   :  { %2857 = vmatpush.bf16.msrb.mxu1 %v3934_v49  ;;  %2829 = vmatpush.bf16.msra.mxu3 %v3918_v50 }
 0xb93   :  { %2858 = vmatpush.bf16.msrb.mxu1 %v3933_v55  ;;  %2830 = vmatpush.bf16.msra.mxu3 %v3917_v4 }
 0xb97   :  { %2859 = vmatpush.bf16.msrb.mxu1 %v3932_v3  ;;  %2831 = vmatpush.bf16.msra.mxu3 %v3916_v7 }
 0xb9b   :  { %2860 = vmatpush.bf16.msrb.mxu1 %v3931_v6  ;;  %2832 = vmatpush.bf16.msra.mxu3 %v3915_v16 }
 0xb9f   :  { %2833 = vmatpush.bf16.msra.mxu3 %v3914_v20 }
 0xba3   :  { %2834 = vmatpush.bf16.msra.mxu3 %v3913_v23  ;;  %v3952_v23 = vld [vmem:[%s5311_s20 + $0x38] sm:$0xff] }
 0xbe3   :  { %v2265_v5 = vpop.xlane.xlu2 %2264 }
 0xbe4   :  { %v2268_v15 = vmul.f32 %v2265_v5, %v4764_v36  ;;  %v3941_v5 = vld [vmem:[%s5307_s18 + $0xe0] sm:$0xff] }
 0xbe5   :  { %2872 = vmatpush.bf16.msrb.mxu2 %v3941_v5 }
 0xbe6   :  { %v2270_v26 = vadd.f32 1e-05, %v2268_v15  ;;  %v3930_v15 = vld [vmem:[%s5307_s18 + $0x88] sm:$0xff] }
 0xbe7   :  { %2861 = vmatpush.bf16.msrb.mxu1 %v3930_v15 }
 0xbe8   :  { %4072 = vrsqrt.f32 %v2270_v26  ;;  %vm2278_vm1 = vweird.f32 %v2270_v26 }
 0xbe9   :  { %2873 = vmatpush.bf16.msrb.mxu2 %v3940_v9 }
 0xbeb   :  { %v2267_v29 = vpop.xlane.xlu2 %2266  ;;  %2862 = vmatpush.bf16.msrb.mxu1 %v3929_v19 }
 0xbec   :  { %v2269_v32 = vmul.f32 %v2267_v29, %v4764_v36 }
 0xbed   :  { %2874 = vmatpush.bf16.msrb.mxu2 %v3939_v17 }
 0xbee   :  { %v4073_v1 = vpop.eup %4072  ;;  %v2271_v37 = vadd.f32 1e-05, %v2269_v32 }
 0xbef   :  { %v2273_v44 = vmul.f32 %v4073_v1, %v2270_v26  ;;  %vm2279_vm0 = vweird.f32 %v4073_v1 }
 0xbf0   :  { %4074 = vrsqrt.f32 %v2271_v37  ;;  %vm2280_vm2 = vmor %vm2278_vm1, %vm2279_vm0  ;;  %vm2288_vm4 = vweird.f32 %v2271_v37 }
 0xbf1   :  { %v2274_v40 = vmul.f32 %v4073_v1, %v2273_v44  ;;  %2875 = vmatpush.bf16.msrb.mxu2 %v3938_v21 }
 0xbf3   :  { %v2275_v52 = vmul.f32 0.5, %v2274_v40 }
 0xbf5   :  { %v2276_v54 = vsub.f32 1.5, %v2275_v52  ;;  %2876 = vmatpush.bf16.msrb.mxu2 %v3937_v24  ;;  %v3950_v24 = vld [vmem:[%s5311_s20 + $0x28] sm:$0xff] }
 0xbf6   :  { %v4075_v56 = vpop.eup %4074 }
 0xbf7   :  { %v2277_v13 = vmul.f32 %v4073_v1, %v2276_v54  ;;  %v2283_v22 = vmul.f32 %v4075_v56, %v2271_v37  ;;  %vm2289_vm3 = vweird.f32 %v4075_v56 }
 0xbf8   :  { %vm2290_vm5 = vmor %vm2288_vm4, %vm2289_vm3 }
 0xbf9   :  { %v2284_v57 = vmul.f32 %v4075_v56, %v2283_v22  ;;  %v2281_v12 = vsel %vm2280_vm2, %v4073_v1, %v2277_v13  ;;  %v2338_v1 = vperm.slane %v2333_v25, 3  ;;  %v3949_v25 = vld [vmem:[%s5311_s20 + $0x20] sm:$0xff] }
 0xbfa   :  { %v2292_v59 = vmul.f32 %v2281_v12, %v4926_v53 }
 0xbfb   :  { %v2285_v58 = vmul.f32 0.5, %v2284_v57 }
 0xbfc   :  { %v2295_v63 = vmul.f32 %v3994_v60, %v2292_v59 }
 0xbfd   :  { %v2286_v11 = vsub.f32 1.5, %v2285_v58 }
 0xbfe   :  { %v5179_v2 = vadd.f32 %v3995_v45, %v2295_v63 }
 0xbff   :  { %v2287_v61 = vmul.f32 %v4075_v56, %v2286_v11 }
 0xc01   :  { %v2291_v42 = vsel %vm2290_vm5, %v4075_v56, %v2287_v61 }
 0xc02   :  { %v2293_v62 = vmul.f32 %v2291_v42, %v4931_v10  ;;  %v3924_v10 = vld [vmem:[%s5307_s18 + $0x58] sm:$0xff] }
 0xc03   :  { %2845 = vmatpush.bf16.msrb.mxu0 %v3924_v10 }
 0xc04   :  { %v2296_v0 = vmul.f32 %v3994_v60, %v2293_v62 }
 0xc06   :  { %v5181_v39 = vadd.f32 %v3995_v45, %v2296_v0  ;;  %v3996_v45 = vld [vmem:[%s5309_s19] ss:$0 sm:$0xff] }
 0xc07   :  { %2846 = vmatpush.bf16.msrb.mxu0 %v3923_v8 }
 0xc08   :  { %v2300_v53 = vpack.c.bf16 %v5181_v39, %v5179_v2 }
 0xc0a   :  { %2511 = vmatmul.bf16.vlgmr.msrb.gmra.mxu3 %v2300_v53  ;;  %2525 = vmatmul.bf16.vlgmr.msra.gmra.mxu0 %v2300_v53 }
 0xc0b   :  { %2539 = vmatmul.bf16.vlgmr.msra.gmra.mxu1 %v2300_v53  ;;  %2553 = vmatmul.bf16.vlgmr.msra.gmra.mxu2 %v2300_v53 }
 0xc0c   :  { %2847 = vmatpush.bf16.msrb.mxu0 %v3922_v14  ;;  %3008 = vmatpush.bf16.msrb.mxu3 %v3952_v23 }
 0xc10   :  { %2848 = vmatpush.bf16.msrb.mxu0 %v3921_v18 }
 0xc87   :  { %v2526_v26 = vpop.f32.mrf.mxu0 }
 0xc88   :  { %v2540_v47 = vpop.f32.mrf.mxu1  ;;  %v2527_v30 = vadd.f32 %v2526_v26, %v2336_v27  ;;  %v3948_v26 = vld [vmem:[%s5311_s20 + $0x18] sm:$0xff] }
 0xc89   :  { %v2541_v32 = vadd.f32 %v2540_v47, %v2337_v28  ;;  %v3947_v47 = vld [vmem:[%s5311_s20 + $0x10] sm:$0xff] }
 0xc8a   :  { %v2560_v41 = vmax.f32 %v2527_v30, 0.0  ;;  %v3945_v30 = vld [vmem:[%s5311_s20] sm:$0xff] }
 0xc8b   :  { %v2561_v44 = vmax.f32 %v2541_v32, 0.0 }
 0xc8d   :  { %v2512_v29 = vpop.f32.mrf.mxu3 }
 0xc8e   :  { %v2554_v31 = vpop.f32.mrf.mxu2  ;;  %v2513_v48 = vadd.f32 %v2512_v29, %v2335_v34 }
 0xc8f   :  { %v2528_v33 = vpop.f32.mrf.mxu0  ;;  %v2555_v50 = vadd.f32 %v2554_v31, %v2338_v1 }
 0xc90   :  { %v2529_v35 = vadd.f32 %v2528_v33, %v2336_v27  ;;  %v2542_v38 = vpop.f32.mrf.mxu1  ;;  %v2559_v56 = vmax.f32 %v2513_v48, 0.0  ;;  %v3946_v27 = vld [vmem:[%s5311_s20 + $0x8] sm:$0xff] }
 0xc91   :  { %v2543_v37 = vadd.f32 %v2542_v38, %v2337_v28  ;;  %v2562_v22 = vmax.f32 %v2555_v50, 0.0 }
 0xc92   :  { %v2564_v43 = vmax.f32 %v2529_v35, 0.0 }
 0xc93   :  { %v2565_v40 = vmax.f32 %v2543_v37, 0.0 }
 0xc94   :  { %v2568_v49 = vpack.c.bf16 %v2564_v43, %v2560_v41 }
 0xc95   :  { %v2569_v51 = vpack.c.bf16 %v2565_v40, %v2561_v44  ;;  %v2514_v52 = vpop.f32.mrf.mxu3 }
 0xc96   :  { %v2515_v54 = vadd.f32 %v2514_v52, %v2335_v34  ;;  %v2556_v46 = vpop.f32.mrf.mxu2  ;;  %2849 = vmatmul.bf16.vlgmr.msrb.gmra.mxu0 %v2568_v49 }
 0xc97   :  { %v2557_v55 = vadd.f32 %v2556_v46, %v2338_v1  ;;  %2863 = vmatmul.bf16.vlgmr.msrb.gmra.mxu1 %v2569_v51 }
 0xc98   :  { %v2563_v13 = vmax.f32 %v2515_v54, 0.0 }
 0xc99   :  { %v2566_v57 = vmax.f32 %v2557_v55, 0.0 }
 0xc9a   :  { %v2567_v12 = vpack.c.bf16 %v2563_v13, %v2559_v56  ;;  %v3998_v13 = vld [vmem:[%s5302_s15 + $0x2] ss:$0 sm:$0xff] }
 0xc9b   :  { %v2570_v58 = vpack.c.bf16 %v2566_v57, %v2562_v22 }
 0xc9c   :  { %2835 = vmatmul.bf16.vlgmr.msra.gmra.mxu3 %v2567_v12 }
 0xc9d   :  { %2877 = vmatmul.bf16.vlgmr.msrb.gmra.mxu2 %v2570_v58 }
 0xd13   :  { %v2850_v11 = vpop.f32.mrf.mxu0 }
 0xd14   :  { %v2864_v59 = vpop.f32.mrf.mxu1 }
 0xd1b   :  { %v2852_v53 = vpop.f32.mrf.mxu0 }
 0xd1c   :  { %v2866_v5 = vpop.f32.mrf.mxu1 }
 0xd1f   :  { %v2836_v60 = vpop.f32.mrf.mxu3 }
 0xd20   :  { %v2851_v61 = vadd.f32 %v2850_v11, %v2836_v60  ;;  %v2878_v42 = vpop.f32.mrf.mxu2  ;;  %v3999_v11 = vld [vmem:[%s5310_s21] ss:$0 sm:$0xff] }
 0xd22   :  { %v2865_v62 = vadd.f32 %v2864_v59, %v2851_v61 }
 0xd24   :  { %v2879_v63 = vadd.f32 %v2878_v42, %v2865_v62 }
 0xd26   :  { %v2883_v0 = vadd.f32 %v2879_v63, %v5179_v2 }
 0xd27   :  { %v2838_v10 = vpop.f32.mrf.mxu3 }
 0xd28   :  { %v2853_v3 = vadd.f32 %v2852_v53, %v2838_v10  ;;  %v2889_v4 = vadd.f32 %v3996_v45, %v2883_v0  ;;  %v2880_v6 = vpop.f32.mrf.mxu2 }
 0xd2a   :  { %v2867_v8 = vadd.f32 %v2866_v5, %v2853_v3  ;;  %2893 = vadd.xlane.f32.xlu2 %v2889_v4 }
 0xd2c   :  { %v2881_v7 = vadd.f32 %v2880_v6, %v2867_v8 }
 0xd2e   :  { %v2884_v9 = vadd.f32 %v2881_v7, %v5181_v39  ;;  %v3951_v39 = vld [vmem:[%s5311_s20 + $0x30] sm:$0xff] }
 0xd2f   :  { %3009 = vmatpush.bf16.msrb.mxu3 %v3951_v39 }
 0xd30   :  { %v2890_v14 = vadd.f32 %v3996_v45, %v2884_v9 }
 0xd32   :  { %2895 = vadd.xlane.f32.xlu2 %v2890_v14 }
 0xd33   :  { %3010 = vmatpush.bf16.msrb.mxu3 %v3950_v24 }
 0xd37   :  { %3011 = vmatpush.bf16.msrb.mxu3 %v3949_v25 }
 0xd3b   :  { %3012 = vmatpush.bf16.msrb.mxu3 %v3948_v26 }
 0xd3f   :  { %3013 = vmatpush.bf16.msrb.mxu3 %v3947_v47 }
 0xd43   :  { %3014 = vmatpush.bf16.msrb.mxu3 %v3946_v27 }
 0xd47   :  { %3015 = vmatpush.bf16.msrb.mxu3 %v3945_v30 }
 0xd9d   :  { %v2894_v15 = vpop.xlane.xlu2 %2893 }
 0xd9e   :  { %v2897_v16 = vmul.f32 %v2894_v15, %v4764_v36 }
 0xda0   :  { %v2899_v17 = vsub.f32 %v2889_v4, %v2897_v16 }
 0xda2   :  { %v2901_v18 = vmul.f32 %v2899_v17, %v2899_v17 }
 0xda4   :  { %2903 = vadd.xlane.f32.xlu2 %v2901_v18 }
 0xda5   :  { %v2896_v2 = vpop.xlane.xlu2 %2895 }
 0xda6   :  { %v2898_v19 = vmul.f32 %v2896_v2, %v4764_v36 }
 0xda8   :  { %v2900_v20 = vsub.f32 %v2890_v14, %v2898_v19 }
 0xdaa   :  { %v2902_v21 = vmul.f32 %v2900_v20, %v2900_v20 }
 0xdac   :  { %2905 = vadd.xlane.f32.xlu1 %v2902_v21 }
 0xe17   :  { %v2904_v28 = vpop.xlane.xlu2 %2903 }
 0xe18   :  { %v2907_v29 = vmul.f32 %v2904_v28, %v4764_v36 }
 0xe1a   :  { %v2909_v31 = vadd.f32 1e-05, %v2907_v29 }
 0xe1c   :  { %4076 = vrsqrt.f32 %v2909_v31  ;;  %vm2917_vm7 = vweird.f32 %v2909_v31 }
 0xe1f   :  { %v2906_v32 = vpop.xlane.xlu1 %2905 }
 0xe20   :  { %v2908_v33 = vmul.f32 %v2906_v32, %v4764_v36  ;;  %v3997_v36 = vld [vmem:[%s5301_s14 + $0x2] ss:$0 sm:$0xff] }
 0xe22   :  { %v4077_v34 = vpop.eup %4076  ;;  %v2910_v35 = vadd.f32 1e-05, %v2908_v33 }
 0xe23   :  { %v2912_v38 = vmul.f32 %v4077_v34, %v2909_v31  ;;  %vm2918_vm6 = vweird.f32 %v4077_v34 }
 0xe24   :  { %4078 = vrsqrt.f32 %v2910_v35  ;;  %vm2919_vm8 = vmor %vm2917_vm7, %vm2918_vm6  ;;  %vm2927_vm10 = vweird.f32 %v2910_v35 }
 0xe25   :  { %v2913_v1 = vmul.f32 %v4077_v34, %v2912_v38 }
 0xe27   :  { %v2914_v37 = vmul.f32 0.5, %v2913_v1 }
 0xe29   :  { %v2915_v41 = vsub.f32 1.5, %v2914_v37 }
 0xe2a   :  { %v4079_v43 = vpop.eup %4078 }
 0xe2b   :  { %v2916_v44 = vmul.f32 %v4077_v34, %v2915_v41  ;;  %v2922_v40 = vmul.f32 %v4079_v43, %v2910_v35  ;;  %vm2928_vm9 = vweird.f32 %v4079_v43 }
 0xe2c   :  { %vm2929_vm11 = vmor %vm2927_vm10, %vm2928_vm9 }
 0xe2d   :  { %v2923_v48 = vmul.f32 %v4079_v43, %v2922_v40  ;;  %v2920_v49 = vsel %vm2919_vm8, %v4077_v34, %v2916_v44 }
 0xe2e   :  { %v2931_v52 = vmul.f32 %v2920_v49, %v2899_v17 }
 0xe2f   :  { %v2924_v50 = vmul.f32 0.5, %v2923_v48 }
 0xe30   :  { %v2934_v56 = vmul.f32 %v3997_v36, %v2931_v52 }
 0xe31   :  { %v2925_v51 = vsub.f32 1.5, %v2924_v50 }
 0xe32   :  { %v2937_v57 = vadd.f32 %v3998_v13, %v2934_v56 }
 0xe33   :  { %v2926_v54 = vmul.f32 %v4079_v43, %v2925_v51 }
 0xe35   :  { %v2930_v46 = vsel %vm2929_vm11, %v4079_v43, %v2926_v54 }
 0xe36   :  { %v2932_v55 = vmul.f32 %v2930_v46, %v2900_v20 }
 0xe38   :  { %v2935_v22 = vmul.f32 %v3997_v36, %v2932_v55 }
 0xe3a   :  { %v2938_v12 = vadd.f32 %v3998_v13, %v2935_v22 }
 0xe3c   :  { %v2939_v58 = vpack.c.bf16 %v2938_v12, %v2937_v57 }
 0xe3e   :  { %3016 = vmatmul.bf16.vlgmr.msrb.gmra.mxu3 %v2939_v58 }
 0xec1   :  { %v3017_v59 = vpop.f32.mrf.mxu3 }
 0xec2   :  { %v3018_v60 = vadd.f32 %v3999_v11, %v3017_v59 }
 0xec4   :  { %3022 = vst [vmem:[%s5312_s22] sm:$0xff] %v3018_v60 }
 0xec9   :  { %v3019_v61 = vpop.f32.mrf.mxu3 }
 0xeca   :  { %v3020_v42 = vadd.f32 %v3999_v11, %v3019_v61 }
 0xecc   :  { %3023 = vst [vmem:[%s5312_s22 + $0x8] sm:$0xff] %v3020_v42 }

</bundles_post_ra>
